<compile_context>
chip_gen: v6e
topology: v6e:2x2x1
jax: 0.10.0
libtpu: 0.0.40
codegen_flags: <defaults>
</compile_context>

<pallas_src>
import math

import jax
import jax.numpy as jnp
from jax.experimental import pallas as pl
from jax.experimental.pallas import tpu as pltpu

IN_FEATURES = 800
HIDDEN = 400
OUT_FEATURES = 400


def _mlp_kernel(x_ref,
                w1, b1, w2, b2, w3, b3, w4, b4, w5, b5, w6, b6, w7, b7,
                o_ref):
    """Full forward pass for one batch tile, entirely in VMEM.

    x_ref : (BM, IN_FEATURES)   f32
    wK    : (in_k, out_k)       bf16       bK : (1, out_k)  f32
    o_ref : (BM, OUT_FEATURES)  f32
    """
    def layer(h, w_ref, b_ref, activate):
        # bf16 x bf16 on the MXU with f32 accumulation; epilogue stays f32.
        y = jnp.dot(h.astype(jnp.bfloat16), w_ref[...],
                    preferred_element_type=jnp.float32) + b_ref[...]
        return jax.nn.sigmoid(y) if activate else y

    h = x_ref[...].astype(jnp.float32)
    h = layer(h, w1, b1, True)
    h = layer(h, w2, b2, True)
    h = layer(h, w3, b3, True)
    h = layer(h, w4, b4, True)
    h = layer(h, w5, b5, True)
    h = layer(h, w6, b6, True)
    h = layer(h, w7, b7, False)          # final layer: no activation
    o_ref[...] = h.astype(o_ref.dtype)


def _replicated_spec(shape):
    """Full-array block, same block for every grid step, single-buffered."""
    index_map = lambda i, _nd=len(shape): (0,) * _nd   # bind ndim explicitly
    buffered = getattr(pl, "Buffered", None)
    if buffered is not None:
        try:
            return pl.BlockSpec(shape, index_map, pipeline_mode=buffered(1))
        except TypeError:
            pass  # older jax without the pipeline_mode kwarg
    return pl.BlockSpec(shape, index_map)


def _choose_tiling(batch):
    """Pick (block_m, n_tiles, padded_batch) for the given batch size."""
    MAX_BM = 256                                     # fills v6e/v7x MXU M dim
    n_tiles = max(1, math.ceil(batch / MAX_BM))
    if batch >= 2 * 128:
        n_tiles = max(n_tiles, 2)                    # >=2 steps -> v7x 2-TC shard
    block_m = math.ceil(batch / n_tiles)
    block_m = ((block_m + 7) // 8) * 8               # f32 sublane multiple
    return block_m, n_tiles, block_m * n_tiles


@jax.jit
def minesweeper_forward(x, params):
    """x: (B, IN_FEATURES) float32. params: flat tuple (w1, b1, ..., w7, b7)."""
    B, F = x.shape
    assert F == IN_FEATURES

    block_m, n_tiles, B_pad = _choose_tiling(B)
    if B_pad != B:
        x = jnp.pad(x, ((0, B_pad - B), (0, 0)))

    # VMEM budget: single-buffered params + double-buffered x/o tiles +
    # headroom for live f32 activations; cap at 48 MiB so v7x (64 MiB) fits.
    param_bytes = sum(int(p.size) * p.dtype.itemsize for p in params)
    io_bytes = 2 * block_m * (IN_FEATURES + OUT_FEATURES) * 4
    act_bytes = 8 * block_m * max(IN_FEATURES, HIDDEN) * 4
    vmem_limit = int(min(48 << 20,
                         max(16 << 20, 2 * (param_bytes + io_bytes + act_bytes))))

    x_spec = pl.BlockSpec((block_m, IN_FEATURES), lambda i: (i, 0))
    o_spec = pl.BlockSpec((block_m, OUT_FEATURES), lambda i: (i, 0))
    param_specs = [_replicated_spec(p.shape) for p in params]

    out = pl.pallas_call(
        _mlp_kernel,
        out_shape=jax.ShapeDtypeStruct((B_pad, OUT_FEATURES), jnp.float32),
        grid_spec=pltpu.PrefetchScalarGridSpec(
            num_scalar_prefetch=0,
            grid=(n_tiles,),
            in_specs=[x_spec] + param_specs,
            out_specs=o_spec,
        ),
        compiler_params=pltpu.CompilerParams(
            dimension_semantics=("parallel",),
            vmem_limit_bytes=vmem_limit,
        ),
    )(x, *params)

    return out[:B] if B_pad != B else out


def init_params(key):
    """Deterministic init mirroring nn.Linear (uniform +-1/sqrt(fan_in)).

    Weights are cast to bf16 (HBM traffic / MXU throughput); biases stay f32.
    """
    dims = [(IN_FEATURES, HIDDEN)] + [(HIDDEN, HIDDEN)] * 5 + [(HIDDEN, OUT_FEATURES)]
    params = []
    for fan_in, fan_out in dims:
        key, kw, kb = jax.random.split(key, 3)
        bound = 1.0 / math.sqrt(fan_in)
        w = jax.random.uniform(kw, (fan_in, fan_out), jnp.float32, -bound, bound)
        b = jax.random.uniform(kb, (1, fan_out), jnp.float32, -bound, bound)
        params += [w.astype(jnp.bfloat16), b]
    return tuple(params)


def reference_forward(x, params):
    """Pure-JAX reference using the same bf16-weight / f32-accumulate numerics."""
    h = x.astype(jnp.float32)
    for layer_idx in range(7):
        w = params[2 * layer_idx]
        b = params[2 * layer_idx + 1]
        h = jnp.dot(h.astype(jnp.bfloat16), w,
                    preferred_element_type=jnp.float32) + b
        if layer_idx < 6:
            h = jax.nn.sigmoid(h)
    return h


if __name__ == "__main__":
    key = jax.random.PRNGKey(0)
    kx, kp = jax.random.split(key)

    batch = 8  # input is the flattened 20x20x2 minesweeper board -> 800 features
    x = jax.random.normal(kx, (batch, IN_FEATURES), jnp.float32)
    params = init_params(kp)

    out = jax.block_until_ready(minesweeper_forward(x, params))
    ref = reference_forward(x, params)

    assert out.shape == (batch, OUT_FEATURES)
    max_err = float(jnp.max(jnp.abs(out - ref)))
    assert jnp.allclose(out, ref, atol=2e-3, rtol=2e-3), max_err

    print("KERNEL_OK")
</pallas_src>

<mosaic_0001>
module attributes {stable_mosaic.version = 11 : i64} {
  func.func @_mlp_kernel(%arg0: i32, %arg1: memref<8x800xf32, #tpu.memory_space<vmem>>, %arg2: memref<800x400xbf16, #tpu.memory_space<vmem>>, %arg3: memref<1x400xf32, #tpu.memory_space<vmem>>, %arg4: memref<400x400xbf16, #tpu.memory_space<vmem>>, %arg5: memref<1x400xf32, #tpu.memory_space<vmem>>, %arg6: memref<400x400xbf16, #tpu.memory_space<vmem>>, %arg7: memref<1x400xf32, #tpu.memory_space<vmem>>, %arg8: memref<400x400xbf16, #tpu.memory_space<vmem>>, %arg9: memref<1x400xf32, #tpu.memory_space<vmem>>, %arg10: memref<400x400xbf16, #tpu.memory_space<vmem>>, %arg11: memref<1x400xf32, #tpu.memory_space<vmem>>, %arg12: memref<400x400xbf16, #tpu.memory_space<vmem>>, %arg13: memref<1x400xf32, #tpu.memory_space<vmem>>, %arg14: memref<400x400xbf16, #tpu.memory_space<vmem>>, %arg15: memref<1x400xf32, #tpu.memory_space<vmem>>, %arg16: memref<8x400xf32, #tpu.memory_space<vmem>>) attributes {dimension_semantics = [#tpu.dimension_semantics<parallel>], iteration_bounds = array<i64: 1>, scalar_prefetch = 0 : i64, scratch_operands = 0 : i64, tpu.core_type = #tpu.core_type<tc>, window_params = [{transform_indices = @transform_0, window_bounds = array<i64: 8, 800>}, {pipeline_mode = #tpu.pipeline_mode<synchronous>, transform_indices = @transform_1, window_bounds = array<i64: 800, 400>}, {pipeline_mode = #tpu.pipeline_mode<synchronous>, transform_indices = @transform_2, window_bounds = array<i64: 1, 400>}, {pipeline_mode = #tpu.pipeline_mode<synchronous>, transform_indices = @transform_3, window_bounds = array<i64: 400, 400>}, {pipeline_mode = #tpu.pipeline_mode<synchronous>, transform_indices = @transform_4, window_bounds = array<i64: 1, 400>}, {pipeline_mode = #tpu.pipeline_mode<synchronous>, transform_indices = @transform_5, window_bounds = array<i64: 400, 400>}, {pipeline_mode = #tpu.pipeline_mode<synchronous>, transform_indices = @transform_6, window_bounds = array<i64: 1, 400>}, {pipeline_mode = #tpu.pipeline_mode<synchronous>, transform_indices = @transform_7, window_bounds = array<i64: 400, 400>}, {pipeline_mode = #tpu.pipeline_mode<synchronous>, transform_indices = @transform_8, window_bounds = array<i64: 1, 400>}, {pipeline_mode = #tpu.pipeline_mode<synchronous>, transform_indices = @transform_9, window_bounds = array<i64: 400, 400>}, {pipeline_mode = #tpu.pipeline_mode<synchronous>, transform_indices = @transform_10, window_bounds = array<i64: 1, 400>}, {pipeline_mode = #tpu.pipeline_mode<synchronous>, transform_indices = @transform_11, window_bounds = array<i64: 400, 400>}, {pipeline_mode = #tpu.pipeline_mode<synchronous>, transform_indices = @transform_12, window_bounds = array<i64: 1, 400>}, {pipeline_mode = #tpu.pipeline_mode<synchronous>, transform_indices = @transform_13, window_bounds = array<i64: 400, 400>}, {pipeline_mode = #tpu.pipeline_mode<synchronous>, transform_indices = @transform_14, window_bounds = array<i64: 1, 400>}, {transform_indices = @transform_15, window_bounds = array<i64: 8, 400>}]} {
    %c0 = arith.constant 0 : index
    %c0_0 = arith.constant 0 : index
    %0 = vector.load %arg1[%c0, %c0_0] : memref<8x800xf32, #tpu.memory_space<vmem>>, vector<8x800xf32>
    %1 = arith.truncf %0 : vector<8x800xf32> to vector<8x800xbf16>
    %c0_1 = arith.constant 0 : index
    %c0_2 = arith.constant 0 : index
    %2 = vector.load %arg2[%c0_1, %c0_2] : memref<800x400xbf16, #tpu.memory_space<vmem>>, vector<800x400xbf16>
    %cst = arith.constant dense<0.000000e+00> : vector<8x400xf32>
    %3 = tpu.matmul %1, %2, %cst {dimension_numbers = #tpu.dot_dimension_numbers<[1], [0], [0], [1], [0, 0, 1, 1], [], []>} : vector<8x800xbf16>, vector<800x400xbf16>, vector<8x400xf32> -> vector<8x400xf32>
    %c0_3 = arith.constant 0 : index
    %c0_4 = arith.constant 0 : index
    %4 = vector.load %arg3[%c0_3, %c0_4] : memref<1x400xf32, #tpu.memory_space<vmem>>, vector<1x400xf32>
    %5 = vector.broadcast %4 : vector<1x400xf32> to vector<8x400xf32>
    %6 = arith.addf %3, %5 : vector<8x400xf32>
    %7 = arith.negf %6 : vector<8x400xf32>
    %8 = math.exp %7 : vector<8x400xf32>
    %cst_5 = arith.constant 1.000000e+00 : f32
    %9 = vector.broadcast %cst_5 : f32 to vector<8x400xf32>
    %10 = arith.addf %9, %8 : vector<8x400xf32>
    %11 = arith.divf %9, %10 : vector<8x400xf32>
    %12 = arith.truncf %11 : vector<8x400xf32> to vector<8x400xbf16>
    %c0_6 = arith.constant 0 : index
    %c0_7 = arith.constant 0 : index
    %13 = vector.load %arg4[%c0_6, %c0_7] : memref<400x400xbf16, #tpu.memory_space<vmem>>, vector<400x400xbf16>
    %cst_8 = arith.constant dense<0.000000e+00> : vector<8x400xf32>
    %14 = tpu.matmul %12, %13, %cst_8 {dimension_numbers = #tpu.dot_dimension_numbers<[1], [0], [0], [1], [0, 0, 1, 1], [], []>} : vector<8x400xbf16>, vector<400x400xbf16>, vector<8x400xf32> -> vector<8x400xf32>
    %c0_9 = arith.constant 0 : index
    %c0_10 = arith.constant 0 : index
    %15 = vector.load %arg5[%c0_9, %c0_10] : memref<1x400xf32, #tpu.memory_space<vmem>>, vector<1x400xf32>
    %16 = vector.broadcast %15 : vector<1x400xf32> to vector<8x400xf32>
    %17 = arith.addf %14, %16 : vector<8x400xf32>
    %18 = arith.negf %17 : vector<8x400xf32>
    %19 = math.exp %18 : vector<8x400xf32>
    %cst_11 = arith.constant 1.000000e+00 : f32
    %20 = vector.broadcast %cst_11 : f32 to vector<8x400xf32>
    %21 = arith.addf %20, %19 : vector<8x400xf32>
    %22 = arith.divf %20, %21 : vector<8x400xf32>
    %23 = arith.truncf %22 : vector<8x400xf32> to vector<8x400xbf16>
    %c0_12 = arith.constant 0 : index
    %c0_13 = arith.constant 0 : index
    %24 = vector.load %arg6[%c0_12, %c0_13] : memref<400x400xbf16, #tpu.memory_space<vmem>>, vector<400x400xbf16>
    %cst_14 = arith.constant dense<0.000000e+00> : vector<8x400xf32>
    %25 = tpu.matmul %23, %24, %cst_14 {dimension_numbers = #tpu.dot_dimension_numbers<[1], [0], [0], [1], [0, 0, 1, 1], [], []>} : vector<8x400xbf16>, vector<400x400xbf16>, vector<8x400xf32> -> vector<8x400xf32>
    %c0_15 = arith.constant 0 : index
    %c0_16 = arith.constant 0 : index
    %26 = vector.load %arg7[%c0_15, %c0_16] : memref<1x400xf32, #tpu.memory_space<vmem>>, vector<1x400xf32>
    %27 = vector.broadcast %26 : vector<1x400xf32> to vector<8x400xf32>
    %28 = arith.addf %25, %27 : vector<8x400xf32>
    %29 = arith.negf %28 : vector<8x400xf32>
    %30 = math.exp %29 : vector<8x400xf32>
    %cst_17 = arith.constant 1.000000e+00 : f32
    %31 = vector.broadcast %cst_17 : f32 to vector<8x400xf32>
    %32 = arith.addf %31, %30 : vector<8x400xf32>
    %33 = arith.divf %31, %32 : vector<8x400xf32>
    %34 = arith.truncf %33 : vector<8x400xf32> to vector<8x400xbf16>
    %c0_18 = arith.constant 0 : index
    %c0_19 = arith.constant 0 : index
    %35 = vector.load %arg8[%c0_18, %c0_19] : memref<400x400xbf16, #tpu.memory_space<vmem>>, vector<400x400xbf16>
    %cst_20 = arith.constant dense<0.000000e+00> : vector<8x400xf32>
    %36 = tpu.matmul %34, %35, %cst_20 {dimension_numbers = #tpu.dot_dimension_numbers<[1], [0], [0], [1], [0, 0, 1, 1], [], []>} : vector<8x400xbf16>, vector<400x400xbf16>, vector<8x400xf32> -> vector<8x400xf32>
    %c0_21 = arith.constant 0 : index
    %c0_22 = arith.constant 0 : index
    %37 = vector.load %arg9[%c0_21, %c0_22] : memref<1x400xf32, #tpu.memory_space<vmem>>, vector<1x400xf32>
    %38 = vector.broadcast %37 : vector<1x400xf32> to vector<8x400xf32>
    %39 = arith.addf %36, %38 : vector<8x400xf32>
    %40 = arith.negf %39 : vector<8x400xf32>
    %41 = math.exp %40 : vector<8x400xf32>
    %cst_23 = arith.constant 1.000000e+00 : f32
    %42 = vector.broadcast %cst_23 : f32 to vector<8x400xf32>
    %43 = arith.addf %42, %41 : vector<8x400xf32>
    %44 = arith.divf %42, %43 : vector<8x400xf32>
    %45 = arith.truncf %44 : vector<8x400xf32> to vector<8x400xbf16>
    %c0_24 = arith.constant 0 : index
    %c0_25 = arith.constant 0 : index
    %46 = vector.load %arg10[%c0_24, %c0_25] : memref<400x400xbf16, #tpu.memory_space<vmem>>, vector<400x400xbf16>
    %cst_26 = arith.constant dense<0.000000e+00> : vector<8x400xf32>
    %47 = tpu.matmul %45, %46, %cst_26 {dimension_numbers = #tpu.dot_dimension_numbers<[1], [0], [0], [1], [0, 0, 1, 1], [], []>} : vector<8x400xbf16>, vector<400x400xbf16>, vector<8x400xf32> -> vector<8x400xf32>
    %c0_27 = arith.constant 0 : index
    %c0_28 = arith.constant 0 : index
    %48 = vector.load %arg11[%c0_27, %c0_28] : memref<1x400xf32, #tpu.memory_space<vmem>>, vector<1x400xf32>
    %49 = vector.broadcast %48 : vector<1x400xf32> to vector<8x400xf32>
    %50 = arith.addf %47, %49 : vector<8x400xf32>
    %51 = arith.negf %50 : vector<8x400xf32>
    %52 = math.exp %51 : vector<8x400xf32>
    %cst_29 = arith.constant 1.000000e+00 : f32
    %53 = vector.broadcast %cst_29 : f32 to vector<8x400xf32>
    %54 = arith.addf %53, %52 : vector<8x400xf32>
    %55 = arith.divf %53, %54 : vector<8x400xf32>
    %56 = arith.truncf %55 : vector<8x400xf32> to vector<8x400xbf16>
    %c0_30 = arith.constant 0 : index
    %c0_31 = arith.constant 0 : index
    %57 = vector.load %arg12[%c0_30, %c0_31] : memref<400x400xbf16, #tpu.memory_space<vmem>>, vector<400x400xbf16>
    %cst_32 = arith.constant dense<0.000000e+00> : vector<8x400xf32>
    %58 = tpu.matmul %56, %57, %cst_32 {dimension_numbers = #tpu.dot_dimension_numbers<[1], [0], [0], [1], [0, 0, 1, 1], [], []>} : vector<8x400xbf16>, vector<400x400xbf16>, vector<8x400xf32> -> vector<8x400xf32>
    %c0_33 = arith.constant 0 : index
    %c0_34 = arith.constant 0 : index
    %59 = vector.load %arg13[%c0_33, %c0_34] : memref<1x400xf32, #tpu.memory_space<vmem>>, vector<1x400xf32>
    %60 = vector.broadcast %59 : vector<1x400xf32> to vector<8x400xf32>
    %61 = arith.addf %58, %60 : vector<8x400xf32>
    %62 = arith.negf %61 : vector<8x400xf32>
    %63 = math.exp %62 : vector<8x400xf32>
    %cst_35 = arith.constant 1.000000e+00 : f32
    %64 = vector.broadcast %cst_35 : f32 to vector<8x400xf32>
    %65 = arith.addf %64, %63 : vector<8x400xf32>
    %66 = arith.divf %64, %65 : vector<8x400xf32>
    %67 = arith.truncf %66 : vector<8x400xf32> to vector<8x400xbf16>
    %c0_36 = arith.constant 0 : index
    %c0_37 = arith.constant 0 : index
    %68 = vector.load %arg14[%c0_36, %c0_37] : memref<400x400xbf16, #tpu.memory_space<vmem>>, vector<400x400xbf16>
    %cst_38 = arith.constant dense<0.000000e+00> : vector<8x400xf32>
    %69 = tpu.matmul %67, %68, %cst_38 {dimension_numbers = #tpu.dot_dimension_numbers<[1], [0], [0], [1], [0, 0, 1, 1], [], []>} : vector<8x400xbf16>, vector<400x400xbf16>, vector<8x400xf32> -> vector<8x400xf32>
    %c0_39 = arith.constant 0 : index
    %c0_40 = arith.constant 0 : index
    %70 = vector.load %arg15[%c0_39, %c0_40] : memref<1x400xf32, #tpu.memory_space<vmem>>, vector<1x400xf32>
    %71 = vector.broadcast %70 : vector<1x400xf32> to vector<8x400xf32>
    %72 = arith.addf %69, %71 : vector<8x400xf32>
    %c0_41 = arith.constant 0 : index
    %c0_42 = arith.constant 0 : index
    %73 = vector.load %arg16[%c0_41, %c0_42] : memref<8x400xf32, #tpu.memory_space<vmem>>, vector<8x400xf32>
    tpu.vector_store %arg16[%c0_41, %c0_42], %72 {strides = array<i32>} : memref<8x400xf32, #tpu.memory_space<vmem>>, vector<8x400xf32>,
    return
  }
  func.func @transform_0(%arg0: i32) -> (i32, i32) {
    %c0_i32 = arith.constant 0 : i32
    %c0_i32_0 = arith.constant 0 : i32
    return %arg0, %c0_i32 : i32, i32
  }
  func.func @transform_1(%arg0: i32) -> (i32, i32) {
    %c0_i32 = arith.constant 0 : i32
    %c0_i32_0 = arith.constant 0 : i32
    %c0_i32_1 = arith.constant 0 : i32
    return %c0_i32, %c0_i32_0 : i32, i32
  }
  func.func @transform_2(%arg0: i32) -> (i32, i32) {
    %c0_i32 = arith.constant 0 : i32
    %c0_i32_0 = arith.constant 0 : i32
    %c0_i32_1 = arith.constant 0 : i32
    return %c0_i32, %c0_i32_0 : i32, i32
  }
  func.func @transform_3(%arg0: i32) -> (i32, i32) {
    %c0_i32 = arith.constant 0 : i32
    %c0_i32_0 = arith.constant 0 : i32
    %c0_i32_1 = arith.constant 0 : i32
    return %c0_i32, %c0_i32_0 : i32, i32
  }
  func.func @transform_4(%arg0: i32) -> (i32, i32) {
    %c0_i32 = arith.constant 0 : i32
    %c0_i32_0 = arith.constant 0 : i32
    %c0_i32_1 = arith.constant 0 : i32
    return %c0_i32, %c0_i32_0 : i32, i32
  }
  func.func @transform_5(%arg0: i32) -> (i32, i32) {
    %c0_i32 = arith.constant 0 : i32
    %c0_i32_0 = arith.constant 0 : i32
    %c0_i32_1 = arith.constant 0 : i32
    return %c0_i32, %c0_i32_0 : i32, i32
  }
  func.func @transform_6(%arg0: i32) -> (i32, i32) {
    %c0_i32 = arith.constant 0 : i32
    %c0_i32_0 = arith.constant 0 : i32
    %c0_i32_1 = arith.constant 0 : i32
    return %c0_i32, %c0_i32_0 : i32, i32
  }
  func.func @transform_7(%arg0: i32) -> (i32, i32) {
    %c0_i32 = arith.constant 0 : i32
    %c0_i32_0 = arith.constant 0 : i32
    %c0_i32_1 = arith.constant 0 : i32
    return %c0_i32, %c0_i32_0 : i32, i32
  }
  func.func @transform_8(%arg0: i32) -> (i32, i32) {
    %c0_i32 = arith.constant 0 : i32
    %c0_i32_0 = arith.constant 0 : i32
    %c0_i32_1 = arith.constant 0 : i32
    return %c0_i32, %c0_i32_0 : i32, i32
  }
  func.func @transform_9(%arg0: i32) -> (i32, i32) {
    %c0_i32 = arith.constant 0 : i32
    %c0_i32_0 = arith.constant 0 : i32
    %c0_i32_1 = arith.constant 0 : i32
    return %c0_i32, %c0_i32_0 : i32, i32
  }
  func.func @transform_10(%arg0: i32) -> (i32, i32) {
    %c0_i32 = arith.constant 0 : i32
    %c0_i32_0 = arith.constant 0 : i32
    %c0_i32_1 = arith.constant 0 : i32
    return %c0_i32, %c0_i32_0 : i32, i32
  }
  func.func @transform_11(%arg0: i32) -> (i32, i32) {
    %c0_i32 = arith.constant 0 : i32
    %c0_i32_0 = arith.constant 0 : i32
    %c0_i32_1 = arith.constant 0 : i32
    return %c0_i32, %c0_i32_0 : i32, i32
  }
  func.func @transform_12(%arg0: i32) -> (i32, i32) {
    %c0_i32 = arith.constant 0 : i32
    %c0_i32_0 = arith.constant 0 : i32
    %c0_i32_1 = arith.constant 0 : i32
    return %c0_i32, %c0_i32_0 : i32, i32
  }
  func.func @transform_13(%arg0: i32) -> (i32, i32) {
    %c0_i32 = arith.constant 0 : i32
    %c0_i32_0 = arith.constant 0 : i32
    %c0_i32_1 = arith.constant 0 : i32
    return %c0_i32, %c0_i32_0 : i32, i32
  }
  func.func @transform_14(%arg0: i32) -> (i32, i32) {
    %c0_i32 = arith.constant 0 : i32
    %c0_i32_0 = arith.constant 0 : i32
    %c0_i32_1 = arith.constant 0 : i32
    return %c0_i32, %c0_i32_0 : i32, i32
  }
  func.func @transform_15(%arg0: i32) -> (i32, i32) {
    %c0_i32 = arith.constant 0 : i32
    %c0_i32_0 = arith.constant 0 : i32
    return %arg0, %c0_i32 : i32, i32
  }
}

</mosaic_0001>

<bundles_post_ra>
// kernel: minesweeper_forward.1
= control target key start
LH: loop header
LB: loop body
LE: loop exit
PB: predicated region body
PF: predicated region fallthrough
CT: control target
= control target key end

     0   :  { %20 = vsyncpa [#allocation3], 0  ;;  %s10620_s0 = inlined_call_operand.vmem [shape: f32[8,800], index: 0, kind: input, shape index: {}]   ;;  %s10621_s1 = inlined_call_operand.vmem [shape: bf16[800,400], index: 1, kind: input, shape index: {}]   ;;  %s10622_s2 = inlined_call_operand.vmem [shape: f32[1,400], index: 2, kind: input, shape index: {}]   ;;  %s10623_s3 = inlined_call_operand.vmem [shape: bf16[400,400], index: 3, kind: input, shape index: {}]   ;;  %s10624_s4 = inlined_call_operand.vmem [shape: f32[1,400], index: 4, kind: input, shape index: {}]   ;;  %s10625_s5 = inlined_call_operand.vmem [shape: bf16[400,400], index: 5, kind: input, shape index: {}]   ;;  %s10626_s6 = inlined_call_operand.vmem [shape: f32[1,400], index: 6, kind: input, shape index: {}]   ;;  %s10627_s7 = inlined_call_operand.vmem [shape: bf16[400,400], index: 7, kind: input, shape index: {}]   ;;  %s10628_s8 = inlined_call_operand.vmem [shape: f32[1,400], index: 8, kind: input, shape index: {}]   ;;  %s10629_s9 = inlined_call_operand.hbm [shape: bf16[400,400], index: 9, kind: input, shape index: {}]   ;;  %s10630_s10 = inlined_call_operand.vmem [shape: f32[1,400], index: 10, kind: input, shape index: {}]   ;;  %s10631_s11 = inlined_call_operand.hbm [shape: bf16[400,400], index: 11, kind: input, shape index: {}]   ;;  %s10632_s12 = inlined_call_operand.vmem [shape: f32[1,400], index: 12, kind: input, shape index: {}]   ;;  %s10633_s13 = inlined_call_operand.hbm [shape: bf16[400,400], index: 13, kind: input, shape index: {}]   ;;  %s10634_s14 = inlined_call_operand.vmem [shape: f32[1,400], index: 14, kind: input, shape index: {}]   ;;  %s10635_s15 = inlined_call_operand.hbm [shape: f32[8,400], index: 15, kind: output, shape index: {}]  }
   0x1   :  { %21 = vsyncpa [#allocation6], 0 }
   0x2   :  { %22 = vsyncpa [#allocation4], 0  ;;  %s8811_s18 = smov [#allocation5]   ;;  %s8812_s20 = smov [#allocation2]  }
   0x3   :  { %s60_s19 = sshll.u32 %s8811_s18, 4  ;;  %s46_s21 = sshll.u32 %s8812_s20, 4  ;;  %s61_s19 = int_to_ptr.vmem [resolvable:$true] %s60_s19  ;;  %s47_s21 = int_to_ptr.vmem [resolvable:$true] %s46_s21 }
   0x4   :  { %s8733_s22 = scalar_lea.vmem %s61_s19, 12800  ;;  %p8738_p1 = scmp.lt.s32.totalorder %s61_s19, %s61_s19 }
   0x5   :  { %p8734_p0 = scmp.ne.s32.totalorder %s61_s19, %s8733_s22  ;;  %p8739_p2 = scmp.lt.s32.totalorder %s8733_s22, %s8733_s22 }
   0x7   :  { %p8740_p3 = por %p8739_p2, %p8738_p1 }
   0x9   :  { %p8741_p4 = pnand %p8740_p3, %p8734_p0 }
   0xb   :  { %8744 = shalt.err (!%p8741_p4)
}
   0xc   :  { %s8813_s23 = smov 256   ;;  %s8814_s24 = smov 16  }
   0xd   :  { %66 = dma.hbm_to_vmem [thread:$0]  %s10631_s11, 12800, %s61_s19, [#allocation6], %s8813_s23, %s8813_s23, %s8814_s24  }
   0xe   :  { %s8753_s27 = scalar_lea.vmem %s47_s21, 12800  ;;  %p8758_p6 = scmp.lt.s32.totalorder %s47_s21, %s47_s21 }
   0xf   :  { %p8754_p5 = scmp.ne.s32.totalorder %s47_s21, %s8753_s27  ;;  %p8759_p7 = scmp.lt.s32.totalorder %s8753_s27, %s8753_s27 }
  0x11   :  { %p8760_p8 = por %p8759_p7, %p8758_p6 }
  0x13   :  { %p8761_p9 = pnand %p8760_p8, %p8754_p5 }
  0x15   :  { %8764 = shalt.err (!%p8761_p9)
}
  0x16   :  { %52 = dma.hbm_to_vmem [thread:$0]  %s10629_s9, 12800, %s47_s21, [#allocation3], %s8813_s23, %s8813_s23, %s8814_s24  }
  0x17   :  { %s8815_s30 = smov [#allocation7]  }
  0x18   :  { %s74_s16 = sshll.u32 %s8815_s30, 4  ;;  %s75_s16 = int_to_ptr.vmem [resolvable:$true] %s74_s16 }
  0x19   :  { %s8773_s17 = scalar_lea.vmem %s75_s16, 12800  ;;  %p8778_p11 = scmp.lt.s32.totalorder %s75_s16, %s75_s16 }
  0x1a   :  { %p8774_p10 = scmp.ne.s32.totalorder %s75_s16, %s8773_s17  ;;  %p8779_p12 = scmp.lt.s32.totalorder %s8773_s17, %s8773_s17 }
  0x1c   :  { %p8780_p13 = por %p8779_p12, %p8778_p11 }
  0x1e   :  { %p8781_p0 = pnand %p8780_p13, %p8774_p10 }
  0x20   :  { %8784 = shalt.err (!%p8781_p0)
}
  0x21   :  { %80 = dma.hbm_to_vmem [thread:$0]  %s10633_s13, 12800, %s75_s16, [#allocation6], %s8813_s23, %s8813_s23, %s8814_s24  }
  0x22   :  { %8805 = dma.done.wait [#allocation3], 12800  }
  0x23   :  { %8806 = vsyncadd [#allocation3], 4294954496 }
  0x24   :  { %8807 = dma.done.wait [#allocation6], 25600  }
  0x25   :  { %8808 = vsyncadd [#allocation6], 4294941696  ;;  %v7429_v0 = vld [vmem:[%s10621_s1 + $0xe4] ss:$16 sps:$4 sm:$0xff]   ;;  %v7433_v2 = vld [vmem:[%s10621_s1 + $0xe0] ss:$16 sps:$4 sm:$0xff]  }
  0x26   :  { %v7431_v1 = vld [vmem:[%s10621_s1 + $0x2e4] ss:$16 sps:$4 sm:$0xff]   ;;  %1333 = vmatprep.subr.bf16.mxu0 %v7429_v0  ;;  %v7434_v3 = vld [vmem:[%s10621_s1 + $0x2e0] ss:$16 sps:$4 sm:$0xff]   ;;  %v94_v46 = vld [vmem:[%s10620_s0 + $0x8] sm:$0xff]  ;;  %vm1329_vm0 = vcmask 261120  }
  0x27   :  { %1374 = vmatprep.subr.bf16.mxu1 %v7431_v1  ;;  %v7435_v4 = vld [vmem:[%s10621_s1 + $0xc4] ss:$16 sps:$4 sm:$0xff]   ;;  %1334 = vmatpush1.bf16.msra.mxu0 %v7433_v2  ;;  %v7439_v6 = vld [vmem:[%s10621_s1 + $0xc0] ss:$16 sps:$4 sm:$0xff]   ;;  %v9054_v49 = vpack.c.bf16 %v94_v46, %v94_v46  ;;  %v96_v50 = vld [vmem:[%s10620_s0 + $0x18] sm:$0xff]  ;;  %vm2311_vm1 = vcmask 130048  }
  0x28   :  { %1375 = vmatpush1.bf16.msra.mxu1 %v7434_v3  ;;  %v7437_v5 = vld [vmem:[%s10621_s1 + $0x2c4] ss:$16 sps:$4 sm:$0xff]   ;;  %1335 = vmatprep.subr.bf16.mxu0 %v7435_v4  ;;  %v7440_v7 = vld [vmem:[%s10621_s1 + $0x2c0] ss:$16 sps:$4 sm:$0xff]   ;;  %v9062_v52 = vpack.c.bf16 %v96_v50, %v96_v50  ;;  %v7578_v46 = vld [vmem:[%s10621_s1 + $0x2c] ss:$16 sps:$4 sm:$0xff]  }
  0x29   :  { %1376 = vmatprep.subr.bf16.mxu1 %v7437_v5  ;;  %v7441_v8 = vld [vmem:[%s10621_s1 + $0xa4] ss:$16 sps:$4 sm:$0xff]   ;;  %v7445_v10 = vld [vmem:[%s10621_s1 + $0xa0] ss:$16 sps:$4 sm:$0xff]   ;;  %1365 = vmatprep.mubr.bf16.mxu0 %v9054_v49  ;;  %v7584_v50 = vld [vmem:[%s10621_s1 + $0xc] ss:$16 sps:$4 sm:$0xff]  }
  0x2a   :  { %v7443_v9 = vld [vmem:[%s10621_s1 + $0x2a4] ss:$16 sps:$4 sm:$0xff]   ;;  %v7446_v11 = vld [vmem:[%s10621_s1 + $0x2a0] ss:$16 sps:$4 sm:$0xff]   ;;  %1406 = vmatprep.mubr.bf16.mxu1 %v9062_v52 }
  0x2b   :  { %1336 = vmatpush1.bf16.msra.mxu0 %v7439_v6  ;;  %v7447_v12 = vld [vmem:[%s10621_s1 + $0x84] ss:$16 sps:$4 sm:$0xff]   ;;  %v7451_v14 = vld [vmem:[%s10621_s1 + $0x80] ss:$16 sps:$4 sm:$0xff]  }
  0x2c   :  { %1377 = vmatpush1.bf16.msra.mxu1 %v7440_v7  ;;  %1337 = vmatprep.subr.bf16.mxu0 %v7441_v8  ;;  %v7449_v13 = vld [vmem:[%s10621_s1 + $0x284] ss:$16 sps:$4 sm:$0xff]   ;;  %v7452_v15 = vld [vmem:[%s10621_s1 + $0x280] ss:$16 sps:$4 sm:$0xff]  }
  0x2d   :  { %1378 = vmatprep.subr.bf16.mxu1 %v7443_v9  ;;  %v7453_v16 = vld [vmem:[%s10621_s1 + $0x64] ss:$16 sps:$4 sm:$0xff]   ;;  %v7457_v18 = vld [vmem:[%s10621_s1 + $0x60] ss:$16 sps:$4 sm:$0xff]  }
  0x2e   :  { %v7455_v17 = vld [vmem:[%s10621_s1 + $0x264] ss:$16 sps:$4 sm:$0xff]   ;;  %v7458_v19 = vld [vmem:[%s10621_s1 + $0x260] ss:$16 sps:$4 sm:$0xff]  }
  0x2f   :  { %1338 = vmatpush1.bf16.msra.mxu0 %v7445_v10  ;;  %v7459_v20 = vld [vmem:[%s10621_s1 + $0x44] ss:$16 sps:$4 sm:$0xff]   ;;  %v7463_v22 = vld [vmem:[%s10621_s1 + $0x40] ss:$16 sps:$4 sm:$0xff]  }
  0x30   :  { %1379 = vmatpush1.bf16.msra.mxu1 %v7446_v11  ;;  %1339 = vmatprep.subr.bf16.mxu0 %v7447_v12  ;;  %v7461_v21 = vld [vmem:[%s10621_s1 + $0x244] ss:$16 sps:$4 sm:$0xff]   ;;  %v7464_v23 = vld [vmem:[%s10621_s1 + $0x240] ss:$16 sps:$4 sm:$0xff]  }
  0x31   :  { %1380 = vmatprep.subr.bf16.mxu1 %v7449_v13  ;;  %v7465_v24 = vld [vmem:[%s10621_s1 + $0x24] ss:$16 sps:$4 sm:$0xff]   ;;  %v7469_v26 = vld [vmem:[%s10621_s1 + $0x20] ss:$16 sps:$4 sm:$0xff]  }
  0x32   :  { %v7467_v25 = vld [vmem:[%s10621_s1 + $0x224] ss:$16 sps:$4 sm:$0xff]   ;;  %v7470_v27 = vld [vmem:[%s10621_s1 + $0x220] ss:$16 sps:$4 sm:$0xff]  }
  0x33   :  { %1340 = vmatpush1.bf16.msra.mxu0 %v7451_v14  ;;  %v7471_v28 = vld [vmem:[%s10621_s1 + $0x4] ss:$16 sps:$4 sm:$0xff]   ;;  %v7475_v30 = vld [vmem:[%s10621_s1] ss:$16 sps:$4 sm:$0xff]  }
  0x34   :  { %1381 = vmatpush1.bf16.msra.mxu1 %v7452_v15  ;;  %1341 = vmatprep.subr.bf16.mxu0 %v7453_v16  ;;  %v7473_v29 = vld [vmem:[%s10621_s1 + $0x204] ss:$16 sps:$4 sm:$0xff]   ;;  %v7476_v31 = vld [vmem:[%s10621_s1 + $0x200] ss:$16 sps:$4 sm:$0xff]  }
  0x35   :  { %1382 = vmatprep.subr.bf16.mxu1 %v7455_v17  ;;  %v7477_v32 = vld [vmem:[%s10621_s1 + $0x1e4] ss:$16 sps:$4 sm:$0xff]   ;;  %v7481_v34 = vld [vmem:[%s10621_s1 + $0x1e0] ss:$16 sps:$4 sm:$0xff]  }
  0x36   :  { %v7479_v33 = vld [vmem:[%s10621_s1 + $0x3e4] ss:$16 sps:$4 sm:$0xff]   ;;  %v7482_v35 = vld [vmem:[%s10621_s1 + $0x3e0] ss:$16 sps:$4 sm:$0xff]  }
  0x37   :  { %1342 = vmatpush1.bf16.msra.mxu0 %v7457_v18  ;;  %v7483_v36 = vld [vmem:[%s10621_s1 + $0x1c4] ss:$16 sps:$4 sm:$0xff]   ;;  %v7487_v38 = vld [vmem:[%s10621_s1 + $0x1c0] ss:$16 sps:$4 sm:$0xff]   ;;  %v7542_v18 = vld [vmem:[%s10621_s1 + $0xec] ss:$16 sps:$4 sm:$0xff]  }
  0x38   :  { %1383 = vmatpush1.bf16.msra.mxu1 %v7458_v19  ;;  %1343 = vmatprep.subr.bf16.mxu0 %v7459_v20  ;;  %v7485_v37 = vld [vmem:[%s10621_s1 + $0x3c4] ss:$16 sps:$4 sm:$0xff]   ;;  %v7488_v39 = vld [vmem:[%s10621_s1 + $0x3c0] ss:$16 sps:$4 sm:$0xff]   ;;  %v8816_v19 = vmov 0  }
  0x39   :  { %1384 = vmatprep.subr.bf16.mxu1 %v7461_v21  ;;  %v7489_v40 = vld [vmem:[%s10621_s1 + $0x1a4] ss:$16 sps:$4 sm:$0xff]   ;;  %v7493_v42 = vld [vmem:[%s10621_s1 + $0x1a0] ss:$16 sps:$4 sm:$0xff]  }
  0x3a   :  { %v7491_v41 = vld [vmem:[%s10621_s1 + $0x3a4] ss:$16 sps:$4 sm:$0xff]   ;;  %v7494_v43 = vld [vmem:[%s10621_s1 + $0x3a0] ss:$16 sps:$4 sm:$0xff]  }
  0x3b   :  { %1344 = vmatpush1.bf16.msra.mxu0 %v7463_v22  ;;  %v7495_v44 = vld [vmem:[%s10621_s1 + $0x184] ss:$16 sps:$4 sm:$0xff]   ;;  %v7499_v47 = vld [vmem:[%s10621_s1 + $0x180] ss:$16 sps:$4 sm:$0xff]   ;;  %v7540_v22 = vld [vmem:[%s10621_s1 + $0xe8] ss:$16 sps:$4 sm:$0xff]  }
  0x3c   :  { %1385 = vmatpush1.bf16.msra.mxu1 %v7464_v23  ;;  %1345 = vmatprep.subr.bf16.mxu0 %v7465_v24  ;;  %v7497_v45 = vld [vmem:[%s10621_s1 + $0x384] ss:$16 sps:$4 sm:$0xff]   ;;  %v7500_v48 = vld [vmem:[%s10621_s1 + $0x380] ss:$16 sps:$4 sm:$0xff]   ;;  %v7548_v24 = vld [vmem:[%s10621_s1 + $0xcc] ss:$16 sps:$4 sm:$0xff]  }
  0x3d   :  { %1386 = vmatprep.subr.bf16.mxu1 %v7467_v25  ;;  %v7501_v51 = vld [vmem:[%s10621_s1 + $0x164] ss:$16 sps:$4 sm:$0xff]   ;;  %v7505_v54 = vld [vmem:[%s10621_s1 + $0x160] ss:$16 sps:$4 sm:$0xff]  }
  0x3e   :  { %v7503_v53 = vld [vmem:[%s10621_s1 + $0x364] ss:$16 sps:$4 sm:$0xff]   ;;  %v7506_v55 = vld [vmem:[%s10621_s1 + $0x360] ss:$16 sps:$4 sm:$0xff]  }
  0x3f   :  { %1346 = vmatpush1.bf16.msra.mxu0 %v7469_v26  ;;  %v7507_v56 = vld [vmem:[%s10621_s1 + $0x144] ss:$16 sps:$4 sm:$0xff]   ;;  %v7511_v58 = vld [vmem:[%s10621_s1 + $0x140] ss:$16 sps:$4 sm:$0xff]   ;;  %v7546_v26 = vld [vmem:[%s10621_s1 + $0xc8] ss:$16 sps:$4 sm:$0xff]  }
  0x40   :  { %1387 = vmatpush1.bf16.msra.mxu1 %v7470_v27  ;;  %1347 = vmatprep.subr.bf16.mxu0 %v7471_v28  ;;  %v7509_v57 = vld [vmem:[%s10621_s1 + $0x344] ss:$16 sps:$4 sm:$0xff]   ;;  %v7512_v59 = vld [vmem:[%s10621_s1 + $0x340] ss:$16 sps:$4 sm:$0xff]   ;;  %v7554_v28 = vld [vmem:[%s10621_s1 + $0xac] ss:$16 sps:$4 sm:$0xff]  }
  0x41   :  { %1388 = vmatprep.subr.bf16.mxu1 %v7473_v29  ;;  %v7513_v60 = vld [vmem:[%s10621_s1 + $0x124] ss:$16 sps:$4 sm:$0xff]   ;;  %v7517_v62 = vld [vmem:[%s10621_s1 + $0x120] ss:$16 sps:$4 sm:$0xff]  }
  0x42   :  { %v7515_v61 = vld [vmem:[%s10621_s1 + $0x324] ss:$16 sps:$4 sm:$0xff]   ;;  %v7518_v63 = vld [vmem:[%s10621_s1 + $0x320] ss:$16 sps:$4 sm:$0xff]  }
  0x43   :  { %1348 = vmatpush1.bf16.msra.mxu0 %v7475_v30  ;;  %v7519_v0 = vld [vmem:[%s10621_s1 + $0x104] ss:$16 sps:$4 sm:$0xff]   ;;  %v7523_v2 = vld [vmem:[%s10621_s1 + $0x100] ss:$16 sps:$4 sm:$0xff]   ;;  %v7552_v30 = vld [vmem:[%s10621_s1 + $0xa8] ss:$16 sps:$4 sm:$0xff]  }
  0x44   :  { %1389 = vmatpush1.bf16.msra.mxu1 %v7476_v31  ;;  %1349 = vmatprep.subr.bf16.mxu0 %v7477_v32  ;;  %v7521_v1 = vld [vmem:[%s10621_s1 + $0x304] ss:$16 sps:$4 sm:$0xff]   ;;  %v7524_v3 = vld [vmem:[%s10621_s1 + $0x300] ss:$16 sps:$4 sm:$0xff]   ;;  %v7560_v32 = vld [vmem:[%s10621_s1 + $0x8c] ss:$16 sps:$4 sm:$0xff]  }
  0x45   :  { %1390 = vmatprep.subr.bf16.mxu1 %v7479_v33  ;;  %v93_v4 = vld [vmem:[%s10620_s0] sm:$0xff]  ;;  %v95_v5 = vld [vmem:[%s10620_s0 + $0x10] sm:$0xff] }
  0x46   :  { %v7527_v6 = vld [vmem:[%s10621_s1 + $0x4e4] ss:$16 sps:$4 sm:$0xff]   ;;  %v9123_v8 = vpack.c.bf16 %v93_v4, %v93_v4  ;;  %v9125_v9 = vpack.c.bf16 %v95_v5, %v95_v5  ;;  %v7525_v10 = vld [vmem:[%s10621_s1 + $0x4e0] ss:$16 sps:$4 sm:$0xff]   ;;  %v7606_v5 = vld [vmem:[%s10621_s1 + $0x188] ss:$16 sps:$4 sm:$0xff]  }
  0x47   :  { %1350 = vmatpush2.bf16.msra.mxu0 %v7481_v34  ;;  %v7530_v7 = vld [vmem:[%s10621_s1 + $0x624] ss:$16 sps:$4 sm:$0xff]   ;;  %v7528_v11 = vld [vmem:[%s10621_s1 + $0x620] ss:$16 sps:$4 sm:$0xff]   ;;  %v7558_v34 = vld [vmem:[%s10621_s1 + $0x88] ss:$16 sps:$4 sm:$0xff]  }
  0x48   :  { %1391 = vmatpush2.bf16.msra.mxu1 %v7482_v35  ;;  %1351 = vmatprep.subr.bf16.mxu0 %v7483_v36  ;;  %v7533_v12 = vld [vmem:[%s10621_s1 + $0x4c4] ss:$16 sps:$4 sm:$0xff]   ;;  %v7531_v14 = vld [vmem:[%s10621_s1 + $0x4c0] ss:$16 sps:$4 sm:$0xff]   ;;  %v7566_v36 = vld [vmem:[%s10621_s1 + $0x6c] ss:$16 sps:$4 sm:$0xff]  }
  0x49   :  { %1392 = vmatprep.subr.bf16.mxu1 %v7485_v37  ;;  %v7536_v13 = vld [vmem:[%s10621_s1 + $0x604] ss:$16 sps:$4 sm:$0xff]   ;;  %v7534_v15 = vld [vmem:[%s10621_s1 + $0x600] ss:$16 sps:$4 sm:$0xff]  }
  0x4a   :  { %v99_v16 = vld [vmem:[%s10620_s0 + $0x30] sm:$0xff] }
  0x4b   :  { %1352 = vmatpush2.bf16.msra.mxu0 %v7487_v38  ;;  %v7539_v17 = vld [vmem:[%s10621_s1 + $0x4a4] ss:$16 sps:$4 sm:$0xff]   ;;  %v7537_v20 = vld [vmem:[%s10621_s1 + $0x4a0] ss:$16 sps:$4 sm:$0xff]   ;;  %v9160_v21 = vpack.c.bf16 %v99_v16, %v99_v16  ;;  %v98_v38 = vld [vmem:[%s10620_s0 + $0x28] sm:$0xff] }
  0x4c   :  { %1393 = vmatpush2.bf16.msra.mxu1 %v7488_v39  ;;  %1353 = vmatprep.subr.bf16.mxu0 %v7489_v40  ;;  %v7545_v23 = vld [vmem:[%s10621_s1 + $0x484] ss:$16 sps:$4 sm:$0xff]   ;;  %v7543_v25 = vld [vmem:[%s10621_s1 + $0x480] ss:$16 sps:$4 sm:$0xff]   ;;  %v7564_v39 = vld [vmem:[%s10621_s1 + $0x68] ss:$16 sps:$4 sm:$0xff]  }
  0x4d   :  { %1394 = vmatprep.subr.bf16.mxu1 %v7491_v41  ;;  %v7551_v27 = vld [vmem:[%s10621_s1 + $0x464] ss:$16 sps:$4 sm:$0xff]   ;;  %v7549_v29 = vld [vmem:[%s10621_s1 + $0x460] ss:$16 sps:$4 sm:$0xff]   ;;  %v9222_v41 = vpack.c.bf16 %v98_v38, %v98_v38  ;;  %v7653_v38 = vld [vmem:[%s10621_s1 + $0x24c] ss:$16 sps:$4 sm:$0xff]  }
  0x4e   :  { %v7557_v31 = vld [vmem:[%s10621_s1 + $0x444] ss:$16 sps:$4 sm:$0xff]   ;;  %v7555_v33 = vld [vmem:[%s10621_s1 + $0x440] ss:$16 sps:$4 sm:$0xff]  }
  0x4f   :  { %1354 = vmatpush2.bf16.msra.mxu0 %v7493_v42  ;;  %v7563_v35 = vld [vmem:[%s10621_s1 + $0x424] ss:$16 sps:$4 sm:$0xff]   ;;  %v7561_v37 = vld [vmem:[%s10621_s1 + $0x420] ss:$16 sps:$4 sm:$0xff]   ;;  %v7572_v42 = vld [vmem:[%s10621_s1 + $0x4c] ss:$16 sps:$4 sm:$0xff]  }
  0x50   :  { %1395 = vmatpush2.bf16.msra.mxu1 %v7494_v43  ;;  %1355 = vmatprep.subr.bf16.mxu0 %v7495_v44  ;;  %v7569_v40 = vld [vmem:[%s10621_s1 + $0x404] ss:$16 sps:$4 sm:$0xff]   ;;  %v7567_v43 = vld [vmem:[%s10621_s1 + $0x400] ss:$16 sps:$4 sm:$0xff]   ;;  %v7570_v44 = vld [vmem:[%s10621_s1 + $0x48] ss:$16 sps:$4 sm:$0xff]  }
  0x51   :  { %1396 = vmatprep.subr.bf16.mxu1 %v7497_v45  ;;  %v7575_v45 = vld [vmem:[%s10621_s1 + $0x5e4] ss:$16 sps:$4 sm:$0xff]   ;;  %v7603_v4 = vld [vmem:[%s10621_s1 + $0x540] ss:$16 sps:$4 sm:$0xff]  }
  0x52   :  { %v97_v16 = vld [vmem:[%s10620_s0 + $0x20] sm:$0xff] }
  0x53   :  { %1356 = vmatpush2.bf16.msra.mxu0 %v7499_v47  ;;  %v7573_v47 = vld [vmem:[%s10621_s1 + $0x5e0] ss:$16 sps:$4 sm:$0xff]  }
  0x54   :  { %1397 = vmatpush2.bf16.msra.mxu1 %v7500_v48  ;;  %1357 = vmatprep.subr.bf16.mxu0 %v7501_v51  ;;  %v7576_v48 = vld [vmem:[%s10621_s1 + $0x28] ss:$16 sps:$4 sm:$0xff]   ;;  %v7579_v51 = vld [vmem:[%s10621_s1 + $0x5c0] ss:$16 sps:$4 sm:$0xff]  }
  0x55   :  { %1398 = vmatprep.subr.bf16.mxu1 %v7503_v53  ;;  %v7582_v53 = vld [vmem:[%s10621_s1 + $0x8] ss:$16 sps:$4 sm:$0xff]  }
  0x57   :  { %1358 = vmatpush2.bf16.msra.mxu0 %v7505_v54  ;;  %v7587_v54 = vld [vmem:[%s10621_s1 + $0x5a4] ss:$16 sps:$4 sm:$0xff]  }
  0x58   :  { %1399 = vmatpush2.bf16.msra.mxu1 %v7506_v55  ;;  %1359 = vmatprep.subr.bf16.mxu0 %v7507_v56  ;;  %v7590_v55 = vld [vmem:[%s10621_s1 + $0x1ec] ss:$16 sps:$4 sm:$0xff]   ;;  %v7585_v56 = vld [vmem:[%s10621_s1 + $0x5a0] ss:$16 sps:$4 sm:$0xff]  }
  0x59   :  { %1400 = vmatprep.subr.bf16.mxu1 %v7509_v57  ;;  %v7588_v57 = vld [vmem:[%s10621_s1 + $0x1e8] ss:$16 sps:$4 sm:$0xff]  }
  0x5b   :  { %1360 = vmatpush2.bf16.msra.mxu0 %v7511_v58  ;;  %v7593_v58 = vld [vmem:[%s10621_s1 + $0x584] ss:$16 sps:$4 sm:$0xff]  }
  0x5c   :  { %1401 = vmatpush2.bf16.msra.mxu1 %v7512_v59  ;;  %1361 = vmatprep.subr.bf16.mxu0 %v7513_v60  ;;  %v7596_v59 = vld [vmem:[%s10621_s1 + $0x1cc] ss:$16 sps:$4 sm:$0xff]   ;;  %v7591_v60 = vld [vmem:[%s10621_s1 + $0x580] ss:$16 sps:$4 sm:$0xff]  }
  0x5d   :  { %1402 = vmatprep.subr.bf16.mxu1 %v7515_v61  ;;  %v7594_v61 = vld [vmem:[%s10621_s1 + $0x1c8] ss:$16 sps:$4 sm:$0xff]  }
  0x5f   :  { %1362 = vmatpush2.bf16.msra.mxu0 %v7517_v62  ;;  %v7599_v62 = vld [vmem:[%s10621_s1 + $0x564] ss:$16 sps:$4 sm:$0xff]  }
  0x60   :  { %1403 = vmatpush2.bf16.msra.mxu1 %v7518_v63  ;;  %1363 = vmatprep.subr.bf16.mxu0 %v7519_v0  ;;  %v7602_v63 = vld [vmem:[%s10621_s1 + $0x1ac] ss:$16 sps:$4 sm:$0xff]   ;;  %v7597_v0 = vld [vmem:[%s10621_s1 + $0x560] ss:$16 sps:$4 sm:$0xff]  }
  0x61   :  { %1404 = vmatprep.subr.bf16.mxu1 %v7521_v1  ;;  %v7600_v1 = vld [vmem:[%s10621_s1 + $0x1a8] ss:$16 sps:$4 sm:$0xff]  }
  0x63   :  { %1364 = vmatpush2.bf16.msra.mxu0 %v7523_v2  ;;  %v7605_v2 = vld [vmem:[%s10621_s1 + $0x544] ss:$16 sps:$4 sm:$0xff]  }
  0x64   :  { %1405 = vmatpush2.bf16.msra.mxu1 %v7524_v3  ;;  %1415 = vmatprep.subr.bf16.mxu0 %v7527_v6  ;;  %v7608_v3 = vld [vmem:[%s10621_s1 + $0x18c] ss:$16 sps:$4 sm:$0xff]   ;;  %v7611_v6 = vld [vmem:[%s10621_s1 + $0x524] ss:$16 sps:$4 sm:$0xff]  }
  0x65   :  { %1468 = vmatprep.subr.bf16.mxu1 %v7530_v7  ;;  %v7614_v7 = vld [vmem:[%s10621_s1 + $0x16c] ss:$16 sps:$4 sm:$0xff]  }
  0x66   :  { %1366 = vmatmul.mubr.bf16.vlgmr.msra.gmra.mxu0 %v9123_v8 }
  0x67   :  { %1407 = vmatmul.mubr.bf16.vlgmr.msra.gmra.mxu1 %v9125_v9  ;;  %1416 = vmatpush1.bf16.msra.mxu0 %v7525_v10  ;;  %v7609_v10 = vld [vmem:[%s10621_s1 + $0x520] ss:$16 sps:$4 sm:$0xff]  }
  0x68   :  { %1469 = vmatpush1.bf16.msra.mxu1 %v7528_v11  ;;  %1417 = vmatprep.subr.bf16.mxu0 %v7533_v12  ;;  %v7612_v11 = vld [vmem:[%s10621_s1 + $0x168] ss:$16 sps:$4 sm:$0xff]   ;;  %v7617_v12 = vld [vmem:[%s10621_s1 + $0x504] ss:$16 sps:$4 sm:$0xff]  }
  0x69   :  { %1470 = vmatprep.subr.bf16.mxu1 %v7536_v13  ;;  %1488 = vmatprep.mubr.bf16.mxu1 %v8816_v19  ;;  %v7620_v13 = vld [vmem:[%s10621_s1 + $0x14c] ss:$16 sps:$4 sm:$0xff]  }
  0x6a   :  { %1447 = vmatprep.mubr.bf16.mxu0 %v9222_v41 }
  0x6b   :  { %1418 = vmatpush1.bf16.msra.mxu0 %v7531_v14  ;;  %v7615_v14 = vld [vmem:[%s10621_s1 + $0x500] ss:$16 sps:$4 sm:$0xff]  }
  0x6c   :  { %1471 = vmatpush1.bf16.msra.mxu1 %v7534_v15  ;;  %1419 = vmatprep.subr.bf16.mxu0 %v7539_v17  ;;  %v7618_v15 = vld [vmem:[%s10621_s1 + $0x148] ss:$16 sps:$4 sm:$0xff]   ;;  %v7623_v17 = vld [vmem:[%s10621_s1 + $0x12c] ss:$16 sps:$4 sm:$0xff]  }
  0x6d   :  { %1497 = vmatprep.subr.bf16.mxu1 %v7542_v18  ;;  %v7626_v18 = vld [vmem:[%s10621_s1 + $0x2ec] ss:$16 sps:$4 sm:$0xff]  }
  0x6f   :  { %6784 = vmatmul.mubr.msk.bf16.vlgmr.msra.gmra.mxu1 %vm1329_vm0, %v9160_v21  ;;  %1420 = vmatpush1.bf16.msra.mxu0 %v7537_v20  ;;  %v9339_v20 = vpack.c.bf16 %v97_v16, %v97_v16  ;;  %v7708_v16 = vld [vmem:[%s10621_s1 + $0x568] ss:$16 sps:$4 sm:$0xff]  }
  0x70   :  { %1498 = vmatpush1.bf16.msra.mxu1 %v7540_v22  ;;  %1421 = vmatprep.subr.bf16.mxu0 %v7545_v23  ;;  %v7621_v22 = vld [vmem:[%s10621_s1 + $0x128] ss:$16 sps:$4 sm:$0xff]  }
  0x71   :  { %1499 = vmatprep.subr.bf16.mxu1 %v7548_v24  ;;  %1529 = vmatprep.mubr.bf16.mxu1 %v9054_v49  ;;  %v7581_v49 = vld [vmem:[%s10621_s1 + $0x5c4] ss:$16 sps:$4 sm:$0xff]   ;;  %v7624_v23 = vld [vmem:[%s10621_s1 + $0x2e8] ss:$16 sps:$4 sm:$0xff]   ;;  %v7629_v24 = vld [vmem:[%s10621_s1 + $0x10c] ss:$16 sps:$4 sm:$0xff]  }
  0x73   :  { %1422 = vmatpush1.bf16.msra.mxu0 %v7543_v25  ;;  %v7632_v25 = vld [vmem:[%s10621_s1 + $0x2cc] ss:$16 sps:$4 sm:$0xff]  }
  0x74   :  { %1500 = vmatpush1.bf16.msra.mxu1 %v7546_v26  ;;  %1423 = vmatprep.subr.bf16.mxu0 %v7551_v27  ;;  %v7627_v26 = vld [vmem:[%s10621_s1 + $0x108] ss:$16 sps:$4 sm:$0xff]  }
  0x75   :  { %1501 = vmatprep.subr.bf16.mxu1 %v7554_v28  ;;  %v7630_v27 = vld [vmem:[%s10621_s1 + $0x2c8] ss:$16 sps:$4 sm:$0xff]   ;;  %v7635_v28 = vld [vmem:[%s10621_s1 + $0x2ac] ss:$16 sps:$4 sm:$0xff]  }
  0x77   :  { %1424 = vmatpush1.bf16.msra.mxu0 %v7549_v29  ;;  %v7638_v29 = vld [vmem:[%s10621_s1 + $0x4ec] ss:$16 sps:$4 sm:$0xff]  }
  0x78   :  { %1502 = vmatpush1.bf16.msra.mxu1 %v7552_v30  ;;  %1425 = vmatprep.subr.bf16.mxu0 %v7557_v31  ;;  %v7633_v30 = vld [vmem:[%s10621_s1 + $0x2a8] ss:$16 sps:$4 sm:$0xff]  }
  0x79   :  { %1503 = vmatprep.subr.bf16.mxu1 %v7560_v32  ;;  %v7636_v31 = vld [vmem:[%s10621_s1 + $0x4e8] ss:$16 sps:$4 sm:$0xff]   ;;  %v7641_v32 = vld [vmem:[%s10621_s1 + $0x28c] ss:$16 sps:$4 sm:$0xff]  }
  0x7b   :  { %1426 = vmatpush1.bf16.msra.mxu0 %v7555_v33  ;;  %v7644_v33 = vld [vmem:[%s10621_s1 + $0x4cc] ss:$16 sps:$4 sm:$0xff]  }
  0x7c   :  { %1504 = vmatpush1.bf16.msra.mxu1 %v7558_v34  ;;  %1427 = vmatprep.subr.bf16.mxu0 %v7563_v35  ;;  %v7642_v34 = vld [vmem:[%s10621_s1 + $0x4c8] ss:$16 sps:$4 sm:$0xff]   ;;  %v7647_v35 = vld [vmem:[%s10621_s1 + $0x26c] ss:$16 sps:$4 sm:$0xff]  }
  0x7d   :  { %1505 = vmatprep.subr.bf16.mxu1 %v7566_v36  ;;  %v7650_v36 = vld [vmem:[%s10621_s1 + $0x4ac] ss:$16 sps:$4 sm:$0xff]  }
  0x7f   :  { %1428 = vmatpush1.bf16.msra.mxu0 %v7561_v37  ;;  %v7645_v37 = vld [vmem:[%s10621_s1 + $0x268] ss:$16 sps:$4 sm:$0xff]  }
  0x80   :  { %1506 = vmatpush1.bf16.msra.mxu1 %v7564_v39  ;;  %1429 = vmatprep.subr.bf16.mxu0 %v7569_v40  ;;  %v7656_v39 = vld [vmem:[%s10621_s1 + $0x48c] ss:$16 sps:$4 sm:$0xff]   ;;  %v7651_v40 = vld [vmem:[%s10621_s1 + $0x248] ss:$16 sps:$4 sm:$0xff]  }
  0x81   :  { %1507 = vmatprep.subr.bf16.mxu1 %v7572_v42  ;;  %v7659_v42 = vld [vmem:[%s10621_s1 + $0x22c] ss:$16 sps:$4 sm:$0xff]  }
  0x83   :  { %1430 = vmatpush1.bf16.msra.mxu0 %v7567_v43  ;;  %v7662_v43 = vld [vmem:[%s10621_s1 + $0x46c] ss:$16 sps:$4 sm:$0xff]  }
  0x84   :  { %1508 = vmatpush1.bf16.msra.mxu1 %v7570_v44  ;;  %1431 = vmatprep.subr.bf16.mxu0 %v7575_v45  ;;  %v7657_v44 = vld [vmem:[%s10621_s1 + $0x228] ss:$16 sps:$4 sm:$0xff]  }
  0x85   :  { %1509 = vmatprep.subr.bf16.mxu1 %v7578_v46  ;;  %v7660_v45 = vld [vmem:[%s10621_s1 + $0x468] ss:$16 sps:$4 sm:$0xff]   ;;  %v7665_v46 = vld [vmem:[%s10621_s1 + $0x20c] ss:$16 sps:$4 sm:$0xff]  }
  0x87   :  { %1432 = vmatpush2.bf16.msra.mxu0 %v7573_v47  ;;  %v7668_v47 = vld [vmem:[%s10621_s1 + $0x44c] ss:$16 sps:$4 sm:$0xff]  }
  0x88   :  { %1510 = vmatpush1.bf16.msra.mxu1 %v7576_v48  ;;  %1433 = vmatprep.subr.bf16.mxu0 %v7581_v49  ;;  %v7663_v48 = vld [vmem:[%s10621_s1 + $0x208] ss:$16 sps:$4 sm:$0xff]  }
  0x89   :  { %1511 = vmatprep.subr.bf16.mxu1 %v7584_v50  ;;  %v7666_v49 = vld [vmem:[%s10621_s1 + $0x448] ss:$16 sps:$4 sm:$0xff]   ;;  %v7671_v50 = vld [vmem:[%s10621_s1 + $0x3ec] ss:$16 sps:$4 sm:$0xff]  }
  0x8b   :  { %1434 = vmatpush2.bf16.msra.mxu0 %v7579_v51  ;;  %v7674_v51 = vld [vmem:[%s10621_s1 + $0x42c] ss:$16 sps:$4 sm:$0xff]  }
  0x8c   :  { %1512 = vmatpush1.bf16.msra.mxu1 %v7582_v53  ;;  %1435 = vmatprep.subr.bf16.mxu0 %v7587_v54  ;;  %v7669_v53 = vld [vmem:[%s10621_s1 + $0x3e8] ss:$16 sps:$4 sm:$0xff]  }
  0x8d   :  { %1513 = vmatprep.subr.bf16.mxu1 %v7590_v55  ;;  %v7672_v54 = vld [vmem:[%s10621_s1 + $0x428] ss:$16 sps:$4 sm:$0xff]   ;;  %v7677_v55 = vld [vmem:[%s10621_s1 + $0x3cc] ss:$16 sps:$4 sm:$0xff]  }
  0x8f   :  { %1436 = vmatpush2.bf16.msra.mxu0 %v7585_v56  ;;  %v7680_v56 = vld [vmem:[%s10621_s1 + $0x40c] ss:$16 sps:$4 sm:$0xff]  }
  0x90   :  { %1514 = vmatpush2.bf16.msra.mxu1 %v7588_v57  ;;  %1437 = vmatprep.subr.bf16.mxu0 %v7593_v58  ;;  %v7675_v57 = vld [vmem:[%s10621_s1 + $0x3c8] ss:$16 sps:$4 sm:$0xff]  }
  0x91   :  { %1515 = vmatprep.subr.bf16.mxu1 %v7596_v59  ;;  %v7678_v58 = vld [vmem:[%s10621_s1 + $0x408] ss:$16 sps:$4 sm:$0xff]   ;;  %v7683_v59 = vld [vmem:[%s10621_s1 + $0x3ac] ss:$16 sps:$4 sm:$0xff]  }
  0x93   :  { %1438 = vmatpush2.bf16.msra.mxu0 %v7591_v60  ;;  %v7686_v60 = vld [vmem:[%s10621_s1 + $0x5ec] ss:$16 sps:$4 sm:$0xff]  }
  0x94   :  { %1516 = vmatpush2.bf16.msra.mxu1 %v7594_v61  ;;  %1439 = vmatprep.subr.bf16.mxu0 %v7599_v62  ;;  %v7681_v61 = vld [vmem:[%s10621_s1 + $0x3a8] ss:$16 sps:$4 sm:$0xff]  }
  0x95   :  { %1517 = vmatprep.subr.bf16.mxu1 %v7602_v63  ;;  %v7684_v62 = vld [vmem:[%s10621_s1 + $0x5e8] ss:$16 sps:$4 sm:$0xff]   ;;  %v7689_v63 = vld [vmem:[%s10621_s1 + $0x38c] ss:$16 sps:$4 sm:$0xff]  }
  0x97   :  { %1440 = vmatpush2.bf16.msra.mxu0 %v7597_v0  ;;  %v7692_v0 = vld [vmem:[%s10621_s1 + $0x5cc] ss:$16 sps:$4 sm:$0xff]  }
  0x98   :  { %1518 = vmatpush2.bf16.msra.mxu1 %v7600_v1  ;;  %1441 = vmatprep.subr.bf16.mxu0 %v7605_v2  ;;  %v7687_v1 = vld [vmem:[%s10621_s1 + $0x388] ss:$16 sps:$4 sm:$0xff]  }
  0x99   :  { %1519 = vmatprep.subr.bf16.mxu1 %v7608_v3  ;;  %v7690_v2 = vld [vmem:[%s10621_s1 + $0x5c8] ss:$16 sps:$4 sm:$0xff]   ;;  %v7695_v3 = vld [vmem:[%s10621_s1 + $0x36c] ss:$16 sps:$4 sm:$0xff]  }
  0x9b   :  { %1442 = vmatpush2.bf16.msra.mxu0 %v7603_v4  ;;  %v7698_v4 = vld [vmem:[%s10621_s1 + $0x5ac] ss:$16 sps:$4 sm:$0xff]  }
  0x9c   :  { %1520 = vmatpush2.bf16.msra.mxu1 %v7606_v5  ;;  %1443 = vmatprep.subr.bf16.mxu0 %v7611_v6  ;;  %v7693_v5 = vld [vmem:[%s10621_s1 + $0x368] ss:$16 sps:$4 sm:$0xff]  }
  0x9d   :  { %1521 = vmatprep.subr.bf16.mxu1 %v7614_v7  ;;  %v7696_v6 = vld [vmem:[%s10621_s1 + $0x5a8] ss:$16 sps:$4 sm:$0xff]   ;;  %v7701_v7 = vld [vmem:[%s10621_s1 + $0x34c] ss:$16 sps:$4 sm:$0xff]  }
  0x9f   :  { %1444 = vmatpush2.bf16.msra.mxu0 %v7609_v10  ;;  %v7704_v10 = vld [vmem:[%s10621_s1 + $0x58c] ss:$16 sps:$4 sm:$0xff]  }
  0xa0   :  { %1522 = vmatpush2.bf16.msra.mxu1 %v7612_v11  ;;  %1445 = vmatprep.subr.bf16.mxu0 %v7617_v12  ;;  %v7699_v11 = vld [vmem:[%s10621_s1 + $0x348] ss:$16 sps:$4 sm:$0xff]  }
  0xa1   :  { %1523 = vmatprep.subr.bf16.mxu1 %v7620_v13  ;;  %v7702_v12 = vld [vmem:[%s10621_s1 + $0x588] ss:$16 sps:$4 sm:$0xff]   ;;  %v7707_v13 = vld [vmem:[%s10621_s1 + $0x32c] ss:$16 sps:$4 sm:$0xff]  }
  0xa3   :  { %1446 = vmatpush2.bf16.msra.mxu0 %v7615_v14  ;;  %v7710_v14 = vld [vmem:[%s10621_s1 + $0x56c] ss:$16 sps:$4 sm:$0xff]  }
  0xa4   :  { %1524 = vmatpush2.bf16.msra.mxu1 %v7618_v15  ;;  %1538 = vmatprep.subr.bf16.mxu0 %v7626_v18  ;;  %v7705_v15 = vld [vmem:[%s10621_s1 + $0x328] ss:$16 sps:$4 sm:$0xff]   ;;  %v7716_v18 = vld [vmem:[%s10621_s1 + $0x54c] ss:$16 sps:$4 sm:$0xff]  }
  0xa5   :  { %1525 = vmatprep.subr.bf16.mxu1 %v7623_v17  ;;  %v7713_v17 = vld [vmem:[%s10621_s1 + $0x30c] ss:$16 sps:$4 sm:$0xff]  }
  0xa6   :  { %1448 = vmatmul.mubr.bf16.vlgmr.msra.gmra.mxu0 %v9339_v20 }
  0xa7   :  { %1539 = vmatpush1.bf16.msra.mxu0 %v7624_v23  ;;  %1570 = vmatprep.mubr.bf16.mxu0 %v9062_v52  ;;  %v7639_v52 = vld [vmem:[%s10621_s1 + $0x288] ss:$16 sps:$4 sm:$0xff]  }
  0xa8   :  { %1526 = vmatpush2.bf16.msra.mxu1 %v7621_v22  ;;  %1540 = vmatprep.subr.bf16.mxu0 %v7632_v25  ;;  %v7711_v22 = vld [vmem:[%s10621_s1 + $0x308] ss:$16 sps:$4 sm:$0xff]   ;;  %v7722_v25 = vld [vmem:[%s10621_s1 + $0x62c] ss:$16 sps:$4 sm:$0xff]  }
  0xa9   :  { %1527 = vmatprep.subr.bf16.mxu1 %v7629_v24  ;;  %v7714_v23 = vld [vmem:[%s10621_s1 + $0x548] ss:$16 sps:$4 sm:$0xff]   ;;  %v7719_v24 = vld [vmem:[%s10621_s1 + $0x52c] ss:$16 sps:$4 sm:$0xff]  }
  0xab   :  { %1541 = vmatpush1.bf16.msra.mxu0 %v7630_v27  ;;  %v7720_v27 = vld [vmem:[%s10621_s1 + $0x628] ss:$16 sps:$4 sm:$0xff]  }
  0xac   :  { %1528 = vmatpush2.bf16.msra.mxu1 %v7627_v26  ;;  %1542 = vmatprep.subr.bf16.mxu0 %v7635_v28  ;;  %v7717_v26 = vld [vmem:[%s10621_s1 + $0x528] ss:$16 sps:$4 sm:$0xff]   ;;  %v7725_v28 = vld [vmem:[%s10621_s1 + $0x50c] ss:$16 sps:$4 sm:$0xff]  }
  0xad   :  { %1579 = vmatprep.subr.bf16.mxu1 %v7638_v29  ;;  %v7728_v29 = vld [vmem:[%s10621_s1 + $0x60c] ss:$16 sps:$4 sm:$0xff]  }
  0xaf   :  { %1530 = vmatmul.mubr.bf16.vlgmr.msra.gmra.mxu1 %v9123_v8  ;;  %1543 = vmatpush1.bf16.msra.mxu0 %v7633_v30  ;;  %v7648_v8 = vld [vmem:[%s10621_s1 + $0x4a8] ss:$16 sps:$4 sm:$0xff]  }
  0xb0   :  { %1580 = vmatpush1.bf16.msra.mxu1 %v7636_v31  ;;  %1544 = vmatprep.subr.bf16.mxu0 %v7641_v32  ;;  %v7723_v30 = vld [vmem:[%s10621_s1 + $0x508] ss:$16 sps:$4 sm:$0xff]   ;;  %v7731_v32 = vld [vmem:[%s10623_s3 + $0xe4] ss:$16 sps:$4 sm:$0xff]  }
  0xb1   :  { %1581 = vmatprep.subr.bf16.mxu1 %v7644_v33  ;;  %1611 = vmatprep.mubr.bf16.mxu1 %v9222_v41  ;;  %v7654_v41 = vld [vmem:[%s10621_s1 + $0x488] ss:$16 sps:$4 sm:$0xff]   ;;  %v7729_v33 = vld [vmem:[%s10623_s3 + $0xe0] ss:$16 sps:$4 sm:$0xff]  }
  0xb2   :  { %v7726_v31 = vld [vmem:[%s10621_s1 + $0x608] ss:$16 sps:$4 sm:$0xff]  }
  0xb3   :  { %1545 = vmatpush1.bf16.msra.mxu0 %v7639_v52  ;;  %v7737_v52 = vld [vmem:[%s10623_s3 + $0xa4] ss:$16 sps:$4 sm:$0xff]  }
  0xb4   :  { %1582 = vmatpush1.bf16.msra.mxu1 %v7642_v34  ;;  %1546 = vmatprep.subr.bf16.mxu0 %v7647_v35  ;;  %v7735_v34 = vld [vmem:[%s10623_s3 + $0xa0] ss:$16 sps:$4 sm:$0xff]   ;;  %v7743_v35 = vld [vmem:[%s10623_s3 + $0x64] ss:$16 sps:$4 sm:$0xff]  }
  0xb5   :  { %1583 = vmatprep.subr.bf16.mxu1 %v7650_v36  ;;  %v7741_v36 = vld [vmem:[%s10623_s3 + $0x60] ss:$16 sps:$4 sm:$0xff]  }
  0xb7   :  { %1547 = vmatpush1.bf16.msra.mxu0 %v7645_v37  ;;  %v7746_v37 = vld [vmem:[%s10623_s3 + $0x44] ss:$16 sps:$4 sm:$0xff]  }
  0xb8   :  { %1584 = vmatpush1.bf16.msra.mxu1 %v7648_v8  ;;  %1548 = vmatprep.subr.bf16.mxu0 %v7653_v38  ;;  %v7744_v8 = vld [vmem:[%s10623_s3 + $0x40] ss:$16 sps:$4 sm:$0xff]   ;;  %v7749_v38 = vld [vmem:[%s10623_s3 + $0x24] ss:$16 sps:$4 sm:$0xff]  }
  0xb9   :  { %1585 = vmatprep.subr.bf16.mxu1 %v7656_v39  ;;  %v7747_v39 = vld [vmem:[%s10623_s3 + $0x20] ss:$16 sps:$4 sm:$0xff]  }
  0xbb   :  { %1549 = vmatpush1.bf16.msra.mxu0 %v7651_v40  ;;  %v7752_v40 = vld [vmem:[%s10623_s3 + $0x4] ss:$16 sps:$4 sm:$0xff]  }
  0xbc   :  { %1586 = vmatpush1.bf16.msra.mxu1 %v7654_v41  ;;  %1550 = vmatprep.subr.bf16.mxu0 %v7659_v42  ;;  %v7750_v41 = vld [vmem:[%s10623_s3] ss:$16 sps:$4 sm:$0xff]   ;;  %v7755_v42 = vld [vmem:[%s10623_s3 + $0x1e4] ss:$16 sps:$4 sm:$0xff]  }
  0xbd   :  { %1587 = vmatprep.subr.bf16.mxu1 %v7662_v43  ;;  %v7753_v43 = vld [vmem:[%s10623_s3 + $0x1e0] ss:$16 sps:$4 sm:$0xff]  }
  0xbf   :  { %1551 = vmatpush1.bf16.msra.mxu0 %v7657_v44  ;;  %v7758_v44 = vld [vmem:[%s10623_s3 + $0x1c4] ss:$16 sps:$4 sm:$0xff]  }
  0xc0   :  { %1588 = vmatpush1.bf16.msra.mxu1 %v7660_v45  ;;  %1552 = vmatprep.subr.bf16.mxu0 %v7665_v46  ;;  %v7756_v45 = vld [vmem:[%s10623_s3 + $0x1c0] ss:$16 sps:$4 sm:$0xff]   ;;  %v7761_v46 = vld [vmem:[%s10623_s3 + $0x1a4] ss:$16 sps:$4 sm:$0xff]  }
  0xc1   :  { %1589 = vmatprep.subr.bf16.mxu1 %v7668_v47  ;;  %v7759_v47 = vld [vmem:[%s10623_s3 + $0x1a0] ss:$16 sps:$4 sm:$0xff]  }
  0xc3   :  { %1553 = vmatpush1.bf16.msra.mxu0 %v7663_v48  ;;  %v7764_v48 = vld [vmem:[%s10623_s3 + $0x184] ss:$16 sps:$4 sm:$0xff]  }
  0xc4   :  { %1590 = vmatpush1.bf16.msra.mxu1 %v7666_v49  ;;  %1554 = vmatprep.subr.bf16.mxu0 %v7671_v50  ;;  %v7762_v49 = vld [vmem:[%s10623_s3 + $0x180] ss:$16 sps:$4 sm:$0xff]   ;;  %v7767_v50 = vld [vmem:[%s10623_s3 + $0x164] ss:$16 sps:$4 sm:$0xff]  }
  0xc5   :  { %1591 = vmatprep.subr.bf16.mxu1 %v7674_v51  ;;  %v7765_v51 = vld [vmem:[%s10623_s3 + $0x160] ss:$16 sps:$4 sm:$0xff]  }
  0xc7   :  { %1555 = vmatpush2.bf16.msra.mxu0 %v7669_v53  ;;  %v7770_v53 = vld [vmem:[%s10623_s3 + $0x144] ss:$16 sps:$4 sm:$0xff]  }
  0xc8   :  { %1592 = vmatpush1.bf16.msra.mxu1 %v7672_v54  ;;  %1556 = vmatprep.subr.bf16.mxu0 %v7677_v55  ;;  %v7768_v54 = vld [vmem:[%s10623_s3 + $0x140] ss:$16 sps:$4 sm:$0xff]   ;;  %v7773_v55 = vld [vmem:[%s10623_s3 + $0x124] ss:$16 sps:$4 sm:$0xff]  }
  0xc9   :  { %1593 = vmatprep.subr.bf16.mxu1 %v7680_v56  ;;  %v7771_v56 = vld [vmem:[%s10623_s3 + $0x120] ss:$16 sps:$4 sm:$0xff]  }
  0xcb   :  { %1557 = vmatpush2.bf16.msra.mxu0 %v7675_v57  ;;  %v7776_v57 = vld [vmem:[%s10623_s3 + $0x104] ss:$16 sps:$4 sm:$0xff]  }
  0xcc   :  { %1594 = vmatpush1.bf16.msra.mxu1 %v7678_v58  ;;  %1558 = vmatprep.subr.bf16.mxu0 %v7683_v59  ;;  %v7774_v58 = vld [vmem:[%s10623_s3 + $0x100] ss:$16 sps:$4 sm:$0xff]  }
  0xcd   :  { %1595 = vmatprep.subr.bf16.mxu1 %v7686_v60 }
  0xcf   :  { %1559 = vmatpush2.bf16.msra.mxu0 %v7681_v61 }
  0xd0   :  { %1596 = vmatpush2.bf16.msra.mxu1 %v7684_v62  ;;  %1560 = vmatprep.subr.bf16.mxu0 %v7689_v63 }
  0xd1   :  { %1597 = vmatprep.subr.bf16.mxu1 %v7692_v0 }
  0xd3   :  { %1561 = vmatpush2.bf16.msra.mxu0 %v7687_v1 }
  0xd4   :  { %1598 = vmatpush2.bf16.msra.mxu1 %v7690_v2  ;;  %1562 = vmatprep.subr.bf16.mxu0 %v7695_v3 }
  0xd5   :  { %1599 = vmatprep.subr.bf16.mxu1 %v7698_v4 }
  0xd7   :  { %1563 = vmatpush2.bf16.msra.mxu0 %v7693_v5  ;;  %v7779_v5 = vld [vmem:[%s10623_s3 + $0x2e4] ss:$16 sps:$4 sm:$0xff]  }
  0xd8   :  { %1600 = vmatpush2.bf16.msra.mxu1 %v7696_v6  ;;  %1564 = vmatprep.subr.bf16.mxu0 %v7701_v7  ;;  %v7777_v7 = vld [vmem:[%s10623_s3 + $0x2e0] ss:$16 sps:$4 sm:$0xff]  }
  0xd9   :  { %1601 = vmatprep.subr.bf16.mxu1 %v7704_v10  ;;  %v7782_v10 = vld [vmem:[%s10623_s3 + $0x2ec] ss:$16 sps:$4 sm:$0xff]  }
  0xdb   :  { %1565 = vmatpush2.bf16.msra.mxu0 %v7699_v11 }
  0xdc   :  { %1602 = vmatpush2.bf16.msra.mxu1 %v7702_v12  ;;  %1566 = vmatprep.subr.bf16.mxu0 %v7707_v13  ;;  %v7785_v12 = vld [vmem:[%s10623_s3 + $0x2c4] ss:$16 sps:$4 sm:$0xff]   ;;  %v7783_v13 = vld [vmem:[%s10623_s3 + $0x2c0] ss:$16 sps:$4 sm:$0xff]  }
  0xdd   :  { %1603 = vmatprep.subr.bf16.mxu1 %v7710_v14  ;;  %v7791_v14 = vld [vmem:[%s10623_s3 + $0x2a4] ss:$16 sps:$4 sm:$0xff]  }
  0xdf   :  { %1567 = vmatpush2.bf16.msra.mxu0 %v7705_v15  ;;  %v7789_v15 = vld [vmem:[%s10623_s3 + $0x2a0] ss:$16 sps:$4 sm:$0xff]  }
  0xe0   :  { %1604 = vmatpush2.bf16.msra.mxu1 %v7708_v16  ;;  %1568 = vmatprep.subr.bf16.mxu0 %v7713_v17  ;;  %v7797_v16 = vld [vmem:[%s10623_s3 + $0x284] ss:$16 sps:$4 sm:$0xff]   ;;  %v7795_v17 = vld [vmem:[%s10623_s3 + $0x280] ss:$16 sps:$4 sm:$0xff]  }
  0xe1   :  { %1605 = vmatprep.subr.bf16.mxu1 %v7716_v18  ;;  %v7803_v18 = vld [vmem:[%s10623_s3 + $0x264] ss:$16 sps:$4 sm:$0xff]  }
  0xe3   :  { %1569 = vmatpush2.bf16.msra.mxu0 %v7711_v22  ;;  %v7801_v22 = vld [vmem:[%s10623_s3 + $0x260] ss:$16 sps:$4 sm:$0xff]  }
  0xe4   :  { %1606 = vmatpush2.bf16.msra.mxu1 %v7714_v23  ;;  %1632 = vmatprep.subr.bf16.mxu0 %v7722_v25  ;;  %v7809_v23 = vld [vmem:[%s10623_s3 + $0x244] ss:$16 sps:$4 sm:$0xff]  }
  0xe5   :  { %1607 = vmatprep.subr.bf16.mxu1 %v7719_v24  ;;  %v7807_v24 = vld [vmem:[%s10623_s3 + $0x240] ss:$16 sps:$4 sm:$0xff]   ;;  %v7815_v25 = vld [vmem:[%s10623_s3 + $0x224] ss:$16 sps:$4 sm:$0xff]  }
  0xe6   :  { %1571 = vmatmul.mubr.bf16.vlgmr.msra.gmra.mxu0 %v9125_v9  ;;  %v7734_v9 = vld [vmem:[%s10623_s3 + $0xc4] ss:$16 sps:$4 sm:$0xff]  }
  0xe7   :  { %1633 = vmatpush1.bf16.msra.mxu0 %v7720_v27  ;;  %1652 = vmatprep.mubr.bf16.mxu0 %v8816_v19  ;;  %v7732_v19 = vld [vmem:[%s10623_s3 + $0xc0] ss:$16 sps:$4 sm:$0xff]   ;;  %v7821_v27 = vld [vmem:[%s10623_s3 + $0x204] ss:$16 sps:$4 sm:$0xff]  }
  0xe8   :  { %1608 = vmatpush2.bf16.msra.mxu1 %v7717_v26  ;;  %1634 = vmatprep.subr.bf16.mxu0 %v7728_v29  ;;  %v7813_v26 = vld [vmem:[%s10623_s3 + $0x220] ss:$16 sps:$4 sm:$0xff]   ;;  %v7827_v29 = vld [vmem:[%s10623_s3 + $0x304] ss:$16 sps:$4 sm:$0xff]  }
  0xe9   :  { %1609 = vmatprep.subr.bf16.mxu1 %v7725_v28  ;;  %v7819_v28 = vld [vmem:[%s10623_s3 + $0x200] ss:$16 sps:$4 sm:$0xff]  }
  0xeb   :  { %1635 = vmatpush1.bf16.msra.mxu0 %v7726_v31  ;;  %v309_v31 = vlaneseq }
  0xec   :  { %1610 = vmatpush2.bf16.msra.mxu1 %v7723_v30  ;;  %2315 = vmatprep.subr.bf16.mxu0 %v7731_v32  ;;  %v7825_v30 = vld [vmem:[%s10623_s3 + $0x300] ss:$16 sps:$4 sm:$0xff]  }
  0xed   :  { %2356 = vmatprep.subr.bf16.mxu1 %v7779_v5  ;;  %v310_v32 = vshrl.u32 %v309_v31, 7  ;;  %v7812_v5 = vld [vmem:[%s10623_s3 + $0x24c] ss:$16 sps:$4 sm:$0xff]  }
  0xee   :  { %6785 = vmatmul.mubr.msk.bf16.vlgmr.msra.gmra.mxu0 %vm1329_vm0, %v9160_v21  ;;  %v7738_v21 = vld [vmem:[%s10623_s3 + $0x80] ss:$16 sps:$4 sm:$0xff]  }
  0xef   :  { %1612 = vmatmul.mubr.bf16.vlgmr.msra.gmra.mxu1 %v9339_v20  ;;  %2316 = vmatpush1.bf16.msra.mxu0 %v7729_v33  ;;  %v7740_v20 = vld [vmem:[%s10623_s3 + $0x84] ss:$16 sps:$4 sm:$0xff]   ;;  %v7833_v33 = vld [vmem:[%s10623_s3 + $0xec] ss:$16 sps:$4 sm:$0xff]  }
  0xf0   :  { %2317 = vmatprep.subr.bf16.mxu0 %v7734_v9  ;;  %2357 = vmatpush1.bf16.msra.mxu1 %v7777_v7  ;;  %v9721_v9 = vld [vmem:[%s10622_s2] sm:$0xf]  ;;  %v7818_v7 = vld [vmem:[%s10623_s3 + $0x22c] ss:$16 sps:$4 sm:$0xff]  }
  0xf1   :  { %2358 = vmatprep.subr.bf16.mxu1 %v7785_v12  ;;  %v7816_v12 = vld [vmem:[%s10623_s3 + $0x228] ss:$16 sps:$4 sm:$0xff]  }
  0xf3   :  { %2318 = vmatpush1.bf16.msra.mxu0 %v7732_v19  ;;  %v9723_v19 = vsub.s32 0, %v310_v32 }
  0xf4   :  { %2319 = vmatprep.subr.bf16.mxu0 %v7737_v52  ;;  %2359 = vmatpush1.bf16.msra.mxu1 %v7783_v13  ;;  %v9725_v52 = vsub.s32 1, %v310_v32 }
  0xf5   :  { %2360 = vmatprep.subr.bf16.mxu1 %v7791_v14  ;;  %v7824_v14 = vld [vmem:[%s10623_s3 + $0x20c] ss:$16 sps:$4 sm:$0xff]  }
  0xf7   :  { %2320 = vmatpush1.bf16.msra.mxu0 %v7735_v34  ;;  %v312_v34 = vrot.slane %v9721_v9, %v9723_v19 }
  0xf8   :  { %2321 = vmatprep.subr.bf16.mxu0 %v7740_v20  ;;  %2361 = vmatpush1.bf16.msra.mxu1 %v7789_v15  ;;  %v316_v20 = vrot.slane %v9721_v9, %v9725_v52 }
  0xf9   :  { %2362 = vmatprep.subr.bf16.mxu1 %v7797_v16 }
  0xfb   :  { %2322 = vmatpush1.bf16.msra.mxu0 %v7738_v21 }
  0xfc   :  { %2323 = vmatprep.subr.bf16.mxu0 %v7743_v35  ;;  %2363 = vmatpush1.bf16.msra.mxu1 %v7795_v17 }
  0xfd   :  { %2364 = vmatprep.subr.bf16.mxu1 %v7803_v18  ;;  %v7822_v18 = vld [vmem:[%s10623_s3 + $0x208] ss:$16 sps:$4 sm:$0xff]  }
  0xff   :  { %2324 = vmatpush1.bf16.msra.mxu0 %v7741_v36 }
 0x100   :  { %2325 = vmatprep.subr.bf16.mxu0 %v7746_v37  ;;  %2365 = vmatpush1.bf16.msra.mxu1 %v7801_v22 }
 0x101   :  { %2366 = vmatprep.subr.bf16.mxu1 %v7809_v23  ;;  %v7830_v23 = vld [vmem:[%s10623_s3 + $0x30c] ss:$16 sps:$4 sm:$0xff]  }
 0x103   :  { %2326 = vmatpush1.bf16.msra.mxu0 %v7744_v8 }
 0x104   :  { %2327 = vmatprep.subr.bf16.mxu0 %v7749_v38  ;;  %2367 = vmatpush1.bf16.msra.mxu1 %v7807_v24 }
 0x105   :  { %2368 = vmatprep.subr.bf16.mxu1 %v7815_v25 }
 0x107   :  { %2328 = vmatpush1.bf16.msra.mxu0 %v7747_v39 }
 0x108   :  { %2329 = vmatprep.subr.bf16.mxu0 %v7752_v40  ;;  %2369 = vmatpush1.bf16.msra.mxu1 %v7813_v26 }
 0x109   :  { %2370 = vmatprep.subr.bf16.mxu1 %v7821_v27 }
 0x10b   :  { %2330 = vmatpush1.bf16.msra.mxu0 %v7750_v41 }
 0x10c   :  { %2331 = vmatprep.subr.bf16.mxu0 %v7755_v42  ;;  %2371 = vmatpush1.bf16.msra.mxu1 %v7819_v28  ;;  %v7828_v28 = vld [vmem:[%s10623_s3 + $0x308] ss:$16 sps:$4 sm:$0xff]  }
 0x10d   :  { %2386 = vmatprep.subr.bf16.mxu1 %v7827_v29 }
 0x10f   :  { %2332 = vmatpush2.bf16.msra.mxu0 %v7753_v43 }
 0x110   :  { %2333 = vmatprep.subr.bf16.mxu0 %v7758_v44  ;;  %2387 = vmatpush2.bf16.msra.mxu1 %v7825_v30 }
 0x111   :  { %2397 = vmatprep.subr.bf16.mxu1 %v7833_v33 }
 0x113   :  { %2334 = vmatpush2.bf16.msra.mxu0 %v7756_v45 }
 0x114   :  { %2335 = vmatprep.subr.bf16.mxu0 %v7761_v46 }
 0x117   :  { %2336 = vmatpush2.bf16.msra.mxu0 %v7759_v47 }
 0x118   :  { %2337 = vmatprep.subr.bf16.mxu0 %v7764_v48 }
 0x11b   :  { %2338 = vmatpush2.bf16.msra.mxu0 %v7762_v49 }
 0x11c   :  { %2339 = vmatprep.subr.bf16.mxu0 %v7767_v50 }
 0x11f   :  { %2340 = vmatpush2.bf16.msra.mxu0 %v7765_v51 }
 0x120   :  { %2341 = vmatprep.subr.bf16.mxu0 %v7770_v53 }
 0x123   :  { %2342 = vmatpush2.bf16.msra.mxu0 %v7768_v54 }
 0x124   :  { %2343 = vmatprep.subr.bf16.mxu0 %v7773_v55 }
 0x126   :  { %v1367_v59 = vpop.f32.mrf.mxu0 }
 0x127   :  { %v9656_v60 = vpop.f32.mrf.mxu1  ;;  %2344 = vmatpush2.bf16.msra.mxu0 %v7771_v56  ;;  %v1368_v21 = vadd.f32 %v1367_v59, %v312_v34  ;;  %v7780_v59 = vld [vmem:[%s10623_s3 + $0x2e8] ss:$16 sps:$4 sm:$0xff]  }
 0x128   :  { %v1369_v61 = vpop.f32.mrf.mxu0  ;;  %2345 = vmatprep.subr.bf16.mxu0 %v7776_v57 }
 0x129   :  { %v1410_v62 = vpop.f32.mrf.mxu1  ;;  %v1370_v35 = vadd.f32 %v1369_v61, %v316_v20  ;;  %v1409_v36 = vadd.f32 %v9656_v60, %v1368_v21  ;;  %v7788_v60 = vld [vmem:[%s10623_s3 + $0x2cc] ss:$16 sps:$4 sm:$0xff]  }
 0x12a   :  { %v1371_v63 = vpop.f32.mrf.mxu0 }
 0x12b   :  { %v1412_v0 = vpop.f32.mrf.mxu1  ;;  %2346 = vmatpush2.bf16.msra.mxu0 %v7774_v58  ;;  %v1411_v8 = vadd.f32 %v1410_v62, %v1370_v35  ;;  %v7786_v62 = vld [vmem:[%s10623_s3 + $0x2c8] ss:$16 sps:$4 sm:$0xff]   ;;  %v7794_v63 = vld [vmem:[%s10623_s3 + $0x2ac] ss:$16 sps:$4 sm:$0xff]  }
 0x12c   :  { %v1372_v1 = vpop.f32.mrf.mxu0  ;;  %2438 = vmatprep.subr.bf16.mxu0 %v7782_v10  ;;  %v7792_v0 = vld [vmem:[%s10623_s3 + $0x2a8] ss:$16 sps:$4 sm:$0xff]   ;;  %v9774_v10 = vsub.s32 2, %v310_v32 }
 0x12d   :  { %v1413_v2 = vpop.f32.mrf.mxu1  ;;  %v7800_v1 = vld [vmem:[%s10623_s3 + $0x28c] ss:$16 sps:$4 sm:$0xff]  }
 0x12e   :  { %v7798_v2 = vld [vmem:[%s10623_s3 + $0x288] ss:$16 sps:$4 sm:$0xff]   ;;  %v320_v15 = vrot.slane %v9721_v9, %v9774_v10 }
 0x12f   :  { %v1490_v3 = vpop.f32.mrf.mxu1 }
 0x131   :  { %v1492_v4 = vpop.f32.mrf.mxu1 }
 0x133   :  { %v1494_v6 = vpop.f32.mrf.mxu1 }
 0x134   :  { %v7810_v6 = vld [vmem:[%s10623_s3 + $0x248] ss:$16 sps:$4 sm:$0xff]  }
 0x135   :  { %v1495_v11 = vpop.f32.mrf.mxu1 }
 0x136   :  { %v9776_v11 = vsub.s32 3, %v310_v32 }
 0x138   :  { %v324_v17 = vrot.slane %v9721_v9, %v9776_v11 }
 0x166   :  { %v1449_v37 = vpop.f32.mrf.mxu0 }
 0x167   :  { %v1450_v38 = vadd.f32 %v1449_v37, %v1409_v36 }
 0x168   :  { %v1451_v39 = vpop.f32.mrf.mxu0 }
 0x169   :  { %v1491_v40 = vadd.f32 %v1490_v3, %v1450_v38  ;;  %v1452_v41 = vadd.f32 %v1451_v39, %v1411_v8  ;;  %v7806_v3 = vld [vmem:[%s10623_s3 + $0x26c] ss:$16 sps:$4 sm:$0xff]  }
 0x16a   :  { %v1453_v42 = vpop.f32.mrf.mxu0 }
 0x16b   :  { %v6786_v43 = vmul.f32 -1.442695, %v1491_v40  ;;  %v1493_v44 = vadd.f32 %v1492_v4, %v1452_v41  ;;  %v7804_v4 = vld [vmem:[%s10623_s3 + $0x268] ss:$16 sps:$4 sm:$0xff]  }
 0x16c   :  { %v1454_v45 = vpop.f32.mrf.mxu0 }
 0x16d   :  { %8629 = vpow2.f32 %v6786_v43  ;;  %v6787_v46 = vmul.f32 -1.442695, %v1493_v44 }
 0x16f   :  { %v1531_v47 = vpop.f32.mrf.mxu1  ;;  %8631 = vpow2.f32 %v6787_v46 }
 0x170   :  { %v1532_v24 = vadd.f32 %v1531_v47, %v320_v15  ;;  %v7831_v47 = vld [vmem:[%s10623_s3 + $0xe8] ss:$16 sps:$4 sm:$0xff]   ;;  %v7854_v15 = vld [vmem:[%s10623_s3 + $0xc] ss:$16 sps:$4 sm:$0xff]  }
 0x171   :  { %v1533_v48 = vpop.f32.mrf.mxu1 }
 0x172   :  { %v1534_v26 = vadd.f32 %v1533_v48, %v324_v17  ;;  %v7857_v17 = vld [vmem:[%s10623_s3 + $0x1ec] ss:$16 sps:$4 sm:$0xff]  }
 0x173   :  { %v1535_v49 = vpop.f32.mrf.mxu1 }
 0x174   :  { %v7836_v49 = vld [vmem:[%s10623_s3 + $0xcc] ss:$16 sps:$4 sm:$0xff]  }
 0x175   :  { %v1536_v50 = vpop.f32.mrf.mxu1 }
 0x176   :  { %v7881_v50 = vld [vmem:[%s10625_s5 + $0xe4] ss:$16 sps:$4 sm:$0xff]  }
 0x17a   :  { %v8630_v51 = vpop.eup %8629 }
 0x17b   :  { %v1673_v53 = vadd.f32 1.0, %v8630_v51  ;;  %v7879_v51 = vld [vmem:[%s10625_s5 + $0xe0] ss:$16 sps:$4 sm:$0xff]  }
 0x17c   :  { %v8632_v54 = vpop.eup %8631 }
 0x17d   :  { %v1674_v55 = vadd.f32 1.0, %v8632_v54  ;;  %8633 = vrcp.f32 %v1673_v53  ;;  %v7884_v53 = vld [vmem:[%s10625_s5 + $0xc4] ss:$16 sps:$4 sm:$0xff]   ;;  %v7834_v54 = vld [vmem:[%s10623_s3 + $0xc8] ss:$16 sps:$4 sm:$0xff]  }
 0x17f   :  { %8635 = vrcp.f32 %v1674_v55  ;;  %v7839_v55 = vld [vmem:[%s10623_s3 + $0xac] ss:$16 sps:$4 sm:$0xff]  }
 0x18a   :  { %v8634_v56 = vpop.eup %8633 }
 0x18b   :  { %v9740_v61 = vpack.c.bf16 %v8634_v56, %v8634_v56  ;;  %v7882_v56 = vld [vmem:[%s10625_s5 + $0xc0] ss:$16 sps:$4 sm:$0xff]  }
 0x18c   :  { %v8636_v57 = vpop.eup %8635 }
 0x18d   :  { %v9732_v58 = vpack.c.bf16 %v8636_v57, %v8636_v57  ;;  %v7887_v57 = vld [vmem:[%s10625_s5 + $0xa4] ss:$16 sps:$4 sm:$0xff]  }
 0x18f   :  { %2347 = vmatprep.mubr.bf16.mxu0 %v9732_v58 }
 0x190   :  { %2348 = vmatmul.mubr.bf16.vlgmr.msra.gmra.mxu0 %v9740_v61 }
 0x191   :  { %2439 = vmatpush1.bf16.msra.mxu0 %v7780_v59  ;;  %v7842_v59 = vld [vmem:[%s10623_s3 + $0x8c] ss:$16 sps:$4 sm:$0xff]  }
 0x192   :  { %2440 = vmatprep.subr.bf16.mxu0 %v7788_v60  ;;  %v7885_v60 = vld [vmem:[%s10625_s5 + $0xa0] ss:$16 sps:$4 sm:$0xff]  }
 0x195   :  { %2441 = vmatpush1.bf16.msra.mxu0 %v7786_v62  ;;  %v7890_v62 = vld [vmem:[%s10625_s5 + $0x84] ss:$16 sps:$4 sm:$0xff]  }
 0x196   :  { %2442 = vmatprep.subr.bf16.mxu0 %v7794_v63  ;;  %v7840_v63 = vld [vmem:[%s10623_s3 + $0x88] ss:$16 sps:$4 sm:$0xff]  }
 0x199   :  { %2443 = vmatpush1.bf16.msra.mxu0 %v7792_v0  ;;  %v7845_v0 = vld [vmem:[%s10623_s3 + $0x6c] ss:$16 sps:$4 sm:$0xff]  }
 0x19a   :  { %2444 = vmatprep.subr.bf16.mxu0 %v7800_v1  ;;  %v7888_v1 = vld [vmem:[%s10625_s5 + $0x80] ss:$16 sps:$4 sm:$0xff]  }
 0x19d   :  { %2445 = vmatpush1.bf16.msra.mxu0 %v7798_v2  ;;  %v7893_v2 = vld [vmem:[%s10625_s5 + $0x64] ss:$16 sps:$4 sm:$0xff]  }
 0x19e   :  { %2446 = vmatprep.subr.bf16.mxu0 %v7806_v3  ;;  %v7843_v3 = vld [vmem:[%s10623_s3 + $0x68] ss:$16 sps:$4 sm:$0xff]  }
 0x1a1   :  { %2447 = vmatpush1.bf16.msra.mxu0 %v7804_v4  ;;  %v7848_v4 = vld [vmem:[%s10623_s3 + $0x4c] ss:$16 sps:$4 sm:$0xff]  }
 0x1a2   :  { %2448 = vmatprep.subr.bf16.mxu0 %v7812_v5  ;;  %v7891_v5 = vld [vmem:[%s10625_s5 + $0x60] ss:$16 sps:$4 sm:$0xff]  }
 0x1a5   :  { %2449 = vmatpush1.bf16.msra.mxu0 %v7810_v6  ;;  %v7896_v6 = vld [vmem:[%s10625_s5 + $0x44] ss:$16 sps:$4 sm:$0xff]  }
 0x1a6   :  { %v1572_v13 = vpop.f32.mrf.mxu0  ;;  %2450 = vmatprep.subr.bf16.mxu0 %v7818_v7  ;;  %v7846_v7 = vld [vmem:[%s10623_s3 + $0x48] ss:$16 sps:$4 sm:$0xff]  }
 0x1a7   :  { %v1573_v27 = vadd.f32 %v1572_v13, %v1532_v24  ;;  %v7894_v13 = vld [vmem:[%s10625_s5 + $0x40] ss:$16 sps:$4 sm:$0xff]   ;;  %v7863_v24 = vld [vmem:[%s10623_s3 + $0x1ac] ss:$16 sps:$4 sm:$0xff]  }
 0x1a8   :  { %v1574_v16 = vpop.f32.mrf.mxu0 }
 0x1a9   :  { %2451 = vmatpush1.bf16.msra.mxu0 %v7816_v12  ;;  %v1575_v31 = vadd.f32 %v1574_v16, %v1534_v26  ;;  %v7851_v12 = vld [vmem:[%s10623_s3 + $0x2c] ss:$16 sps:$4 sm:$0xff]   ;;  %v7852_v16 = vld [vmem:[%s10623_s3 + $0x8] ss:$16 sps:$4 sm:$0xff]  }
 0x1aa   :  { %v1576_v22 = vpop.f32.mrf.mxu0  ;;  %2452 = vmatprep.subr.bf16.mxu0 %v7824_v14  ;;  %v7849_v14 = vld [vmem:[%s10623_s3 + $0x28] ss:$16 sps:$4 sm:$0xff]   ;;  %v7866_v26 = vld [vmem:[%s10623_s3 + $0x18c] ss:$16 sps:$4 sm:$0xff]  }
 0x1ab   :  { %v7860_v22 = vld [vmem:[%s10623_s3 + $0x1cc] ss:$16 sps:$4 sm:$0xff]  }
 0x1ac   :  { %v1577_v25 = vpop.f32.mrf.mxu0 }
 0x1ad   :  { %2453 = vmatpush1.bf16.msra.mxu0 %v7822_v18  ;;  %v7855_v18 = vld [vmem:[%s10623_s3 + $0x1e8] ss:$16 sps:$4 sm:$0xff]  }
 0x1ae   :  { %v1654_v30 = vpop.f32.mrf.mxu0  ;;  %2468 = vmatprep.subr.bf16.mxu0 %v7830_v23  ;;  %v7858_v23 = vld [vmem:[%s10623_s3 + $0x1c8] ss:$16 sps:$4 sm:$0xff]  }
 0x1af   :  { %v1613_v29 = vpop.f32.mrf.mxu1  ;;  %v7861_v25 = vld [vmem:[%s10623_s3 + $0x1a8] ss:$16 sps:$4 sm:$0xff]  }
 0x1b0   :  { %v1614_v32 = vadd.f32 %v1613_v29, %v1573_v27  ;;  %v1656_v9 = vpop.f32.mrf.mxu0  ;;  %v7864_v27 = vld [vmem:[%s10623_s3 + $0x188] ss:$16 sps:$4 sm:$0xff]  }
 0x1b1   :  { %v1615_v33 = vpop.f32.mrf.mxu1  ;;  %2469 = vmatpush2.bf16.msra.mxu0 %v7828_v28  ;;  %v7869_v28 = vld [vmem:[%s10623_s3 + $0x16c] ss:$16 sps:$4 sm:$0xff]   ;;  %v7867_v29 = vld [vmem:[%s10623_s3 + $0x168] ss:$16 sps:$4 sm:$0xff]  }
 0x1b2   :  { %v1655_v34 = vadd.f32 %v1654_v30, %v1614_v32  ;;  %v1616_v20 = vadd.f32 %v1615_v33, %v1575_v31  ;;  %v1658_v35 = vpop.f32.mrf.mxu0  ;;  %3132 = vmatprep.subr.bf16.mxu0 %v7881_v50  ;;  %v7872_v30 = vld [vmem:[%s10623_s3 + $0x14c] ss:$16 sps:$4 sm:$0xff]   ;;  %v7870_v31 = vld [vmem:[%s10623_s3 + $0x148] ss:$16 sps:$4 sm:$0xff]   ;;  %v7924_v50 = vld [vmem:[%s10625_s5 + $0x100] ss:$16 sps:$4 sm:$0xff]  }
 0x1b3   :  { %v1617_v21 = vpop.f32.mrf.mxu1  ;;  %v7875_v32 = vld [vmem:[%s10623_s3 + $0x12c] ss:$16 sps:$4 sm:$0xff]   ;;  %v7873_v33 = vld [vmem:[%s10623_s3 + $0x128] ss:$16 sps:$4 sm:$0xff]   ;;  %v7902_v35 = vld [vmem:[%s10625_s5 + $0x4] ss:$16 sps:$4 sm:$0xff]  }
 0x1b4   :  { %v6788_v36 = vmul.f32 -1.442695, %v1655_v34  ;;  %v1657_v37 = vadd.f32 %v1656_v9, %v1616_v20  ;;  %v1659_v38 = vpop.f32.mrf.mxu0  ;;  %v7878_v9 = vld [vmem:[%s10623_s3 + $0x10c] ss:$16 sps:$4 sm:$0xff]   ;;  %v7876_v34 = vld [vmem:[%s10623_s3 + $0x108] ss:$16 sps:$4 sm:$0xff]  }
 0x1b5   :  { %v1618_v8 = vpop.f32.mrf.mxu1  ;;  %v7899_v20 = vld [vmem:[%s10625_s5 + $0x24] ss:$16 sps:$4 sm:$0xff]   ;;  %v7897_v21 = vld [vmem:[%s10625_s5 + $0x20] ss:$16 sps:$4 sm:$0xff]  }
 0x1b6   :  { %8637 = vpow2.f32 %v6788_v36  ;;  %v6789_v39 = vmul.f32 -1.442695, %v1657_v37  ;;  %v7900_v36 = vld [vmem:[%s10625_s5] ss:$16 sps:$4 sm:$0xff]   ;;  %v7908_v8 = vld [vmem:[%s10625_s5 + $0x1c4] ss:$16 sps:$4 sm:$0xff]  }
 0x1b7   :  { %v7903_v37 = vld [vmem:[%s10625_s5 + $0x1e0] ss:$16 sps:$4 sm:$0xff]  }
 0x1b8   :  { %8639 = vpow2.f32 %v6789_v39  ;;  %v7906_v38 = vld [vmem:[%s10625_s5 + $0x1c0] ss:$16 sps:$4 sm:$0xff]   ;;  %v7911_v39 = vld [vmem:[%s10625_s5 + $0x1a4] ss:$16 sps:$4 sm:$0xff]  }
 0x1c3   :  { %v8638_v40 = vpop.eup %8637 }
 0x1c4   :  { %v1675_v41 = vadd.f32 1.0, %v8638_v40  ;;  %v7909_v40 = vld [vmem:[%s10625_s5 + $0x1a0] ss:$16 sps:$4 sm:$0xff]  }
 0x1c5   :  { %v8640_v42 = vpop.eup %8639 }
 0x1c6   :  { %v1676_v43 = vadd.f32 1.0, %v8640_v42  ;;  %8641 = vrcp.f32 %v1675_v41  ;;  %v7914_v41 = vld [vmem:[%s10625_s5 + $0x184] ss:$16 sps:$4 sm:$0xff]   ;;  %v7912_v42 = vld [vmem:[%s10625_s5 + $0x180] ss:$16 sps:$4 sm:$0xff]  }
 0x1c8   :  { %8643 = vrcp.f32 %v1676_v43  ;;  %v7915_v43 = vld [vmem:[%s10625_s5 + $0x160] ss:$16 sps:$4 sm:$0xff]  }
 0x1d3   :  { %v8642_v44 = vpop.eup %8641 }
 0x1d4   :  { %v1687_v48 = vpack.c.bf16 %v8642_v44, %v8642_v44  ;;  %v7917_v44 = vld [vmem:[%s10625_s5 + $0x164] ss:$16 sps:$4 sm:$0xff]  }
 0x1d5   :  { %v8644_v45 = vpop.eup %8643 }
 0x1d6   :  { %v1688_v46 = vpack.c.bf16 %v8644_v45, %v8644_v45  ;;  %v7920_v45 = vld [vmem:[%s10625_s5 + $0x144] ss:$16 sps:$4 sm:$0xff]  }
 0x1d8   :  { %6890 = vmatprep.mubr.msk.bf16.mxu1 %vm2311_vm1, %v1688_v46  ;;  %6891 = vmatprep.mubr.msk.bf16.mxu0 %vm2311_vm1, %v1688_v46  ;;  %v7918_v46 = vld [vmem:[%s10625_s5 + $0x140] ss:$16 sps:$4 sm:$0xff]  }
 0x1d9   :  { %2389 = vmatmul.mubr.bf16.vlgmr.msra.gmra.mxu1 %v1687_v48  ;;  %2471 = vmatmul.mubr.bf16.vlgmr.msra.gmra.mxu0 %v1687_v48  ;;  %v7921_v48 = vld [vmem:[%s10625_s5 + $0x120] ss:$16 sps:$4 sm:$0xff]  }
 0x1da   :  { %2398 = vmatpush1.bf16.msra.mxu1 %v7831_v47  ;;  %2429 = vmatprep.mubr.bf16.mxu1 %v9732_v58  ;;  %v7837_v58 = vld [vmem:[%s10623_s3 + $0xa8] ss:$16 sps:$4 sm:$0xff]   ;;  %v7923_v47 = vld [vmem:[%s10625_s5 + $0x124] ss:$16 sps:$4 sm:$0xff]  }
 0x1db   :  { %2399 = vmatprep.subr.bf16.mxu1 %v7836_v49  ;;  %3133 = vmatpush1.bf16.msra.mxu0 %v7879_v51  ;;  %v7926_v49 = vld [vmem:[%s10625_s5 + $0x104] ss:$16 sps:$4 sm:$0xff]  }
 0x1dc   :  { %3134 = vmatprep.subr.bf16.mxu0 %v7884_v53 }
 0x1de   :  { %2400 = vmatpush1.bf16.msra.mxu1 %v7834_v54 }
 0x1df   :  { %2401 = vmatprep.subr.bf16.mxu1 %v7839_v55  ;;  %3135 = vmatpush1.bf16.msra.mxu0 %v7882_v56  ;;  %v7929_v56 = vld [vmem:[%s10625_s5 + $0x2e4] ss:$16 sps:$4 sm:$0xff]  }
 0x1e0   :  { %3136 = vmatprep.subr.bf16.mxu0 %v7887_v57  ;;  %v7927_v57 = vld [vmem:[%s10625_s5 + $0x2e0] ss:$16 sps:$4 sm:$0xff]  }
 0x1e2   :  { %2402 = vmatpush1.bf16.msra.mxu1 %v7837_v58  ;;  %v7932_v58 = vld [vmem:[%s10625_s5 + $0x2ec] ss:$16 sps:$4 sm:$0xff]  }
 0x1e3   :  { %2403 = vmatprep.subr.bf16.mxu1 %v7842_v59  ;;  %3137 = vmatpush1.bf16.msra.mxu0 %v7885_v60  ;;  %v7935_v59 = vld [vmem:[%s10625_s5 + $0x2c4] ss:$16 sps:$4 sm:$0xff]   ;;  %v7933_v60 = vld [vmem:[%s10625_s5 + $0x2c0] ss:$16 sps:$4 sm:$0xff]  }
 0x1e4   :  { %3138 = vmatprep.subr.bf16.mxu0 %v7890_v62  ;;  %v7941_v62 = vld [vmem:[%s10625_s5 + $0x2a4] ss:$16 sps:$4 sm:$0xff]  }
 0x1e6   :  { %2404 = vmatpush1.bf16.msra.mxu1 %v7840_v63  ;;  %v7939_v63 = vld [vmem:[%s10625_s5 + $0x2a0] ss:$16 sps:$4 sm:$0xff]  }
 0x1e7   :  { %2405 = vmatprep.subr.bf16.mxu1 %v7845_v0  ;;  %3139 = vmatpush1.bf16.msra.mxu0 %v7888_v1  ;;  %v7947_v0 = vld [vmem:[%s10625_s5 + $0x284] ss:$16 sps:$4 sm:$0xff]   ;;  %v7945_v1 = vld [vmem:[%s10625_s5 + $0x280] ss:$16 sps:$4 sm:$0xff]  }
 0x1e8   :  { %3140 = vmatprep.subr.bf16.mxu0 %v7893_v2  ;;  %v7953_v2 = vld [vmem:[%s10625_s5 + $0x264] ss:$16 sps:$4 sm:$0xff]  }
 0x1ea   :  { %2406 = vmatpush1.bf16.msra.mxu1 %v7843_v3  ;;  %v7951_v3 = vld [vmem:[%s10625_s5 + $0x260] ss:$16 sps:$4 sm:$0xff]  }
 0x1eb   :  { %2407 = vmatprep.subr.bf16.mxu1 %v7848_v4  ;;  %3141 = vmatpush1.bf16.msra.mxu0 %v7891_v5  ;;  %v7959_v4 = vld [vmem:[%s10625_s5 + $0x244] ss:$16 sps:$4 sm:$0xff]   ;;  %v7957_v5 = vld [vmem:[%s10625_s5 + $0x240] ss:$16 sps:$4 sm:$0xff]  }
 0x1ec   :  { %3142 = vmatprep.subr.bf16.mxu0 %v7896_v6  ;;  %v7965_v6 = vld [vmem:[%s10625_s5 + $0x224] ss:$16 sps:$4 sm:$0xff]  }
 0x1ee   :  { %2408 = vmatpush1.bf16.msra.mxu1 %v7846_v7  ;;  %v7963_v7 = vld [vmem:[%s10625_s5 + $0x220] ss:$16 sps:$4 sm:$0xff]  }
 0x1ef   :  { %2409 = vmatprep.subr.bf16.mxu1 %v7851_v12  ;;  %3143 = vmatpush1.bf16.msra.mxu0 %v7894_v13  ;;  %v7971_v12 = vld [vmem:[%s10625_s5 + $0x204] ss:$16 sps:$4 sm:$0xff]   ;;  %v7969_v13 = vld [vmem:[%s10625_s5 + $0x200] ss:$16 sps:$4 sm:$0xff]  }
 0x1f0   :  { %3144 = vmatprep.subr.bf16.mxu0 %v7899_v20 }
 0x1f2   :  { %2410 = vmatpush1.bf16.msra.mxu1 %v7849_v14  ;;  %v7977_v14 = vld [vmem:[%s10625_s5 + $0x304] ss:$16 sps:$4 sm:$0xff]  }
 0x1f3   :  { %2411 = vmatprep.subr.bf16.mxu1 %v7854_v15  ;;  %3145 = vmatpush1.bf16.msra.mxu0 %v7897_v21  ;;  %v7975_v15 = vld [vmem:[%s10625_s5 + $0x300] ss:$16 sps:$4 sm:$0xff]  }
 0x1f4   :  { %3146 = vmatprep.subr.bf16.mxu0 %v7902_v35 }
 0x1f6   :  { %2412 = vmatpush1.bf16.msra.mxu1 %v7852_v16  ;;  %v7983_v16 = vld [vmem:[%s10625_s5 + $0xec] ss:$16 sps:$4 sm:$0xff]  }
 0x1f7   :  { %2413 = vmatprep.subr.bf16.mxu1 %v7857_v17  ;;  %3147 = vmatpush1.bf16.msra.mxu0 %v7900_v36  ;;  %v10053_v17 = vld [vmem:[%s10624_s4] sm:$0xf] }
 0x1fa   :  { %2414 = vmatpush2.bf16.msra.mxu1 %v7855_v18  ;;  %v1794_v18 = vrot.slane %v10053_v17, %v9723_v19 }
 0x1fb   :  { %2415 = vmatprep.subr.bf16.mxu1 %v7860_v22  ;;  %v1798_v22 = vrot.slane %v10053_v17, %v9725_v52 }
 0x1fe   :  { %2416 = vmatpush2.bf16.msra.mxu1 %v7858_v23 }
 0x1ff   :  { %2417 = vmatprep.subr.bf16.mxu1 %v7863_v24 }
 0x202   :  { %2418 = vmatpush2.bf16.msra.mxu1 %v7861_v25 }
 0x203   :  { %2419 = vmatprep.subr.bf16.mxu1 %v7866_v26 }
 0x206   :  { %2420 = vmatpush2.bf16.msra.mxu1 %v7864_v27 }
 0x207   :  { %2421 = vmatprep.subr.bf16.mxu1 %v7869_v28 }
 0x20a   :  { %2422 = vmatpush2.bf16.msra.mxu1 %v7867_v29 }
 0x20b   :  { %2423 = vmatprep.subr.bf16.mxu1 %v7872_v30 }
 0x20e   :  { %2424 = vmatpush2.bf16.msra.mxu1 %v7870_v31 }
 0x20f   :  { %2425 = vmatprep.subr.bf16.mxu1 %v7875_v32 }
 0x212   :  { %2426 = vmatpush2.bf16.msra.mxu1 %v7873_v33 }
 0x213   :  { %2427 = vmatprep.subr.bf16.mxu1 %v7878_v9 }
 0x216   :  { %2428 = vmatpush2.bf16.msra.mxu1 %v7876_v34 }
 0x217   :  { %3173 = vmatprep.subr.bf16.mxu1 %v7929_v56  ;;  %v1806_v56 = vrot.slane %v10053_v17, %v9776_v11 }
 0x219   :  { %2430 = vmatmul.mubr.bf16.vlgmr.msra.gmra.mxu1 %v9740_v61  ;;  %v7905_v61 = vld [vmem:[%s10625_s5 + $0x1e4] ss:$16 sps:$4 sm:$0xff]  }
 0x21a   :  { %3148 = vmatprep.subr.bf16.mxu0 %v7905_v61  ;;  %3174 = vmatpush1.bf16.msra.mxu1 %v7927_v57 }
 0x21b   :  { %3149 = vmatpush2.bf16.msra.mxu0 %v7903_v37  ;;  %3175 = vmatprep.subr.bf16.mxu1 %v7935_v59  ;;  %v7972_v59 = vld [vmem:[%s10625_s5 + $0x208] ss:$16 sps:$4 sm:$0xff]  }
 0x21c   :  { %3150 = vmatprep.subr.bf16.mxu0 %v7908_v8 }
 0x21e   :  { %3176 = vmatpush1.bf16.msra.mxu1 %v7933_v60 }
 0x21f   :  { %3151 = vmatpush2.bf16.msra.mxu0 %v7906_v38  ;;  %3177 = vmatprep.subr.bf16.mxu1 %v7941_v62  ;;  %v7980_v62 = vld [vmem:[%s10625_s5 + $0x30c] ss:$16 sps:$4 sm:$0xff]  }
 0x220   :  { %3152 = vmatprep.subr.bf16.mxu0 %v7911_v39  ;;  %v7930_v39 = vld [vmem:[%s10625_s5 + $0x2e8] ss:$16 sps:$4 sm:$0xff]  }
 0x222   :  { %3178 = vmatpush1.bf16.msra.mxu1 %v7939_v63 }
 0x223   :  { %3153 = vmatpush2.bf16.msra.mxu0 %v7909_v40  ;;  %3179 = vmatprep.subr.bf16.mxu1 %v7947_v0 }
 0x224   :  { %3154 = vmatprep.subr.bf16.mxu0 %v7914_v41  ;;  %v7938_v41 = vld [vmem:[%s10625_s5 + $0x2cc] ss:$16 sps:$4 sm:$0xff]  }
 0x226   :  { %3180 = vmatpush1.bf16.msra.mxu1 %v7945_v1 }
 0x227   :  { %3155 = vmatpush2.bf16.msra.mxu0 %v7912_v42  ;;  %3181 = vmatprep.subr.bf16.mxu1 %v7953_v2  ;;  %v7936_v42 = vld [vmem:[%s10625_s5 + $0x2c8] ss:$16 sps:$4 sm:$0xff]  }
 0x228   :  { %3156 = vmatprep.subr.bf16.mxu0 %v7917_v44  ;;  %v7942_v44 = vld [vmem:[%s10625_s5 + $0x2a8] ss:$16 sps:$4 sm:$0xff]  }
 0x22a   :  { %3182 = vmatpush1.bf16.msra.mxu1 %v7951_v3 }
 0x22b   :  { %3157 = vmatpush2.bf16.msra.mxu0 %v7915_v43  ;;  %3183 = vmatprep.subr.bf16.mxu1 %v7959_v4  ;;  %v7944_v43 = vld [vmem:[%s10625_s5 + $0x2ac] ss:$16 sps:$4 sm:$0xff]   ;;  %v7978_v4 = vld [vmem:[%s10625_s5 + $0x308] ss:$16 sps:$4 sm:$0xff]  }
 0x22c   :  { %3158 = vmatprep.subr.bf16.mxu0 %v7920_v45  ;;  %v7950_v45 = vld [vmem:[%s10625_s5 + $0x28c] ss:$16 sps:$4 sm:$0xff]  }
 0x22e   :  { %3184 = vmatpush1.bf16.msra.mxu1 %v7957_v5 }
 0x22f   :  { %3159 = vmatpush2.bf16.msra.mxu0 %v7918_v46  ;;  %3185 = vmatprep.subr.bf16.mxu1 %v7965_v6  ;;  %v7948_v46 = vld [vmem:[%s10625_s5 + $0x288] ss:$16 sps:$4 sm:$0xff]  }
 0x230   :  { %3160 = vmatprep.subr.bf16.mxu0 %v7923_v47  ;;  %v7956_v47 = vld [vmem:[%s10625_s5 + $0x26c] ss:$16 sps:$4 sm:$0xff]  }
 0x232   :  { %3186 = vmatpush1.bf16.msra.mxu1 %v7963_v7 }
 0x233   :  { %3161 = vmatpush2.bf16.msra.mxu0 %v7921_v48  ;;  %3187 = vmatprep.subr.bf16.mxu1 %v7971_v12  ;;  %v7954_v48 = vld [vmem:[%s10625_s5 + $0x268] ss:$16 sps:$4 sm:$0xff]  }
 0x234   :  { %3162 = vmatprep.subr.bf16.mxu0 %v7926_v49  ;;  %v7962_v49 = vld [vmem:[%s10625_s5 + $0x24c] ss:$16 sps:$4 sm:$0xff]  }
 0x236   :  { %3188 = vmatpush1.bf16.msra.mxu1 %v7969_v13 }
 0x237   :  { %3163 = vmatpush2.bf16.msra.mxu0 %v7924_v50  ;;  %3203 = vmatprep.subr.bf16.mxu1 %v7977_v14  ;;  %v7960_v50 = vld [vmem:[%s10625_s5 + $0x248] ss:$16 sps:$4 sm:$0xff]  }
 0x238   :  { %3255 = vmatprep.subr.bf16.mxu0 %v7932_v58 }
 0x23a   :  { %3204 = vmatpush2.bf16.msra.mxu1 %v7975_v15 }
 0x23b   :  { %3214 = vmatprep.subr.bf16.mxu1 %v7983_v16 }
 0x250   :  { %v2349_v51 = vpop.f32.mrf.mxu0 }
 0x251   :  { %v2350_v23 = vadd.f32 %v2349_v51, %v1794_v18  ;;  %v7968_v51 = vld [vmem:[%s10625_s5 + $0x22c] ss:$16 sps:$4 sm:$0xff]   ;;  %v7981_v18 = vld [vmem:[%s10625_s5 + $0xe8] ss:$16 sps:$4 sm:$0xff]  }
 0x252   :  { %v2351_v53 = vpop.f32.mrf.mxu0 }
 0x253   :  { %v2352_v26 = vadd.f32 %v2351_v53, %v1798_v22  ;;  %v1802_v53 = vrot.slane %v10053_v17, %v9774_v10 }
 0x254   :  { %v2353_v54 = vpop.f32.mrf.mxu0 }
 0x255   :  { %v7966_v54 = vld [vmem:[%s10625_s5 + $0x228] ss:$16 sps:$4 sm:$0xff]  }
 0x256   :  { %v2354_v55 = vpop.f32.mrf.mxu0 }
 0x257   :  { %v7974_v55 = vld [vmem:[%s10625_s5 + $0x20c] ss:$16 sps:$4 sm:$0xff]  }
 0x299   :  { %v2390_v24 = vpop.f32.mrf.mxu1  ;;  %v2472_v25 = vpop.f32.mrf.mxu0 }
 0x29a   :  { %v2391_v27 = vadd.f32 %v2390_v24, %v2350_v23  ;;  %v7986_v23 = vld [vmem:[%s10625_s5 + $0xcc] ss:$16 sps:$4 sm:$0xff]   ;;  %v7984_v24 = vld [vmem:[%s10625_s5 + $0xc8] ss:$16 sps:$4 sm:$0xff]  }
 0x29b   :  { %v2392_v28 = vpop.f32.mrf.mxu1  ;;  %v2474_v29 = vpop.f32.mrf.mxu0 }
 0x29c   :  { %v6892_v30 = vmul.f32 -1.442695, %v2391_v27  ;;  %v2393_v31 = vadd.f32 %v2392_v28, %v2352_v26  ;;  %v8029_v26 = vld [vmem:[%s10627_s7 + $0xe0] ss:$16 sps:$4 sm:$0xff]   ;;  %v8031_v27 = vld [vmem:[%s10627_s7 + $0xe4] ss:$16 sps:$4 sm:$0xff]  }
 0x29d   :  { %v2394_v32 = vpop.f32.mrf.mxu1  ;;  %v2476_v33 = vpop.f32.mrf.mxu0  ;;  %v7987_v28 = vld [vmem:[%s10625_s5 + $0xa8] ss:$16 sps:$4 sm:$0xff]  }
 0x29e   :  { %8645 = vpow2.f32 %v6892_v30  ;;  %v6893_v9 = vmul.f32 -1.442695, %v2393_v31  ;;  %v7992_v30 = vld [vmem:[%s10625_s5 + $0x8c] ss:$16 sps:$4 sm:$0xff]   ;;  %v8032_v31 = vld [vmem:[%s10627_s7 + $0xc0] ss:$16 sps:$4 sm:$0xff]  }
 0x29f   :  { %v2395_v34 = vpop.f32.mrf.mxu1  ;;  %v2477_v20 = vpop.f32.mrf.mxu0  ;;  %v8037_v32 = vld [vmem:[%s10627_s7 + $0xa4] ss:$16 sps:$4 sm:$0xff]   ;;  %v7990_v33 = vld [vmem:[%s10625_s5 + $0x88] ss:$16 sps:$4 sm:$0xff]  }
 0x2a0   :  { %8647 = vpow2.f32 %v6893_v9  ;;  %v7995_v9 = vld [vmem:[%s10625_s5 + $0x6c] ss:$16 sps:$4 sm:$0xff]   ;;  %v8035_v34 = vld [vmem:[%s10627_s7 + $0xa0] ss:$16 sps:$4 sm:$0xff]   ;;  %v8040_v20 = vld [vmem:[%s10627_s7 + $0x84] ss:$16 sps:$4 sm:$0xff]  }
 0x2ab   :  { %v8646_v21 = vpop.eup %8645 }
 0x2ac   :  { %v2491_v35 = vadd.f32 1.0, %v8646_v21  ;;  %v7993_v21 = vld [vmem:[%s10625_s5 + $0x68] ss:$16 sps:$4 sm:$0xff]  }
 0x2ad   :  { %v8648_v36 = vpop.eup %8647 }
 0x2ae   :  { %v2492_v61 = vadd.f32 1.0, %v8648_v36  ;;  %8649 = vrcp.f32 %v2491_v35  ;;  %v7998_v35 = vld [vmem:[%s10625_s5 + $0x4c] ss:$16 sps:$4 sm:$0xff]   ;;  %v8038_v36 = vld [vmem:[%s10627_s7 + $0x80] ss:$16 sps:$4 sm:$0xff]  }
 0x2b0   :  { %8651 = vrcp.f32 %v2492_v61  ;;  %v8043_v61 = vld [vmem:[%s10627_s7 + $0x64] ss:$16 sps:$4 sm:$0xff]  }
 0x2bb   :  { %v8650_v37 = vpop.eup %8649 }
 0x2bc   :  { %v10064_v40 = vpack.c.bf16 %v8650_v37, %v8650_v37  ;;  %v7996_v37 = vld [vmem:[%s10625_s5 + $0x48] ss:$16 sps:$4 sm:$0xff]  }
 0x2bd   :  { %v8652_v8 = vpop.eup %8651 }
 0x2be   :  { %v10059_v38 = vpack.c.bf16 %v8652_v8, %v8652_v8  ;;  %v8001_v8 = vld [vmem:[%s10625_s5 + $0x2c] ss:$16 sps:$4 sm:$0xff]  }
 0x2c0   :  { %3164 = vmatprep.mubr.bf16.mxu0 %v10059_v38 }
 0x2c1   :  { %3165 = vmatmul.mubr.bf16.vlgmr.msra.gmra.mxu0 %v10064_v40 }
 0x2c2   :  { %3256 = vmatpush1.bf16.msra.mxu0 %v7930_v39  ;;  %v8046_v39 = vld [vmem:[%s10627_s7 + $0x44] ss:$16 sps:$4 sm:$0xff]  }
 0x2c3   :  { %3257 = vmatprep.subr.bf16.mxu0 %v7938_v41  ;;  %v7999_v41 = vld [vmem:[%s10625_s5 + $0x28] ss:$16 sps:$4 sm:$0xff]  }
 0x2c6   :  { %3258 = vmatpush1.bf16.msra.mxu0 %v7936_v42  ;;  %v8004_v42 = vld [vmem:[%s10625_s5 + $0xc] ss:$16 sps:$4 sm:$0xff]  }
 0x2c7   :  { %3259 = vmatprep.subr.bf16.mxu0 %v7944_v43  ;;  %v8044_v43 = vld [vmem:[%s10627_s7 + $0x40] ss:$16 sps:$4 sm:$0xff]  }
 0x2ca   :  { %3260 = vmatpush1.bf16.msra.mxu0 %v7942_v44  ;;  %v8002_v44 = vld [vmem:[%s10625_s5 + $0x8] ss:$16 sps:$4 sm:$0xff]  }
 0x2cb   :  { %3261 = vmatprep.subr.bf16.mxu0 %v7950_v45  ;;  %v8007_v45 = vld [vmem:[%s10625_s5 + $0x1ec] ss:$16 sps:$4 sm:$0xff]  }
 0x2ce   :  { %3262 = vmatpush1.bf16.msra.mxu0 %v7948_v46  ;;  %v8005_v46 = vld [vmem:[%s10625_s5 + $0x1e8] ss:$16 sps:$4 sm:$0xff]  }
 0x2cf   :  { %3263 = vmatprep.subr.bf16.mxu0 %v7956_v47  ;;  %v8010_v47 = vld [vmem:[%s10625_s5 + $0x1cc] ss:$16 sps:$4 sm:$0xff]  }
 0x2d2   :  { %3264 = vmatpush1.bf16.msra.mxu0 %v7954_v48  ;;  %v8008_v48 = vld [vmem:[%s10625_s5 + $0x1c8] ss:$16 sps:$4 sm:$0xff]  }
 0x2d3   :  { %3265 = vmatprep.subr.bf16.mxu0 %v7962_v49  ;;  %v8013_v49 = vld [vmem:[%s10625_s5 + $0x1ac] ss:$16 sps:$4 sm:$0xff]  }
 0x2d6   :  { %3266 = vmatpush1.bf16.msra.mxu0 %v7960_v50  ;;  %v8011_v50 = vld [vmem:[%s10625_s5 + $0x1a8] ss:$16 sps:$4 sm:$0xff]  }
 0x2d7   :  { %3267 = vmatprep.subr.bf16.mxu0 %v7968_v51  ;;  %v8016_v51 = vld [vmem:[%s10625_s5 + $0x18c] ss:$16 sps:$4 sm:$0xff]  }
 0x2d9   :  { %v2431_v57 = vpop.f32.mrf.mxu1 }
 0x2da   :  { %v2432_v58 = vadd.f32 %v2431_v57, %v1802_v53  ;;  %3268 = vmatpush1.bf16.msra.mxu0 %v7966_v54  ;;  %v8014_v53 = vld [vmem:[%s10625_s5 + $0x188] ss:$16 sps:$4 sm:$0xff]   ;;  %v8019_v54 = vld [vmem:[%s10625_s5 + $0x16c] ss:$16 sps:$4 sm:$0xff]  }
 0x2db   :  { %v2433_v60 = vpop.f32.mrf.mxu1  ;;  %3269 = vmatprep.subr.bf16.mxu0 %v7974_v55  ;;  %v8017_v55 = vld [vmem:[%s10625_s5 + $0x168] ss:$16 sps:$4 sm:$0xff]  }
 0x2dc   :  { %v2473_v63 = vadd.f32 %v2472_v25, %v2432_v58  ;;  %v2434_v0 = vadd.f32 %v2433_v60, %v1806_v56  ;;  %v7989_v25 = vld [vmem:[%s10625_s5 + $0xac] ss:$16 sps:$4 sm:$0xff]   ;;  %v8020_v57 = vld [vmem:[%s10625_s5 + $0x148] ss:$16 sps:$4 sm:$0xff]  }
 0x2dd   :  { %v2435_v1 = vpop.f32.mrf.mxu1  ;;  %v8022_v56 = vld [vmem:[%s10625_s5 + $0x14c] ss:$16 sps:$4 sm:$0xff]  }
 0x2de   :  { %v6894_v2 = vmul.f32 -1.442695, %v2473_v63  ;;  %v2475_v3 = vadd.f32 %v2474_v29, %v2434_v0  ;;  %3270 = vmatpush1.bf16.msra.mxu0 %v7972_v59  ;;  %v8034_v29 = vld [vmem:[%s10627_s7 + $0xc4] ss:$16 sps:$4 sm:$0xff]   ;;  %v8025_v58 = vld [vmem:[%s10625_s5 + $0x12c] ss:$16 sps:$4 sm:$0xff]  }
 0x2df   :  { %v2436_v5 = vpop.f32.mrf.mxu1  ;;  %3285 = vmatprep.subr.bf16.mxu0 %v7980_v62  ;;  %v8023_v59 = vld [vmem:[%s10625_s5 + $0x128] ss:$16 sps:$4 sm:$0xff]   ;;  %v8028_v60 = vld [vmem:[%s10625_s5 + $0x10c] ss:$16 sps:$4 sm:$0xff]   ;;  %v8049_v63 = vld [vmem:[%s10627_s7 + $0x24] ss:$16 sps:$4 sm:$0xff]  }
 0x2e0   :  { %8653 = vpow2.f32 %v6894_v2  ;;  %v6895_v6 = vmul.f32 -1.442695, %v2475_v3  ;;  %v8026_v62 = vld [vmem:[%s10625_s5 + $0x108] ss:$16 sps:$4 sm:$0xff]   ;;  %v8047_v0 = vld [vmem:[%s10627_s7 + $0x20] ss:$16 sps:$4 sm:$0xff]  }
 0x2e1   :  { %v8052_v1 = vld [vmem:[%s10627_s7 + $0x4] ss:$16 sps:$4 sm:$0xff]   ;;  %v8050_v2 = vld [vmem:[%s10627_s7] ss:$16 sps:$4 sm:$0xff]  }
 0x2e2   :  { %8655 = vpow2.f32 %v6895_v6  ;;  %3286 = vmatpush2.bf16.msra.mxu0 %v7978_v4  ;;  %v8053_v3 = vld [vmem:[%s10627_s7 + $0x1e0] ss:$16 sps:$4 sm:$0xff]   ;;  %v8058_v4 = vld [vmem:[%s10627_s7 + $0x1c4] ss:$16 sps:$4 sm:$0xff]  }
 0x2e3   :  { %3949 = vmatprep.subr.bf16.mxu0 %v8031_v27  ;;  %v8056_v5 = vld [vmem:[%s10627_s7 + $0x1c0] ss:$16 sps:$4 sm:$0xff]   ;;  %v8061_v6 = vld [vmem:[%s10627_s7 + $0x1a4] ss:$16 sps:$4 sm:$0xff]  }
 0x2ed   :  { %v8654_v7 = vpop.eup %8653 }
 0x2ee   :  { %v2493_v12 = vadd.f32 1.0, %v8654_v7  ;;  %v8059_v7 = vld [vmem:[%s10627_s7 + $0x1a0] ss:$16 sps:$4 sm:$0xff]  }
 0x2ef   :  { %v8656_v13 = vpop.eup %8655 }
 0x2f0   :  { %v2494_v14 = vadd.f32 1.0, %v8656_v13  ;;  %8657 = vrcp.f32 %v2493_v12  ;;  %v8064_v12 = vld [vmem:[%s10627_s7 + $0x184] ss:$16 sps:$4 sm:$0xff]   ;;  %v8062_v13 = vld [vmem:[%s10627_s7 + $0x180] ss:$16 sps:$4 sm:$0xff]  }
 0x2f2   :  { %8659 = vrcp.f32 %v2494_v14  ;;  %v8065_v14 = vld [vmem:[%s10627_s7 + $0x160] ss:$16 sps:$4 sm:$0xff]  }
 0x2fd   :  { %v8658_v15 = vpop.eup %8657 }
 0x2fe   :  { %v2505_v22 = vpack.c.bf16 %v8658_v15, %v8658_v15  ;;  %v8067_v15 = vld [vmem:[%s10627_s7 + $0x164] ss:$16 sps:$4 sm:$0xff]  }
 0x2ff   :  { %v8660_v16 = vpop.eup %8659 }
 0x300   :  { %v2506_v17 = vpack.c.bf16 %v8660_v16, %v8660_v16  ;;  %v8070_v16 = vld [vmem:[%s10627_s7 + $0x144] ss:$16 sps:$4 sm:$0xff]  }
 0x302   :  { %6996 = vmatprep.mubr.msk.bf16.mxu1 %vm2311_vm1, %v2506_v17  ;;  %6997 = vmatprep.mubr.msk.bf16.mxu0 %vm2311_vm1, %v2506_v17  ;;  %v8068_v17 = vld [vmem:[%s10627_s7 + $0x140] ss:$16 sps:$4 sm:$0xff]  }
 0x303   :  { %3206 = vmatmul.mubr.bf16.vlgmr.msra.gmra.mxu1 %v2505_v22  ;;  %3288 = vmatmul.mubr.bf16.vlgmr.msra.gmra.mxu0 %v2505_v22  ;;  %v8071_v22 = vld [vmem:[%s10627_s7 + $0x120] ss:$16 sps:$4 sm:$0xff]  }
 0x304   :  { %3215 = vmatpush1.bf16.msra.mxu1 %v7981_v18  ;;  %3246 = vmatprep.mubr.bf16.mxu1 %v10059_v38  ;;  %v8041_v38 = vld [vmem:[%s10627_s7 + $0x60] ss:$16 sps:$4 sm:$0xff]   ;;  %v8073_v18 = vld [vmem:[%s10627_s7 + $0x124] ss:$16 sps:$4 sm:$0xff]  }
 0x305   :  { %3216 = vmatprep.subr.bf16.mxu1 %v7986_v23  ;;  %3950 = vmatpush1.bf16.msra.mxu0 %v8029_v26  ;;  %v8076_v23 = vld [vmem:[%s10627_s7 + $0x104] ss:$16 sps:$4 sm:$0xff]  }
 0x306   :  { %3951 = vmatprep.subr.bf16.mxu0 %v8034_v29 }
 0x308   :  { %3217 = vmatpush1.bf16.msra.mxu1 %v7984_v24  ;;  %v8074_v24 = vld [vmem:[%s10627_s7 + $0x100] ss:$16 sps:$4 sm:$0xff]  }
 0x309   :  { %3218 = vmatprep.subr.bf16.mxu1 %v7989_v25  ;;  %3952 = vmatpush1.bf16.msra.mxu0 %v8032_v31  ;;  %v8082_v31 = vld [vmem:[%s10627_s7 + $0x2ec] ss:$16 sps:$4 sm:$0xff]  }
 0x30a   :  { %3953 = vmatprep.subr.bf16.mxu0 %v8037_v32  ;;  %v8085_v32 = vld [vmem:[%s10627_s7 + $0x2c4] ss:$16 sps:$4 sm:$0xff]  }
 0x30c   :  { %3219 = vmatpush1.bf16.msra.mxu1 %v7987_v28  ;;  %v8079_v28 = vld [vmem:[%s10627_s7 + $0x2e4] ss:$16 sps:$4 sm:$0xff]  }
 0x30d   :  { %3220 = vmatprep.subr.bf16.mxu1 %v7992_v30  ;;  %3954 = vmatpush1.bf16.msra.mxu0 %v8035_v34  ;;  %v8077_v30 = vld [vmem:[%s10627_s7 + $0x2e0] ss:$16 sps:$4 sm:$0xff]  }
 0x30e   :  { %3955 = vmatprep.subr.bf16.mxu0 %v8040_v20  ;;  %v8089_v34 = vld [vmem:[%s10627_s7 + $0x2a0] ss:$16 sps:$4 sm:$0xff]   ;;  %v8097_v20 = vld [vmem:[%s10627_s7 + $0x284] ss:$16 sps:$4 sm:$0xff]  }
 0x310   :  { %3221 = vmatpush1.bf16.msra.mxu1 %v7990_v33  ;;  %v8083_v33 = vld [vmem:[%s10627_s7 + $0x2c0] ss:$16 sps:$4 sm:$0xff]  }
 0x311   :  { %3222 = vmatprep.subr.bf16.mxu1 %v7995_v9  ;;  %3956 = vmatpush1.bf16.msra.mxu0 %v8038_v36  ;;  %v8091_v9 = vld [vmem:[%s10627_s7 + $0x2a4] ss:$16 sps:$4 sm:$0xff]   ;;  %v8101_v36 = vld [vmem:[%s10627_s7 + $0x260] ss:$16 sps:$4 sm:$0xff]  }
 0x312   :  { %3957 = vmatprep.subr.bf16.mxu0 %v8043_v61  ;;  %v8109_v61 = vld [vmem:[%s10627_s7 + $0x244] ss:$16 sps:$4 sm:$0xff]  }
 0x314   :  { %3223 = vmatpush1.bf16.msra.mxu1 %v7993_v21  ;;  %v8095_v21 = vld [vmem:[%s10627_s7 + $0x280] ss:$16 sps:$4 sm:$0xff]  }
 0x315   :  { %3224 = vmatprep.subr.bf16.mxu1 %v7998_v35  ;;  %3958 = vmatpush1.bf16.msra.mxu0 %v8041_v38  ;;  %v8103_v35 = vld [vmem:[%s10627_s7 + $0x264] ss:$16 sps:$4 sm:$0xff]   ;;  %v8113_v38 = vld [vmem:[%s10627_s7 + $0x220] ss:$16 sps:$4 sm:$0xff]  }
 0x316   :  { %3959 = vmatprep.subr.bf16.mxu0 %v8046_v39  ;;  %v8121_v39 = vld [vmem:[%s10627_s7 + $0x204] ss:$16 sps:$4 sm:$0xff]  }
 0x318   :  { %3225 = vmatpush1.bf16.msra.mxu1 %v7996_v37  ;;  %v8107_v37 = vld [vmem:[%s10627_s7 + $0x240] ss:$16 sps:$4 sm:$0xff]  }
 0x319   :  { %3226 = vmatprep.subr.bf16.mxu1 %v8001_v8  ;;  %3960 = vmatpush1.bf16.msra.mxu0 %v8044_v43  ;;  %v8115_v8 = vld [vmem:[%s10627_s7 + $0x224] ss:$16 sps:$4 sm:$0xff]   ;;  %v8125_v43 = vld [vmem:[%s10627_s7 + $0x300] ss:$16 sps:$4 sm:$0xff]  }
 0x31a   :  { %3961 = vmatprep.subr.bf16.mxu0 %v8049_v63 }
 0x31c   :  { %3227 = vmatpush1.bf16.msra.mxu1 %v7999_v41  ;;  %v8119_v41 = vld [vmem:[%s10627_s7 + $0x200] ss:$16 sps:$4 sm:$0xff]  }
 0x31d   :  { %3228 = vmatprep.subr.bf16.mxu1 %v8004_v42  ;;  %3962 = vmatpush1.bf16.msra.mxu0 %v8047_v0  ;;  %v8127_v42 = vld [vmem:[%s10627_s7 + $0x304] ss:$16 sps:$4 sm:$0xff]  }
 0x31e   :  { %3963 = vmatprep.subr.bf16.mxu0 %v8052_v1 }
 0x320   :  { %3229 = vmatpush1.bf16.msra.mxu1 %v8002_v44  ;;  %v8133_v44 = vld [vmem:[%s10627_s7 + $0xec] ss:$16 sps:$4 sm:$0xff]  }
 0x321   :  { %3230 = vmatprep.subr.bf16.mxu1 %v8007_v45  ;;  %3964 = vmatpush1.bf16.msra.mxu0 %v8050_v2  ;;  %v10376_v45 = vld [vmem:[%s10626_s6] sm:$0xf] }
 0x324   :  { %3231 = vmatpush2.bf16.msra.mxu1 %v8005_v46  ;;  %v2612_v46 = vrot.slane %v10376_v45, %v9723_v19 }
 0x325   :  { %3232 = vmatprep.subr.bf16.mxu1 %v8010_v47  ;;  %v2616_v47 = vrot.slane %v10376_v45, %v9725_v52 }
 0x328   :  { %3233 = vmatpush2.bf16.msra.mxu1 %v8008_v48 }
 0x329   :  { %3234 = vmatprep.subr.bf16.mxu1 %v8013_v49 }
 0x32c   :  { %3235 = vmatpush2.bf16.msra.mxu1 %v8011_v50 }
 0x32d   :  { %3236 = vmatprep.subr.bf16.mxu1 %v8016_v51 }
 0x330   :  { %3237 = vmatpush2.bf16.msra.mxu1 %v8014_v53 }
 0x331   :  { %3238 = vmatprep.subr.bf16.mxu1 %v8019_v54 }
 0x334   :  { %3239 = vmatpush2.bf16.msra.mxu1 %v8017_v55 }
 0x335   :  { %3240 = vmatprep.subr.bf16.mxu1 %v8022_v56 }
 0x338   :  { %3241 = vmatpush2.bf16.msra.mxu1 %v8020_v57 }
 0x339   :  { %3242 = vmatprep.subr.bf16.mxu1 %v8025_v58 }
 0x33c   :  { %3243 = vmatpush2.bf16.msra.mxu1 %v8023_v59 }
 0x33d   :  { %3244 = vmatprep.subr.bf16.mxu1 %v8028_v60 }
 0x340   :  { %3245 = vmatpush2.bf16.msra.mxu1 %v8026_v62 }
 0x341   :  { %3990 = vmatprep.subr.bf16.mxu1 %v8079_v28  ;;  %v8124_v28 = vld [vmem:[%s10627_s7 + $0x20c] ss:$16 sps:$4 sm:$0xff]  }
 0x343   :  { %3247 = vmatmul.mubr.bf16.vlgmr.msra.gmra.mxu1 %v10064_v40  ;;  %v8055_v40 = vld [vmem:[%s10627_s7 + $0x1e4] ss:$16 sps:$4 sm:$0xff]  }
 0x344   :  { %3965 = vmatprep.subr.bf16.mxu0 %v8055_v40  ;;  %3991 = vmatpush1.bf16.msra.mxu1 %v8077_v30 }
 0x345   :  { %3966 = vmatpush2.bf16.msra.mxu0 %v8053_v3  ;;  %3992 = vmatprep.subr.bf16.mxu1 %v8085_v32  ;;  %v8122_v32 = vld [vmem:[%s10627_s7 + $0x208] ss:$16 sps:$4 sm:$0xff]  }
 0x346   :  { %3967 = vmatprep.subr.bf16.mxu0 %v8058_v4 }
 0x348   :  { %3993 = vmatpush1.bf16.msra.mxu1 %v8083_v33 }
 0x349   :  { %3968 = vmatpush2.bf16.msra.mxu0 %v8056_v5  ;;  %3994 = vmatprep.subr.bf16.mxu1 %v8091_v9  ;;  %v8130_v9 = vld [vmem:[%s10627_s7 + $0x30c] ss:$16 sps:$4 sm:$0xff]  }
 0x34a   :  { %3969 = vmatprep.subr.bf16.mxu0 %v8061_v6  ;;  %v8080_v6 = vld [vmem:[%s10627_s7 + $0x2e8] ss:$16 sps:$4 sm:$0xff]  }
 0x34c   :  { %3995 = vmatpush1.bf16.msra.mxu1 %v8089_v34 }
 0x34d   :  { %3970 = vmatpush2.bf16.msra.mxu0 %v8059_v7  ;;  %3996 = vmatprep.subr.bf16.mxu1 %v8097_v20 }
 0x34e   :  { %3971 = vmatprep.subr.bf16.mxu0 %v8064_v12  ;;  %v8088_v12 = vld [vmem:[%s10627_s7 + $0x2cc] ss:$16 sps:$4 sm:$0xff]  }
 0x350   :  { %3997 = vmatpush1.bf16.msra.mxu1 %v8095_v21 }
 0x351   :  { %3972 = vmatpush2.bf16.msra.mxu0 %v8062_v13  ;;  %3998 = vmatprep.subr.bf16.mxu1 %v8103_v35  ;;  %v8086_v13 = vld [vmem:[%s10627_s7 + $0x2c8] ss:$16 sps:$4 sm:$0xff]  }
 0x352   :  { %3973 = vmatprep.subr.bf16.mxu0 %v8067_v15  ;;  %v8092_v15 = vld [vmem:[%s10627_s7 + $0x2a8] ss:$16 sps:$4 sm:$0xff]  }
 0x354   :  { %3999 = vmatpush1.bf16.msra.mxu1 %v8101_v36 }
 0x355   :  { %3974 = vmatpush2.bf16.msra.mxu0 %v8065_v14  ;;  %4000 = vmatprep.subr.bf16.mxu1 %v8109_v61  ;;  %v8094_v14 = vld [vmem:[%s10627_s7 + $0x2ac] ss:$16 sps:$4 sm:$0xff]   ;;  %v8128_v61 = vld [vmem:[%s10627_s7 + $0x308] ss:$16 sps:$4 sm:$0xff]  }
 0x356   :  { %3975 = vmatprep.subr.bf16.mxu0 %v8070_v16  ;;  %v8100_v16 = vld [vmem:[%s10627_s7 + $0x28c] ss:$16 sps:$4 sm:$0xff]  }
 0x358   :  { %4001 = vmatpush1.bf16.msra.mxu1 %v8107_v37 }
 0x359   :  { %3976 = vmatpush2.bf16.msra.mxu0 %v8068_v17  ;;  %4002 = vmatprep.subr.bf16.mxu1 %v8115_v8  ;;  %v8098_v17 = vld [vmem:[%s10627_s7 + $0x288] ss:$16 sps:$4 sm:$0xff]  }
 0x35a   :  { %3977 = vmatprep.subr.bf16.mxu0 %v8073_v18  ;;  %v8106_v18 = vld [vmem:[%s10627_s7 + $0x26c] ss:$16 sps:$4 sm:$0xff]  }
 0x35c   :  { %4003 = vmatpush1.bf16.msra.mxu1 %v8113_v38 }
 0x35d   :  { %3978 = vmatpush2.bf16.msra.mxu0 %v8071_v22  ;;  %4004 = vmatprep.subr.bf16.mxu1 %v8121_v39  ;;  %v8104_v22 = vld [vmem:[%s10627_s7 + $0x268] ss:$16 sps:$4 sm:$0xff]  }
 0x35e   :  { %3979 = vmatprep.subr.bf16.mxu0 %v8076_v23  ;;  %v8112_v23 = vld [vmem:[%s10627_s7 + $0x24c] ss:$16 sps:$4 sm:$0xff]  }
 0x360   :  { %4005 = vmatpush1.bf16.msra.mxu1 %v8119_v41 }
 0x361   :  { %3980 = vmatpush2.bf16.msra.mxu0 %v8074_v24  ;;  %4020 = vmatprep.subr.bf16.mxu1 %v8127_v42  ;;  %v8110_v24 = vld [vmem:[%s10627_s7 + $0x248] ss:$16 sps:$4 sm:$0xff]  }
 0x362   :  { %4072 = vmatprep.subr.bf16.mxu0 %v8082_v31 }
 0x364   :  { %4021 = vmatpush2.bf16.msra.mxu1 %v8125_v43 }
 0x365   :  { %4031 = vmatprep.subr.bf16.mxu1 %v8133_v44 }
 0x381   :  { %v3166_v25 = vpop.f32.mrf.mxu0 }
 0x382   :  { %v3167_v48 = vadd.f32 %v3166_v25, %v2612_v46  ;;  %v8118_v25 = vld [vmem:[%s10627_s7 + $0x22c] ss:$16 sps:$4 sm:$0xff]   ;;  %v8131_v46 = vld [vmem:[%s10627_s7 + $0xe8] ss:$16 sps:$4 sm:$0xff]  }
 0x383   :  { %v3168_v26 = vpop.f32.mrf.mxu0 }
 0x384   :  { %v3169_v51 = vadd.f32 %v3168_v26, %v2616_v47  ;;  %v2620_v26 = vrot.slane %v10376_v45, %v9774_v10 }
 0x385   :  { %v3170_v27 = vpop.f32.mrf.mxu0 }
 0x386   :  { %v8116_v27 = vld [vmem:[%s10627_s7 + $0x228] ss:$16 sps:$4 sm:$0xff]  }
 0x387   :  { %v3171_v29 = vpop.f32.mrf.mxu0 }
 0x388   :  { %v2624_v29 = vrot.slane %v10376_v45, %v9776_v11 }
 0x3c3   :  { %v3207_v49 = vpop.f32.mrf.mxu1  ;;  %v3289_v50 = vpop.f32.mrf.mxu0 }
 0x3c4   :  { %v3208_v53 = vadd.f32 %v3207_v49, %v3167_v48  ;;  %v8136_v48 = vld [vmem:[%s10627_s7 + $0xcc] ss:$16 sps:$4 sm:$0xff]   ;;  %v8134_v49 = vld [vmem:[%s10627_s7 + $0xc8] ss:$16 sps:$4 sm:$0xff]  }
 0x3c5   :  { %v3209_v54 = vpop.f32.mrf.mxu1  ;;  %v3291_v55 = vpop.f32.mrf.mxu0 }
 0x3c6   :  { %v6998_v56 = vmul.f32 -1.442695, %v3208_v53  ;;  %v3210_v57 = vadd.f32 %v3209_v54, %v3169_v51  ;;  %v8179_v51 = vld [vmem:[#allocation2 + $0xe0] ss:$16 sps:$4 sm:$0xff]   ;;  %v8181_v53 = vld [vmem:[#allocation2 + $0xe4] ss:$16 sps:$4 sm:$0xff]  }
 0x3c7   :  { %v3211_v58 = vpop.f32.mrf.mxu1  ;;  %v3293_v59 = vpop.f32.mrf.mxu0  ;;  %v8137_v54 = vld [vmem:[%s10627_s7 + $0xa8] ss:$16 sps:$4 sm:$0xff]  }
 0x3c8   :  { %8661 = vpow2.f32 %v6998_v56  ;;  %v6999_v60 = vmul.f32 -1.442695, %v3210_v57  ;;  %v8142_v56 = vld [vmem:[%s10627_s7 + $0x8c] ss:$16 sps:$4 sm:$0xff]   ;;  %v8182_v57 = vld [vmem:[#allocation2 + $0xc0] ss:$16 sps:$4 sm:$0xff]  }
 0x3c9   :  { %v3212_v62 = vpop.f32.mrf.mxu1  ;;  %v3294_v63 = vpop.f32.mrf.mxu0  ;;  %v8187_v58 = vld [vmem:[#allocation2 + $0xa4] ss:$16 sps:$4 sm:$0xff]   ;;  %v8140_v59 = vld [vmem:[%s10627_s7 + $0x88] ss:$16 sps:$4 sm:$0xff]  }
 0x3ca   :  { %8663 = vpow2.f32 %v6999_v60  ;;  %v8145_v60 = vld [vmem:[%s10627_s7 + $0x6c] ss:$16 sps:$4 sm:$0xff]   ;;  %v8185_v62 = vld [vmem:[#allocation2 + $0xa0] ss:$16 sps:$4 sm:$0xff]   ;;  %v8190_v63 = vld [vmem:[#allocation2 + $0x84] ss:$16 sps:$4 sm:$0xff]  }
 0x3d5   :  { %v8662_v0 = vpop.eup %8661 }
 0x3d6   :  { %v3308_v1 = vadd.f32 1.0, %v8662_v0  ;;  %v8143_v0 = vld [vmem:[%s10627_s7 + $0x68] ss:$16 sps:$4 sm:$0xff]  }
 0x3d7   :  { %v8664_v2 = vpop.eup %8663 }
 0x3d8   :  { %v3309_v40 = vadd.f32 1.0, %v8664_v2  ;;  %8665 = vrcp.f32 %v3308_v1  ;;  %v8148_v1 = vld [vmem:[%s10627_s7 + $0x4c] ss:$16 sps:$4 sm:$0xff]   ;;  %v8188_v2 = vld [vmem:[#allocation2 + $0x80] ss:$16 sps:$4 sm:$0xff]  }
 0x3da   :  { %8667 = vrcp.f32 %v3309_v40  ;;  %v8193_v40 = vld [vmem:[#allocation2 + $0x64] ss:$16 sps:$4 sm:$0xff]  }
 0x3e5   :  { %v8666_v3 = vpop.eup %8665 }
 0x3e6   :  { %v10387_v7 = vpack.c.bf16 %v8666_v3, %v8666_v3  ;;  %v8146_v3 = vld [vmem:[%s10627_s7 + $0x48] ss:$16 sps:$4 sm:$0xff]  }
 0x3e7   :  { %v8668_v4 = vpop.eup %8667 }
 0x3e8   :  { %v10382_v5 = vpack.c.bf16 %v8668_v4, %v8668_v4  ;;  %v8151_v4 = vld [vmem:[%s10627_s7 + $0x2c] ss:$16 sps:$4 sm:$0xff]  }
 0x3ea   :  { %3981 = vmatprep.mubr.bf16.mxu0 %v10382_v5 }
 0x3eb   :  { %3982 = vmatmul.mubr.bf16.vlgmr.msra.gmra.mxu0 %v10387_v7 }
 0x3ec   :  { %4073 = vmatpush1.bf16.msra.mxu0 %v8080_v6  ;;  %v8196_v6 = vld [vmem:[#allocation2 + $0x44] ss:$16 sps:$4 sm:$0xff]  }
 0x3ed   :  { %4074 = vmatprep.subr.bf16.mxu0 %v8088_v12  ;;  %v8149_v12 = vld [vmem:[%s10627_s7 + $0x28] ss:$16 sps:$4 sm:$0xff]  }
 0x3f0   :  { %4075 = vmatpush1.bf16.msra.mxu0 %v8086_v13  ;;  %v8154_v13 = vld [vmem:[%s10627_s7 + $0xc] ss:$16 sps:$4 sm:$0xff]  }
 0x3f1   :  { %4076 = vmatprep.subr.bf16.mxu0 %v8094_v14  ;;  %v8194_v14 = vld [vmem:[#allocation2 + $0x40] ss:$16 sps:$4 sm:$0xff]  }
 0x3f4   :  { %4077 = vmatpush1.bf16.msra.mxu0 %v8092_v15  ;;  %v8152_v15 = vld [vmem:[%s10627_s7 + $0x8] ss:$16 sps:$4 sm:$0xff]  }
 0x3f5   :  { %4078 = vmatprep.subr.bf16.mxu0 %v8100_v16  ;;  %v8157_v16 = vld [vmem:[%s10627_s7 + $0x1ec] ss:$16 sps:$4 sm:$0xff]  }
 0x3f8   :  { %4079 = vmatpush1.bf16.msra.mxu0 %v8098_v17  ;;  %v8155_v17 = vld [vmem:[%s10627_s7 + $0x1e8] ss:$16 sps:$4 sm:$0xff]  }
 0x3f9   :  { %4080 = vmatprep.subr.bf16.mxu0 %v8106_v18  ;;  %v8160_v18 = vld [vmem:[%s10627_s7 + $0x1cc] ss:$16 sps:$4 sm:$0xff]  }
 0x3fc   :  { %4081 = vmatpush1.bf16.msra.mxu0 %v8104_v22  ;;  %v8158_v22 = vld [vmem:[%s10627_s7 + $0x1c8] ss:$16 sps:$4 sm:$0xff]  }
 0x3fd   :  { %4082 = vmatprep.subr.bf16.mxu0 %v8112_v23  ;;  %v8163_v23 = vld [vmem:[%s10627_s7 + $0x1ac] ss:$16 sps:$4 sm:$0xff]  }
 0x400   :  { %4083 = vmatpush1.bf16.msra.mxu0 %v8110_v24  ;;  %v8161_v24 = vld [vmem:[%s10627_s7 + $0x1a8] ss:$16 sps:$4 sm:$0xff]  }
 0x401   :  { %4084 = vmatprep.subr.bf16.mxu0 %v8118_v25  ;;  %v8166_v25 = vld [vmem:[%s10627_s7 + $0x18c] ss:$16 sps:$4 sm:$0xff]  }
 0x403   :  { %v3248_v30 = vpop.f32.mrf.mxu1 }
 0x404   :  { %v3249_v31 = vadd.f32 %v3248_v30, %v2620_v26  ;;  %4085 = vmatpush1.bf16.msra.mxu0 %v8116_v27  ;;  %v8164_v26 = vld [vmem:[%s10627_s7 + $0x188] ss:$16 sps:$4 sm:$0xff]   ;;  %v8169_v27 = vld [vmem:[%s10627_s7 + $0x16c] ss:$16 sps:$4 sm:$0xff]  }
 0x405   :  { %v3250_v33 = vpop.f32.mrf.mxu1  ;;  %4086 = vmatprep.subr.bf16.mxu0 %v8124_v28  ;;  %v8167_v28 = vld [vmem:[%s10627_s7 + $0x168] ss:$16 sps:$4 sm:$0xff]  }
 0x406   :  { %v3290_v34 = vadd.f32 %v3289_v50, %v3249_v31  ;;  %v3251_v20 = vadd.f32 %v3250_v33, %v2624_v29  ;;  %v8139_v50 = vld [vmem:[%s10627_s7 + $0xac] ss:$16 sps:$4 sm:$0xff]   ;;  %v8170_v30 = vld [vmem:[%s10627_s7 + $0x148] ss:$16 sps:$4 sm:$0xff]  }
 0x407   :  { %v3252_v21 = vpop.f32.mrf.mxu1  ;;  %v8172_v29 = vld [vmem:[%s10627_s7 + $0x14c] ss:$16 sps:$4 sm:$0xff]  }
 0x408   :  { %v7000_v35 = vmul.f32 -1.442695, %v3290_v34  ;;  %v3292_v36 = vadd.f32 %v3291_v55, %v3251_v20  ;;  %4087 = vmatpush1.bf16.msra.mxu0 %v8122_v32  ;;  %v8184_v55 = vld [vmem:[#allocation2 + $0xc4] ss:$16 sps:$4 sm:$0xff]   ;;  %v8175_v31 = vld [vmem:[%s10627_s7 + $0x12c] ss:$16 sps:$4 sm:$0xff]  }
 0x409   :  { %v3253_v37 = vpop.f32.mrf.mxu1  ;;  %4102 = vmatprep.subr.bf16.mxu0 %v8130_v9  ;;  %v8173_v32 = vld [vmem:[%s10627_s7 + $0x128] ss:$16 sps:$4 sm:$0xff]   ;;  %v8178_v33 = vld [vmem:[%s10627_s7 + $0x10c] ss:$16 sps:$4 sm:$0xff]   ;;  %v8199_v34 = vld [vmem:[#allocation2 + $0x24] ss:$16 sps:$4 sm:$0xff]  }
 0x40a   :  { %8669 = vpow2.f32 %v7000_v35  ;;  %v7001_v8 = vmul.f32 -1.442695, %v3292_v36  ;;  %v8176_v9 = vld [vmem:[%s10627_s7 + $0x108] ss:$16 sps:$4 sm:$0xff]   ;;  %v8197_v20 = vld [vmem:[#allocation2 + $0x20] ss:$16 sps:$4 sm:$0xff]  }
 0x40b   :  { %v8202_v21 = vld [vmem:[#allocation2 + $0x4] ss:$16 sps:$4 sm:$0xff]   ;;  %v8200_v35 = vld [vmem:[#allocation2] ss:$16 sps:$4 sm:$0xff]  }
 0x40c   :  { %8671 = vpow2.f32 %v7001_v8  ;;  %4103 = vmatpush2.bf16.msra.mxu0 %v8128_v61  ;;  %v8205_v36 = vld [vmem:[#allocation2 + $0x1e4] ss:$16 sps:$4 sm:$0xff]   ;;  %v8203_v61 = vld [vmem:[#allocation2 + $0x1e0] ss:$16 sps:$4 sm:$0xff]  }
 0x40d   :  { %4766 = vmatprep.subr.bf16.mxu0 %v8181_v53  ;;  %v8208_v37 = vld [vmem:[#allocation2 + $0x1c4] ss:$16 sps:$4 sm:$0xff]   ;;  %v8206_v8 = vld [vmem:[#allocation2 + $0x1c0] ss:$16 sps:$4 sm:$0xff]  }
 0x417   :  { %v8670_v38 = vpop.eup %8669 }
 0x418   :  { %v3310_v39 = vadd.f32 1.0, %v8670_v38  ;;  %v8211_v38 = vld [vmem:[#allocation2 + $0x1a4] ss:$16 sps:$4 sm:$0xff]  }
 0x419   :  { %v8672_v41 = vpop.eup %8671 }
 0x41a   :  { %v3311_v42 = vadd.f32 1.0, %v8672_v41  ;;  %8673 = vrcp.f32 %v3310_v39  ;;  %v8209_v39 = vld [vmem:[#allocation2 + $0x1a0] ss:$16 sps:$4 sm:$0xff]  }
 0x41b   :  { %v8212_v41 = vld [vmem:[#allocation2 + $0x180] ss:$16 sps:$4 sm:$0xff]  }
 0x41c   :  { %8675 = vrcp.f32 %v3311_v42  ;;  %v8215_v42 = vld [vmem:[#allocation2 + $0x160] ss:$16 sps:$4 sm:$0xff]  }
 0x427   :  { %v8674_v43 = vpop.eup %8673 }
 0x428   :  { %v3322_v47 = vpack.c.bf16 %v8674_v43, %v8674_v43  ;;  %v8217_v43 = vld [vmem:[#allocation2 + $0x164] ss:$16 sps:$4 sm:$0xff]  }
 0x429   :  { %v8676_v44 = vpop.eup %8675 }
 0x42a   :  { %v3323_v45 = vpack.c.bf16 %v8676_v44, %v8676_v44  ;;  %v8220_v44 = vld [vmem:[#allocation2 + $0x144] ss:$16 sps:$4 sm:$0xff]  }
 0x42c   :  { %7102 = vmatprep.mubr.msk.bf16.mxu1 %vm2311_vm1, %v3323_v45  ;;  %7103 = vmatprep.mubr.msk.bf16.mxu0 %vm2311_vm1, %v3323_v45  ;;  %v8218_v45 = vld [vmem:[#allocation2 + $0x140] ss:$16 sps:$4 sm:$0xff]  }
 0x42d   :  { %4023 = vmatmul.mubr.bf16.vlgmr.msra.gmra.mxu1 %v3322_v47  ;;  %4105 = vmatmul.mubr.bf16.vlgmr.msra.gmra.mxu0 %v3322_v47  ;;  %v8221_v47 = vld [vmem:[#allocation2 + $0x120] ss:$16 sps:$4 sm:$0xff]  }
 0x42e   :  { %4032 = vmatpush1.bf16.msra.mxu1 %v8131_v46  ;;  %4063 = vmatprep.mubr.bf16.mxu1 %v10382_v5  ;;  %v8191_v5 = vld [vmem:[#allocation2 + $0x60] ss:$16 sps:$4 sm:$0xff]   ;;  %v8223_v46 = vld [vmem:[#allocation2 + $0x124] ss:$16 sps:$4 sm:$0xff]  }
 0x42f   :  { %4033 = vmatprep.subr.bf16.mxu1 %v8136_v48  ;;  %4767 = vmatpush1.bf16.msra.mxu0 %v8179_v51  ;;  %v8226_v48 = vld [vmem:[#allocation2 + $0x104] ss:$16 sps:$4 sm:$0xff]  }
 0x430   :  { %4768 = vmatprep.subr.bf16.mxu0 %v8184_v55 }
 0x432   :  { %4034 = vmatpush1.bf16.msra.mxu1 %v8134_v49  ;;  %v8224_v49 = vld [vmem:[#allocation2 + $0x100] ss:$16 sps:$4 sm:$0xff]  }
 0x433   :  { %4035 = vmatprep.subr.bf16.mxu1 %v8139_v50  ;;  %4769 = vmatpush1.bf16.msra.mxu0 %v8182_v57  ;;  %v8232_v57 = vld [vmem:[#allocation2 + $0x2ec] ss:$16 sps:$4 sm:$0xff]  }
 0x434   :  { %4770 = vmatprep.subr.bf16.mxu0 %v8187_v58  ;;  %v8235_v58 = vld [vmem:[#allocation2 + $0x2c4] ss:$16 sps:$4 sm:$0xff]  }
 0x436   :  { %4036 = vmatpush1.bf16.msra.mxu1 %v8137_v54  ;;  %v8229_v54 = vld [vmem:[#allocation2 + $0x2e4] ss:$16 sps:$4 sm:$0xff]  }
 0x437   :  { %4037 = vmatprep.subr.bf16.mxu1 %v8142_v56  ;;  %4771 = vmatpush1.bf16.msra.mxu0 %v8185_v62  ;;  %v8227_v56 = vld [vmem:[#allocation2 + $0x2e0] ss:$16 sps:$4 sm:$0xff]  }
 0x438   :  { %4772 = vmatprep.subr.bf16.mxu0 %v8190_v63  ;;  %v8239_v62 = vld [vmem:[#allocation2 + $0x2a0] ss:$16 sps:$4 sm:$0xff]   ;;  %v8247_v63 = vld [vmem:[#allocation2 + $0x284] ss:$16 sps:$4 sm:$0xff]  }
 0x43a   :  { %4038 = vmatpush1.bf16.msra.mxu1 %v8140_v59  ;;  %v8233_v59 = vld [vmem:[#allocation2 + $0x2c0] ss:$16 sps:$4 sm:$0xff]  }
 0x43b   :  { %4039 = vmatprep.subr.bf16.mxu1 %v8145_v60  ;;  %4773 = vmatpush1.bf16.msra.mxu0 %v8188_v2  ;;  %v8241_v60 = vld [vmem:[#allocation2 + $0x2a4] ss:$16 sps:$4 sm:$0xff]   ;;  %v8251_v2 = vld [vmem:[#allocation2 + $0x260] ss:$16 sps:$4 sm:$0xff]  }
 0x43c   :  { %4774 = vmatprep.subr.bf16.mxu0 %v8193_v40  ;;  %v8259_v40 = vld [vmem:[#allocation2 + $0x244] ss:$16 sps:$4 sm:$0xff]  }
 0x43e   :  { %4040 = vmatpush1.bf16.msra.mxu1 %v8143_v0  ;;  %v8245_v0 = vld [vmem:[#allocation2 + $0x280] ss:$16 sps:$4 sm:$0xff]  }
 0x43f   :  { %4041 = vmatprep.subr.bf16.mxu1 %v8148_v1  ;;  %4775 = vmatpush1.bf16.msra.mxu0 %v8191_v5  ;;  %v8253_v1 = vld [vmem:[#allocation2 + $0x264] ss:$16 sps:$4 sm:$0xff]   ;;  %v8263_v5 = vld [vmem:[#allocation2 + $0x220] ss:$16 sps:$4 sm:$0xff]  }
 0x440   :  { %4776 = vmatprep.subr.bf16.mxu0 %v8196_v6  ;;  %v8271_v6 = vld [vmem:[#allocation2 + $0x204] ss:$16 sps:$4 sm:$0xff]  }
 0x442   :  { %4042 = vmatpush1.bf16.msra.mxu1 %v8146_v3  ;;  %v8257_v3 = vld [vmem:[#allocation2 + $0x240] ss:$16 sps:$4 sm:$0xff]  }
 0x443   :  { %4043 = vmatprep.subr.bf16.mxu1 %v8151_v4  ;;  %4777 = vmatpush1.bf16.msra.mxu0 %v8194_v14  ;;  %v8265_v4 = vld [vmem:[#allocation2 + $0x224] ss:$16 sps:$4 sm:$0xff]   ;;  %v8275_v14 = vld [vmem:[#allocation2 + $0x300] ss:$16 sps:$4 sm:$0xff]  }
 0x444   :  { %4778 = vmatprep.subr.bf16.mxu0 %v8199_v34 }
 0x446   :  { %4044 = vmatpush1.bf16.msra.mxu1 %v8149_v12  ;;  %v8269_v12 = vld [vmem:[#allocation2 + $0x200] ss:$16 sps:$4 sm:$0xff]  }
 0x447   :  { %4045 = vmatprep.subr.bf16.mxu1 %v8154_v13  ;;  %4779 = vmatpush1.bf16.msra.mxu0 %v8197_v20  ;;  %v8277_v13 = vld [vmem:[#allocation2 + $0x304] ss:$16 sps:$4 sm:$0xff]  }
 0x448   :  { %4780 = vmatprep.subr.bf16.mxu0 %v8202_v21 }
 0x44a   :  { %4046 = vmatpush1.bf16.msra.mxu1 %v8152_v15  ;;  %v8283_v15 = vld [vmem:[#allocation2 + $0xec] ss:$16 sps:$4 sm:$0xff]  }
 0x44b   :  { %4047 = vmatprep.subr.bf16.mxu1 %v8157_v16  ;;  %4781 = vmatpush1.bf16.msra.mxu0 %v8200_v35  ;;  %v10543_v16 = vld [vmem:[%s10628_s8] sm:$0xf] }
 0x44c   :  { %4782 = vmatprep.subr.bf16.mxu0 %v8205_v36 }
 0x44e   :  { %4048 = vmatpush2.bf16.msra.mxu1 %v8155_v17  ;;  %v3429_v17 = vrot.slane %v10543_v16, %v9723_v19 }
 0x44f   :  { %4049 = vmatprep.subr.bf16.mxu1 %v8160_v18  ;;  %4783 = vmatpush2.bf16.msra.mxu0 %v8203_v61  ;;  %v3433_v18 = vrot.slane %v10543_v16, %v9725_v52 }
 0x450   :  { %4784 = vmatprep.subr.bf16.mxu0 %v8208_v37 }
 0x452   :  { %4050 = vmatpush2.bf16.msra.mxu1 %v8158_v22 }
 0x453   :  { %4051 = vmatprep.subr.bf16.mxu1 %v8163_v23  ;;  %4785 = vmatpush2.bf16.msra.mxu0 %v8206_v8 }
 0x454   :  { %4786 = vmatprep.subr.bf16.mxu0 %v8211_v38  ;;  %v8230_v38 = vld [vmem:[#allocation2 + $0x2e8] ss:$16 sps:$4 sm:$0xff]  }
 0x456   :  { %4052 = vmatpush2.bf16.msra.mxu1 %v8161_v24 }
 0x457   :  { %4053 = vmatprep.subr.bf16.mxu1 %v8166_v25  ;;  %4787 = vmatpush2.bf16.msra.mxu0 %v8209_v39 }
 0x45a   :  { %4054 = vmatpush2.bf16.msra.mxu1 %v8164_v26 }
 0x45b   :  { %4055 = vmatprep.subr.bf16.mxu1 %v8169_v27 }
 0x45e   :  { %4056 = vmatpush2.bf16.msra.mxu1 %v8167_v28 }
 0x45f   :  { %4057 = vmatprep.subr.bf16.mxu1 %v8172_v29 }
 0x462   :  { %4058 = vmatpush2.bf16.msra.mxu1 %v8170_v30 }
 0x463   :  { %4059 = vmatprep.subr.bf16.mxu1 %v8175_v31 }
 0x466   :  { %4060 = vmatpush2.bf16.msra.mxu1 %v8173_v32 }
 0x467   :  { %4061 = vmatprep.subr.bf16.mxu1 %v8178_v33 }
 0x46a   :  { %4062 = vmatpush2.bf16.msra.mxu1 %v8176_v9 }
 0x46b   :  { %4807 = vmatprep.subr.bf16.mxu1 %v8229_v54  ;;  %v8274_v54 = vld [vmem:[#allocation2 + $0x20c] ss:$16 sps:$4 sm:$0xff]  }
 0x46d   :  { %4064 = vmatmul.mubr.bf16.vlgmr.msra.gmra.mxu1 %v10387_v7  ;;  %v8214_v7 = vld [vmem:[#allocation2 + $0x184] ss:$16 sps:$4 sm:$0xff]  }
 0x46e   :  { %4788 = vmatprep.subr.bf16.mxu0 %v8214_v7  ;;  %4808 = vmatpush1.bf16.msra.mxu1 %v8227_v56  ;;  %v8238_v7 = vld [vmem:[#allocation2 + $0x2cc] ss:$16 sps:$4 sm:$0xff]  }
 0x46f   :  { %4789 = vmatpush2.bf16.msra.mxu0 %v8212_v41  ;;  %4809 = vmatprep.subr.bf16.mxu1 %v8235_v58  ;;  %v8236_v41 = vld [vmem:[#allocation2 + $0x2c8] ss:$16 sps:$4 sm:$0xff]  }
 0x470   :  { %4790 = vmatprep.subr.bf16.mxu0 %v8217_v43  ;;  %v8242_v43 = vld [vmem:[#allocation2 + $0x2a8] ss:$16 sps:$4 sm:$0xff]  }
 0x471   :  { %v8272_v58 = vld [vmem:[#allocation2 + $0x208] ss:$16 sps:$4 sm:$0xff]  }
 0x472   :  { %4810 = vmatpush1.bf16.msra.mxu1 %v8233_v59 }
 0x473   :  { %4791 = vmatpush2.bf16.msra.mxu0 %v8215_v42  ;;  %4811 = vmatprep.subr.bf16.mxu1 %v8241_v60  ;;  %v8244_v42 = vld [vmem:[#allocation2 + $0x2ac] ss:$16 sps:$4 sm:$0xff]  }
 0x474   :  { %4792 = vmatprep.subr.bf16.mxu0 %v8220_v44  ;;  %v8250_v44 = vld [vmem:[#allocation2 + $0x28c] ss:$16 sps:$4 sm:$0xff]  }
 0x475   :  { %v8280_v60 = vld [vmem:[#allocation2 + $0x30c] ss:$16 sps:$4 sm:$0xff]  }
 0x476   :  { %4812 = vmatpush1.bf16.msra.mxu1 %v8239_v62 }
 0x477   :  { %4793 = vmatpush2.bf16.msra.mxu0 %v8218_v45  ;;  %4813 = vmatprep.subr.bf16.mxu1 %v8247_v63  ;;  %v8248_v45 = vld [vmem:[#allocation2 + $0x288] ss:$16 sps:$4 sm:$0xff]  }
 0x478   :  { %4794 = vmatprep.subr.bf16.mxu0 %v8223_v46  ;;  %v8256_v46 = vld [vmem:[#allocation2 + $0x26c] ss:$16 sps:$4 sm:$0xff]  }
 0x47a   :  { %4814 = vmatpush1.bf16.msra.mxu1 %v8245_v0 }
 0x47b   :  { %4795 = vmatpush2.bf16.msra.mxu0 %v8221_v47  ;;  %4815 = vmatprep.subr.bf16.mxu1 %v8253_v1  ;;  %v8254_v47 = vld [vmem:[#allocation2 + $0x268] ss:$16 sps:$4 sm:$0xff]  }
 0x47c   :  { %4796 = vmatprep.subr.bf16.mxu0 %v8226_v48  ;;  %v8262_v48 = vld [vmem:[#allocation2 + $0x24c] ss:$16 sps:$4 sm:$0xff]  }
 0x47e   :  { %4816 = vmatpush1.bf16.msra.mxu1 %v8251_v2 }
 0x47f   :  { %4797 = vmatpush2.bf16.msra.mxu0 %v8224_v49  ;;  %4817 = vmatprep.subr.bf16.mxu1 %v8259_v40  ;;  %v8260_v49 = vld [vmem:[#allocation2 + $0x248] ss:$16 sps:$4 sm:$0xff]  }
 0x480   :  { %4889 = vmatprep.subr.bf16.mxu0 %v8232_v57  ;;  %v8278_v40 = vld [vmem:[#allocation2 + $0x308] ss:$16 sps:$4 sm:$0xff]  }
 0x482   :  { %4818 = vmatpush1.bf16.msra.mxu1 %v8257_v3 }
 0x483   :  { %4819 = vmatprep.subr.bf16.mxu1 %v8265_v4 }
 0x486   :  { %4820 = vmatpush1.bf16.msra.mxu1 %v8263_v5 }
 0x487   :  { %4821 = vmatprep.subr.bf16.mxu1 %v8271_v6 }
 0x48a   :  { %4822 = vmatpush1.bf16.msra.mxu1 %v8269_v12 }
 0x48b   :  { %4837 = vmatprep.subr.bf16.mxu1 %v8277_v13 }
 0x48e   :  { %4838 = vmatpush2.bf16.msra.mxu1 %v8275_v14 }
 0x48f   :  { %4848 = vmatprep.subr.bf16.mxu1 %v8283_v15 }
 0x4ab   :  { %v3983_v50 = vpop.f32.mrf.mxu0 }
 0x4ac   :  { %v3984_v22 = vadd.f32 %v3983_v50, %v3429_v17  ;;  %v8268_v50 = vld [vmem:[#allocation2 + $0x22c] ss:$16 sps:$4 sm:$0xff]   ;;  %v8281_v17 = vld [vmem:[#allocation2 + $0xe8] ss:$16 sps:$4 sm:$0xff]  }
 0x4ad   :  { %v3985_v51 = vpop.f32.mrf.mxu0 }
 0x4ae   :  { %v3986_v25 = vadd.f32 %v3985_v51, %v3433_v18  ;;  %v3437_v51 = vrot.slane %v10543_v16, %v9774_v10 }
 0x4af   :  { %v3987_v53 = vpop.f32.mrf.mxu0 }
 0x4b0   :  { %v8266_v53 = vld [vmem:[#allocation2 + $0x228] ss:$16 sps:$4 sm:$0xff]  }
 0x4b1   :  { %v3988_v55 = vpop.f32.mrf.mxu0 }
 0x4b2   :  { %v3441_v55 = vrot.slane %v10543_v16, %v9776_v11 }
 0x4ed   :  { %v4024_v23 = vpop.f32.mrf.mxu1  ;;  %v4106_v24 = vpop.f32.mrf.mxu0 }
 0x4ee   :  { %v4025_v26 = vadd.f32 %v4024_v23, %v3984_v22  ;;  %v8286_v22 = vld [vmem:[#allocation2 + $0xcc] ss:$16 sps:$4 sm:$0xff]   ;;  %v8284_v23 = vld [vmem:[#allocation2 + $0xc8] ss:$16 sps:$4 sm:$0xff]  }
 0x4ef   :  { %v4026_v27 = vpop.f32.mrf.mxu1  ;;  %v4108_v28 = vpop.f32.mrf.mxu0 }
 0x4f0   :  { %v7104_v29 = vmul.f32 -1.442695, %v4025_v26  ;;  %v4027_v30 = vadd.f32 %v4026_v27, %v3986_v25  ;;  %v8329_v25 = vld [vmem:[#allocation5 + $0xe0] ss:$16 sps:$4 sm:$0xff]   ;;  %v8331_v26 = vld [vmem:[#allocation5 + $0xe4] ss:$16 sps:$4 sm:$0xff]  }
 0x4f1   :  { %v4028_v31 = vpop.f32.mrf.mxu1  ;;  %v4110_v32 = vpop.f32.mrf.mxu0  ;;  %v8287_v27 = vld [vmem:[#allocation2 + $0xa8] ss:$16 sps:$4 sm:$0xff]  }
 0x4f2   :  { %8677 = vpow2.f32 %v7104_v29  ;;  %v7105_v33 = vmul.f32 -1.442695, %v4027_v30  ;;  %v8292_v29 = vld [vmem:[#allocation2 + $0x8c] ss:$16 sps:$4 sm:$0xff]   ;;  %v8332_v30 = vld [vmem:[#allocation5 + $0xc0] ss:$16 sps:$4 sm:$0xff]  }
 0x4f3   :  { %v4029_v9 = vpop.f32.mrf.mxu1  ;;  %v4111_v34 = vpop.f32.mrf.mxu0  ;;  %v8337_v31 = vld [vmem:[#allocation5 + $0xa4] ss:$16 sps:$4 sm:$0xff]   ;;  %v8290_v32 = vld [vmem:[#allocation2 + $0x88] ss:$16 sps:$4 sm:$0xff]  }
 0x4f4   :  { %8679 = vpow2.f32 %v7105_v33  ;;  %v8295_v33 = vld [vmem:[#allocation2 + $0x6c] ss:$16 sps:$4 sm:$0xff]   ;;  %v8335_v9 = vld [vmem:[#allocation5 + $0xa0] ss:$16 sps:$4 sm:$0xff]   ;;  %v8340_v34 = vld [vmem:[#allocation5 + $0x84] ss:$16 sps:$4 sm:$0xff]  }
 0x4ff   :  { %v8678_v20 = vpop.eup %8677 }
 0x500   :  { %v4125_v21 = vadd.f32 1.0, %v8678_v20  ;;  %v8293_v20 = vld [vmem:[#allocation2 + $0x68] ss:$16 sps:$4 sm:$0xff]  }
 0x501   :  { %v8680_v35 = vpop.eup %8679 }
 0x502   :  { %v4126_v36 = vadd.f32 1.0, %v8680_v35  ;;  %8681 = vrcp.f32 %v4125_v21  ;;  %v8298_v21 = vld [vmem:[#allocation2 + $0x4c] ss:$16 sps:$4 sm:$0xff]   ;;  %v8338_v35 = vld [vmem:[#allocation5 + $0x80] ss:$16 sps:$4 sm:$0xff]  }
 0x504   :  { %8683 = vrcp.f32 %v4126_v36  ;;  %v8343_v36 = vld [vmem:[#allocation5 + $0x64] ss:$16 sps:$4 sm:$0xff]  }
 0x50f   :  { %v8682_v61 = vpop.eup %8681 }
 0x510   :  { %v10551_v39 = vpack.c.bf16 %v8682_v61, %v8682_v61  ;;  %v8296_v61 = vld [vmem:[#allocation2 + $0x48] ss:$16 sps:$4 sm:$0xff]  }
 0x511   :  { %v8684_v37 = vpop.eup %8683 }
 0x512   :  { %v10549_v8 = vpack.c.bf16 %v8684_v37, %v8684_v37  ;;  %v8301_v37 = vld [vmem:[#allocation2 + $0x2c] ss:$16 sps:$4 sm:$0xff]  }
 0x514   :  { %4798 = vmatprep.mubr.bf16.mxu0 %v10549_v8 }
 0x515   :  { %4799 = vmatmul.mubr.bf16.vlgmr.msra.gmra.mxu0 %v10551_v39 }
 0x516   :  { %4890 = vmatpush1.bf16.msra.mxu0 %v8230_v38  ;;  %v8346_v38 = vld [vmem:[#allocation5 + $0x44] ss:$16 sps:$4 sm:$0xff]  }
 0x517   :  { %4891 = vmatprep.subr.bf16.mxu0 %v8238_v7  ;;  %v8299_v7 = vld [vmem:[#allocation2 + $0x28] ss:$16 sps:$4 sm:$0xff]  }
 0x51a   :  { %4892 = vmatpush1.bf16.msra.mxu0 %v8236_v41  ;;  %v8304_v41 = vld [vmem:[#allocation2 + $0xc] ss:$16 sps:$4 sm:$0xff]  }
 0x51b   :  { %4893 = vmatprep.subr.bf16.mxu0 %v8244_v42  ;;  %v8344_v42 = vld [vmem:[#allocation5 + $0x40] ss:$16 sps:$4 sm:$0xff]  }
 0x51e   :  { %4894 = vmatpush1.bf16.msra.mxu0 %v8242_v43  ;;  %v8302_v43 = vld [vmem:[#allocation2 + $0x8] ss:$16 sps:$4 sm:$0xff]  }
 0x51f   :  { %4895 = vmatprep.subr.bf16.mxu0 %v8250_v44  ;;  %v8307_v44 = vld [vmem:[#allocation2 + $0x1ec] ss:$16 sps:$4 sm:$0xff]  }
 0x522   :  { %4896 = vmatpush1.bf16.msra.mxu0 %v8248_v45  ;;  %v8305_v45 = vld [vmem:[#allocation2 + $0x1e8] ss:$16 sps:$4 sm:$0xff]  }
 0x523   :  { %4897 = vmatprep.subr.bf16.mxu0 %v8256_v46  ;;  %v8310_v46 = vld [vmem:[#allocation2 + $0x1cc] ss:$16 sps:$4 sm:$0xff]  }
 0x526   :  { %4898 = vmatpush1.bf16.msra.mxu0 %v8254_v47  ;;  %v8308_v47 = vld [vmem:[#allocation2 + $0x1c8] ss:$16 sps:$4 sm:$0xff]  }
 0x527   :  { %4899 = vmatprep.subr.bf16.mxu0 %v8262_v48  ;;  %v8313_v48 = vld [vmem:[#allocation2 + $0x1ac] ss:$16 sps:$4 sm:$0xff]  }
 0x52a   :  { %4900 = vmatpush1.bf16.msra.mxu0 %v8260_v49  ;;  %v8311_v49 = vld [vmem:[#allocation2 + $0x1a8] ss:$16 sps:$4 sm:$0xff]  }
 0x52b   :  { %4901 = vmatprep.subr.bf16.mxu0 %v8268_v50  ;;  %v8316_v50 = vld [vmem:[#allocation2 + $0x18c] ss:$16 sps:$4 sm:$0xff]  }
 0x52d   :  { %v4065_v56 = vpop.f32.mrf.mxu1 }
 0x52e   :  { %v4066_v57 = vadd.f32 %v4065_v56, %v3437_v51  ;;  %4902 = vmatpush1.bf16.msra.mxu0 %v8266_v53  ;;  %v8314_v51 = vld [vmem:[#allocation2 + $0x188] ss:$16 sps:$4 sm:$0xff]   ;;  %v8319_v53 = vld [vmem:[#allocation2 + $0x16c] ss:$16 sps:$4 sm:$0xff]  }
 0x52f   :  { %v4067_v59 = vpop.f32.mrf.mxu1  ;;  %4903 = vmatprep.subr.bf16.mxu0 %v8274_v54  ;;  %v8317_v54 = vld [vmem:[#allocation2 + $0x168] ss:$16 sps:$4 sm:$0xff]  }
 0x530   :  { %v4107_v62 = vadd.f32 %v4106_v24, %v4066_v57  ;;  %v4068_v63 = vadd.f32 %v4067_v59, %v3441_v55  ;;  %v8289_v24 = vld [vmem:[#allocation2 + $0xac] ss:$16 sps:$4 sm:$0xff]   ;;  %v8320_v56 = vld [vmem:[#allocation2 + $0x148] ss:$16 sps:$4 sm:$0xff]  }
 0x531   :  { %v4069_v0 = vpop.f32.mrf.mxu1  ;;  %v8322_v55 = vld [vmem:[#allocation2 + $0x14c] ss:$16 sps:$4 sm:$0xff]  }
 0x532   :  { %v7106_v1 = vmul.f32 -1.442695, %v4107_v62  ;;  %v4109_v2 = vadd.f32 %v4108_v28, %v4068_v63  ;;  %4904 = vmatpush1.bf16.msra.mxu0 %v8272_v58  ;;  %v8334_v28 = vld [vmem:[#allocation5 + $0xc4] ss:$16 sps:$4 sm:$0xff]   ;;  %v8325_v57 = vld [vmem:[#allocation2 + $0x12c] ss:$16 sps:$4 sm:$0xff]  }
 0x533   :  { %v4070_v3 = vpop.f32.mrf.mxu1  ;;  %4919 = vmatprep.subr.bf16.mxu0 %v8280_v60  ;;  %v8323_v58 = vld [vmem:[#allocation2 + $0x128] ss:$16 sps:$4 sm:$0xff]   ;;  %v8328_v59 = vld [vmem:[#allocation2 + $0x10c] ss:$16 sps:$4 sm:$0xff]   ;;  %v8349_v62 = vld [vmem:[#allocation5 + $0x24] ss:$16 sps:$4 sm:$0xff]  }
 0x534   :  { %8685 = vpow2.f32 %v7106_v1  ;;  %v7107_v4 = vmul.f32 -1.442695, %v4109_v2  ;;  %v8326_v60 = vld [vmem:[#allocation2 + $0x108] ss:$16 sps:$4 sm:$0xff]   ;;  %v8347_v63 = vld [vmem:[#allocation5 + $0x20] ss:$16 sps:$4 sm:$0xff]  }
 0x535   :  { %v8352_v0 = vld [vmem:[#allocation5 + $0x4] ss:$16 sps:$4 sm:$0xff]   ;;  %v8350_v1 = vld [vmem:[#allocation5] ss:$16 sps:$4 sm:$0xff]  }
 0x536   :  { %8687 = vpow2.f32 %v7107_v4  ;;  %4920 = vmatpush2.bf16.msra.mxu0 %v8278_v40  ;;  %v8355_v2 = vld [vmem:[#allocation5 + $0x1e4] ss:$16 sps:$4 sm:$0xff]   ;;  %v8353_v40 = vld [vmem:[#allocation5 + $0x1e0] ss:$16 sps:$4 sm:$0xff]  }
 0x537   :  { %5583 = vmatprep.subr.bf16.mxu0 %v8331_v26  ;;  %v8358_v3 = vld [vmem:[#allocation5 + $0x1c4] ss:$16 sps:$4 sm:$0xff]   ;;  %v8356_v4 = vld [vmem:[#allocation5 + $0x1c0] ss:$16 sps:$4 sm:$0xff]  }
 0x541   :  { %v8686_v5 = vpop.eup %8685 }
 0x542   :  { %v4127_v6 = vadd.f32 1.0, %v8686_v5  ;;  %v8361_v5 = vld [vmem:[#allocation5 + $0x1a4] ss:$16 sps:$4 sm:$0xff]  }
 0x543   :  { %v8688_v12 = vpop.eup %8687 }
 0x544   :  { %v4128_v13 = vadd.f32 1.0, %v8688_v12  ;;  %8689 = vrcp.f32 %v4127_v6  ;;  %v8359_v6 = vld [vmem:[#allocation5 + $0x1a0] ss:$16 sps:$4 sm:$0xff]  }
 0x545   :  { %v8362_v12 = vld [vmem:[#allocation5 + $0x180] ss:$16 sps:$4 sm:$0xff]  }
 0x546   :  { %8691 = vrcp.f32 %v4128_v13  ;;  %v8365_v13 = vld [vmem:[#allocation5 + $0x160] ss:$16 sps:$4 sm:$0xff]  }
 0x551   :  { %v8690_v14 = vpop.eup %8689 }
 0x552   :  { %v4139_v18 = vpack.c.bf16 %v8690_v14, %v8690_v14  ;;  %v8367_v14 = vld [vmem:[#allocation5 + $0x164] ss:$16 sps:$4 sm:$0xff]  }
 0x553   :  { %v8692_v15 = vpop.eup %8691 }
 0x554   :  { %v4140_v16 = vpack.c.bf16 %v8692_v15, %v8692_v15  ;;  %v8370_v15 = vld [vmem:[#allocation5 + $0x144] ss:$16 sps:$4 sm:$0xff]  }
 0x556   :  { %7208 = vmatprep.mubr.msk.bf16.mxu1 %vm2311_vm1, %v4140_v16  ;;  %7209 = vmatprep.mubr.msk.bf16.mxu0 %vm2311_vm1, %v4140_v16  ;;  %v8368_v16 = vld [vmem:[#allocation5 + $0x140] ss:$16 sps:$4 sm:$0xff]  }
 0x557   :  { %4840 = vmatmul.mubr.bf16.vlgmr.msra.gmra.mxu1 %v4139_v18  ;;  %4922 = vmatmul.mubr.bf16.vlgmr.msra.gmra.mxu0 %v4139_v18  ;;  %v8371_v18 = vld [vmem:[#allocation5 + $0x120] ss:$16 sps:$4 sm:$0xff]  }
 0x558   :  { %4849 = vmatpush1.bf16.msra.mxu1 %v8281_v17  ;;  %4880 = vmatprep.mubr.bf16.mxu1 %v10549_v8  ;;  %v8341_v8 = vld [vmem:[#allocation5 + $0x60] ss:$16 sps:$4 sm:$0xff]   ;;  %v8373_v17 = vld [vmem:[#allocation5 + $0x124] ss:$16 sps:$4 sm:$0xff]  }
 0x559   :  { %4850 = vmatprep.subr.bf16.mxu1 %v8286_v22  ;;  %5584 = vmatpush1.bf16.msra.mxu0 %v8329_v25  ;;  %v8376_v22 = vld [vmem:[#allocation5 + $0x104] ss:$16 sps:$4 sm:$0xff]  }
 0x55a   :  { %5585 = vmatprep.subr.bf16.mxu0 %v8334_v28 }
 0x55c   :  { %4851 = vmatpush1.bf16.msra.mxu1 %v8284_v23  ;;  %v8374_v23 = vld [vmem:[#allocation5 + $0x100] ss:$16 sps:$4 sm:$0xff]  }
 0x55d   :  { %4852 = vmatprep.subr.bf16.mxu1 %v8289_v24  ;;  %5586 = vmatpush1.bf16.msra.mxu0 %v8332_v30  ;;  %v8382_v30 = vld [vmem:[#allocation5 + $0x2ec] ss:$16 sps:$4 sm:$0xff]  }
 0x55e   :  { %5587 = vmatprep.subr.bf16.mxu0 %v8337_v31  ;;  %v8385_v31 = vld [vmem:[#allocation5 + $0x2c4] ss:$16 sps:$4 sm:$0xff]  }
 0x560   :  { %4853 = vmatpush1.bf16.msra.mxu1 %v8287_v27  ;;  %v8379_v27 = vld [vmem:[#allocation5 + $0x2e4] ss:$16 sps:$4 sm:$0xff]  }
 0x561   :  { %4854 = vmatprep.subr.bf16.mxu1 %v8292_v29  ;;  %5588 = vmatpush1.bf16.msra.mxu0 %v8335_v9  ;;  %v8377_v29 = vld [vmem:[#allocation5 + $0x2e0] ss:$16 sps:$4 sm:$0xff]  }
 0x562   :  { %5589 = vmatprep.subr.bf16.mxu0 %v8340_v34  ;;  %v8389_v9 = vld [vmem:[#allocation5 + $0x2a0] ss:$16 sps:$4 sm:$0xff]   ;;  %v8397_v34 = vld [vmem:[#allocation5 + $0x284] ss:$16 sps:$4 sm:$0xff]  }
 0x564   :  { %4855 = vmatpush1.bf16.msra.mxu1 %v8290_v32  ;;  %v8383_v32 = vld [vmem:[#allocation5 + $0x2c0] ss:$16 sps:$4 sm:$0xff]  }
 0x565   :  { %4856 = vmatprep.subr.bf16.mxu1 %v8295_v33  ;;  %5590 = vmatpush1.bf16.msra.mxu0 %v8338_v35  ;;  %v8391_v33 = vld [vmem:[#allocation5 + $0x2a4] ss:$16 sps:$4 sm:$0xff]   ;;  %v8401_v35 = vld [vmem:[#allocation5 + $0x260] ss:$16 sps:$4 sm:$0xff]  }
 0x566   :  { %5591 = vmatprep.subr.bf16.mxu0 %v8343_v36  ;;  %v8409_v36 = vld [vmem:[#allocation5 + $0x244] ss:$16 sps:$4 sm:$0xff]  }
 0x568   :  { %4857 = vmatpush1.bf16.msra.mxu1 %v8293_v20  ;;  %v8395_v20 = vld [vmem:[#allocation5 + $0x280] ss:$16 sps:$4 sm:$0xff]  }
 0x569   :  { %4858 = vmatprep.subr.bf16.mxu1 %v8298_v21  ;;  %5592 = vmatpush1.bf16.msra.mxu0 %v8341_v8  ;;  %v8403_v21 = vld [vmem:[#allocation5 + $0x264] ss:$16 sps:$4 sm:$0xff]   ;;  %v8413_v8 = vld [vmem:[#allocation5 + $0x220] ss:$16 sps:$4 sm:$0xff]  }
 0x56a   :  { %5593 = vmatprep.subr.bf16.mxu0 %v8346_v38  ;;  %v8421_v38 = vld [vmem:[#allocation5 + $0x204] ss:$16 sps:$4 sm:$0xff]  }
 0x56c   :  { %4859 = vmatpush1.bf16.msra.mxu1 %v8296_v61  ;;  %v8407_v61 = vld [vmem:[#allocation5 + $0x240] ss:$16 sps:$4 sm:$0xff]  }
 0x56d   :  { %4860 = vmatprep.subr.bf16.mxu1 %v8301_v37  ;;  %5594 = vmatpush1.bf16.msra.mxu0 %v8344_v42  ;;  %v8415_v37 = vld [vmem:[#allocation5 + $0x224] ss:$16 sps:$4 sm:$0xff]   ;;  %v8425_v42 = vld [vmem:[#allocation5 + $0x300] ss:$16 sps:$4 sm:$0xff]  }
 0x56e   :  { %5595 = vmatprep.subr.bf16.mxu0 %v8349_v62 }
 0x570   :  { %4861 = vmatpush1.bf16.msra.mxu1 %v8299_v7  ;;  %v8419_v7 = vld [vmem:[#allocation5 + $0x200] ss:$16 sps:$4 sm:$0xff]  }
 0x571   :  { %4862 = vmatprep.subr.bf16.mxu1 %v8304_v41  ;;  %5596 = vmatpush1.bf16.msra.mxu0 %v8347_v63  ;;  %v8427_v41 = vld [vmem:[#allocation5 + $0x304] ss:$16 sps:$4 sm:$0xff]  }
 0x572   :  { %5597 = vmatprep.subr.bf16.mxu0 %v8352_v0 }
 0x574   :  { %4863 = vmatpush1.bf16.msra.mxu1 %v8302_v43  ;;  %v8433_v43 = vld [vmem:[#allocation5 + $0xec] ss:$16 sps:$4 sm:$0xff]  }
 0x575   :  { %4864 = vmatprep.subr.bf16.mxu1 %v8307_v44  ;;  %5598 = vmatpush1.bf16.msra.mxu0 %v8350_v1  ;;  %v10566_v44 = vld [vmem:[%s10630_s10] sm:$0xf] }
 0x576   :  { %5599 = vmatprep.subr.bf16.mxu0 %v8355_v2 }
 0x578   :  { %4865 = vmatpush2.bf16.msra.mxu1 %v8305_v45  ;;  %v4246_v45 = vrot.slane %v10566_v44, %v9723_v19 }
 0x579   :  { %4866 = vmatprep.subr.bf16.mxu1 %v8310_v46  ;;  %5600 = vmatpush2.bf16.msra.mxu0 %v8353_v40  ;;  %v4250_v46 = vrot.slane %v10566_v44, %v9725_v52 }
 0x57a   :  { %5601 = vmatprep.subr.bf16.mxu0 %v8358_v3 }
 0x57c   :  { %4867 = vmatpush2.bf16.msra.mxu1 %v8308_v47 }
 0x57d   :  { %4868 = vmatprep.subr.bf16.mxu1 %v8313_v48  ;;  %5602 = vmatpush2.bf16.msra.mxu0 %v8356_v4 }
 0x57e   :  { %5603 = vmatprep.subr.bf16.mxu0 %v8361_v5  ;;  %v8380_v5 = vld [vmem:[#allocation5 + $0x2e8] ss:$16 sps:$4 sm:$0xff]  }
 0x580   :  { %4869 = vmatpush2.bf16.msra.mxu1 %v8311_v49 }
 0x581   :  { %4870 = vmatprep.subr.bf16.mxu1 %v8316_v50  ;;  %5604 = vmatpush2.bf16.msra.mxu0 %v8359_v6 }
 0x584   :  { %4871 = vmatpush2.bf16.msra.mxu1 %v8314_v51 }
 0x585   :  { %4872 = vmatprep.subr.bf16.mxu1 %v8319_v53 }
 0x588   :  { %4873 = vmatpush2.bf16.msra.mxu1 %v8317_v54 }
 0x589   :  { %4874 = vmatprep.subr.bf16.mxu1 %v8322_v55 }
 0x58c   :  { %4875 = vmatpush2.bf16.msra.mxu1 %v8320_v56 }
 0x58d   :  { %4876 = vmatprep.subr.bf16.mxu1 %v8325_v57 }
 0x590   :  { %4877 = vmatpush2.bf16.msra.mxu1 %v8323_v58 }
 0x591   :  { %4878 = vmatprep.subr.bf16.mxu1 %v8328_v59 }
 0x594   :  { %4879 = vmatpush2.bf16.msra.mxu1 %v8326_v60 }
 0x595   :  { %5624 = vmatprep.subr.bf16.mxu1 %v8379_v27  ;;  %v8424_v27 = vld [vmem:[#allocation5 + $0x20c] ss:$16 sps:$4 sm:$0xff]  }
 0x597   :  { %4881 = vmatmul.mubr.bf16.vlgmr.msra.gmra.mxu1 %v10551_v39  ;;  %v8364_v39 = vld [vmem:[#allocation5 + $0x184] ss:$16 sps:$4 sm:$0xff]  }
 0x598   :  { %5605 = vmatprep.subr.bf16.mxu0 %v8364_v39  ;;  %5625 = vmatpush1.bf16.msra.mxu1 %v8377_v29  ;;  %v8388_v39 = vld [vmem:[#allocation5 + $0x2cc] ss:$16 sps:$4 sm:$0xff]  }
 0x599   :  { %5606 = vmatpush2.bf16.msra.mxu0 %v8362_v12  ;;  %5626 = vmatprep.subr.bf16.mxu1 %v8385_v31  ;;  %v8386_v12 = vld [vmem:[#allocation5 + $0x2c8] ss:$16 sps:$4 sm:$0xff]  }
 0x59a   :  { %5607 = vmatprep.subr.bf16.mxu0 %v8367_v14  ;;  %v8392_v14 = vld [vmem:[#allocation5 + $0x2a8] ss:$16 sps:$4 sm:$0xff]  }
 0x59b   :  { %v8422_v31 = vld [vmem:[#allocation5 + $0x208] ss:$16 sps:$4 sm:$0xff]  }
 0x59c   :  { %5627 = vmatpush1.bf16.msra.mxu1 %v8383_v32 }
 0x59d   :  { %5608 = vmatpush2.bf16.msra.mxu0 %v8365_v13  ;;  %5628 = vmatprep.subr.bf16.mxu1 %v8391_v33  ;;  %v8394_v13 = vld [vmem:[#allocation5 + $0x2ac] ss:$16 sps:$4 sm:$0xff]  }
 0x59e   :  { %5609 = vmatprep.subr.bf16.mxu0 %v8370_v15  ;;  %v8400_v15 = vld [vmem:[#allocation5 + $0x28c] ss:$16 sps:$4 sm:$0xff]  }
 0x59f   :  { %v8430_v33 = vld [vmem:[#allocation5 + $0x30c] ss:$16 sps:$4 sm:$0xff]  }
 0x5a0   :  { %5629 = vmatpush1.bf16.msra.mxu1 %v8389_v9 }
 0x5a1   :  { %5610 = vmatpush2.bf16.msra.mxu0 %v8368_v16  ;;  %5630 = vmatprep.subr.bf16.mxu1 %v8397_v34  ;;  %v8398_v16 = vld [vmem:[#allocation5 + $0x288] ss:$16 sps:$4 sm:$0xff]  }
 0x5a2   :  { %5611 = vmatprep.subr.bf16.mxu0 %v8373_v17  ;;  %v8406_v17 = vld [vmem:[#allocation5 + $0x26c] ss:$16 sps:$4 sm:$0xff]  }
 0x5a4   :  { %5631 = vmatpush1.bf16.msra.mxu1 %v8395_v20 }
 0x5a5   :  { %5612 = vmatpush2.bf16.msra.mxu0 %v8371_v18  ;;  %5632 = vmatprep.subr.bf16.mxu1 %v8403_v21  ;;  %v8404_v18 = vld [vmem:[#allocation5 + $0x268] ss:$16 sps:$4 sm:$0xff]  }
 0x5a6   :  { %5613 = vmatprep.subr.bf16.mxu0 %v8376_v22  ;;  %v8412_v22 = vld [vmem:[#allocation5 + $0x24c] ss:$16 sps:$4 sm:$0xff]  }
 0x5a8   :  { %5633 = vmatpush1.bf16.msra.mxu1 %v8401_v35 }
 0x5a9   :  { %5614 = vmatpush2.bf16.msra.mxu0 %v8374_v23  ;;  %5634 = vmatprep.subr.bf16.mxu1 %v8409_v36  ;;  %v8410_v23 = vld [vmem:[#allocation5 + $0x248] ss:$16 sps:$4 sm:$0xff]  }
 0x5aa   :  { %5706 = vmatprep.subr.bf16.mxu0 %v8382_v30  ;;  %v8428_v36 = vld [vmem:[#allocation5 + $0x308] ss:$16 sps:$4 sm:$0xff]  }
 0x5ac   :  { %5635 = vmatpush1.bf16.msra.mxu1 %v8407_v61 }
 0x5ad   :  { %5636 = vmatprep.subr.bf16.mxu1 %v8415_v37 }
 0x5b0   :  { %5637 = vmatpush1.bf16.msra.mxu1 %v8413_v8 }
 0x5b1   :  { %5638 = vmatprep.subr.bf16.mxu1 %v8421_v38 }
 0x5b4   :  { %5639 = vmatpush1.bf16.msra.mxu1 %v8419_v7 }
 0x5b5   :  { %5654 = vmatprep.subr.bf16.mxu1 %v8427_v41 }
 0x5b8   :  { %5655 = vmatpush2.bf16.msra.mxu1 %v8425_v42 }
 0x5b9   :  { %5665 = vmatprep.subr.bf16.mxu1 %v8433_v43 }
 0x5d5   :  { %v4800_v24 = vpop.f32.mrf.mxu0 }
 0x5d6   :  { %v4801_v47 = vadd.f32 %v4800_v24, %v4246_v45  ;;  %v8418_v24 = vld [vmem:[#allocation5 + $0x22c] ss:$16 sps:$4 sm:$0xff]   ;;  %v8431_v45 = vld [vmem:[#allocation5 + $0xe8] ss:$16 sps:$4 sm:$0xff]  }
 0x5d7   :  { %v4802_v25 = vpop.f32.mrf.mxu0 }
 0x5d8   :  { %v4803_v50 = vadd.f32 %v4802_v25, %v4250_v46  ;;  %v4254_v25 = vrot.slane %v10566_v44, %v9774_v10 }
 0x5d9   :  { %v4804_v26 = vpop.f32.mrf.mxu0 }
 0x5da   :  { %v8416_v26 = vld [vmem:[#allocation5 + $0x228] ss:$16 sps:$4 sm:$0xff]  }
 0x5db   :  { %v4805_v28 = vpop.f32.mrf.mxu0 }
 0x5dc   :  { %v4258_v28 = vrot.slane %v10566_v44, %v9776_v11 }
 0x617   :  { %v4841_v48 = vpop.f32.mrf.mxu1  ;;  %v4923_v49 = vpop.f32.mrf.mxu0 }
 0x618   :  { %v4842_v51 = vadd.f32 %v4841_v48, %v4801_v47  ;;  %v8436_v47 = vld [vmem:[#allocation5 + $0xcc] ss:$16 sps:$4 sm:$0xff]   ;;  %v8434_v48 = vld [vmem:[#allocation5 + $0xc8] ss:$16 sps:$4 sm:$0xff]  }
 0x619   :  { %v4843_v53 = vpop.f32.mrf.mxu1  ;;  %v4925_v54 = vpop.f32.mrf.mxu0 }
 0x61a   :  { %v7210_v55 = vmul.f32 -1.442695, %v4842_v51  ;;  %v4844_v56 = vadd.f32 %v4843_v53, %v4803_v50  ;;  %v8479_v50 = vld [vmem:[#allocation7 + $0xe0] ss:$16 sps:$4 sm:$0xff]   ;;  %v8481_v51 = vld [vmem:[#allocation7 + $0xe4] ss:$16 sps:$4 sm:$0xff]  }
 0x61b   :  { %v4845_v57 = vpop.f32.mrf.mxu1  ;;  %v4927_v58 = vpop.f32.mrf.mxu0  ;;  %v8437_v53 = vld [vmem:[#allocation5 + $0xa8] ss:$16 sps:$4 sm:$0xff]  }
 0x61c   :  { %8693 = vpow2.f32 %v7210_v55  ;;  %v7211_v59 = vmul.f32 -1.442695, %v4844_v56  ;;  %v8442_v55 = vld [vmem:[#allocation5 + $0x8c] ss:$16 sps:$4 sm:$0xff]   ;;  %v8482_v56 = vld [vmem:[#allocation7 + $0xc0] ss:$16 sps:$4 sm:$0xff]  }
 0x61d   :  { %v4846_v60 = vpop.f32.mrf.mxu1  ;;  %v4928_v62 = vpop.f32.mrf.mxu0  ;;  %v8487_v57 = vld [vmem:[#allocation7 + $0xa4] ss:$16 sps:$4 sm:$0xff]   ;;  %v8440_v58 = vld [vmem:[#allocation5 + $0x88] ss:$16 sps:$4 sm:$0xff]  }
 0x61e   :  { %8695 = vpow2.f32 %v7211_v59  ;;  %v8445_v59 = vld [vmem:[#allocation5 + $0x6c] ss:$16 sps:$4 sm:$0xff]   ;;  %v8485_v60 = vld [vmem:[#allocation7 + $0xa0] ss:$16 sps:$4 sm:$0xff]   ;;  %v8490_v62 = vld [vmem:[#allocation7 + $0x84] ss:$16 sps:$4 sm:$0xff]  }
 0x629   :  { %v8694_v63 = vpop.eup %8693 }
 0x62a   :  { %v4942_v0 = vadd.f32 1.0, %v8694_v63  ;;  %v8443_v63 = vld [vmem:[#allocation5 + $0x68] ss:$16 sps:$4 sm:$0xff]  }
 0x62b   :  { %v8696_v1 = vpop.eup %8695 }
 0x62c   :  { %v4943_v2 = vadd.f32 1.0, %v8696_v1  ;;  %8697 = vrcp.f32 %v4942_v0  ;;  %v8448_v0 = vld [vmem:[#allocation5 + $0x4c] ss:$16 sps:$4 sm:$0xff]   ;;  %v8488_v1 = vld [vmem:[#allocation7 + $0x80] ss:$16 sps:$4 sm:$0xff]  }
 0x62e   :  { %8699 = vrcp.f32 %v4943_v2  ;;  %v8493_v2 = vld [vmem:[#allocation7 + $0x64] ss:$16 sps:$4 sm:$0xff]  }
 0x639   :  { %v8698_v40 = vpop.eup %8697 }
 0x63a   :  { %v10574_v6 = vpack.c.bf16 %v8698_v40, %v8698_v40  ;;  %v8446_v40 = vld [vmem:[#allocation5 + $0x48] ss:$16 sps:$4 sm:$0xff]  }
 0x63b   :  { %v8700_v3 = vpop.eup %8699 }
 0x63c   :  { %v10572_v4 = vpack.c.bf16 %v8700_v3, %v8700_v3  ;;  %v8451_v3 = vld [vmem:[#allocation5 + $0x2c] ss:$16 sps:$4 sm:$0xff]  }
 0x63e   :  { %5615 = vmatprep.mubr.bf16.mxu0 %v10572_v4 }
 0x63f   :  { %5616 = vmatmul.mubr.bf16.vlgmr.msra.gmra.mxu0 %v10574_v6 }
 0x640   :  { %5707 = vmatpush1.bf16.msra.mxu0 %v8380_v5  ;;  %v8496_v5 = vld [vmem:[#allocation7 + $0x44] ss:$16 sps:$4 sm:$0xff]  }
 0x641   :  { %5708 = vmatprep.subr.bf16.mxu0 %v8388_v39  ;;  %v8449_v39 = vld [vmem:[#allocation5 + $0x28] ss:$16 sps:$4 sm:$0xff]  }
 0x644   :  { %5709 = vmatpush1.bf16.msra.mxu0 %v8386_v12  ;;  %v8454_v12 = vld [vmem:[#allocation5 + $0xc] ss:$16 sps:$4 sm:$0xff]  }
 0x645   :  { %5710 = vmatprep.subr.bf16.mxu0 %v8394_v13  ;;  %v8494_v13 = vld [vmem:[#allocation7 + $0x40] ss:$16 sps:$4 sm:$0xff]  }
 0x648   :  { %5711 = vmatpush1.bf16.msra.mxu0 %v8392_v14  ;;  %v8452_v14 = vld [vmem:[#allocation5 + $0x8] ss:$16 sps:$4 sm:$0xff]  }
 0x649   :  { %5712 = vmatprep.subr.bf16.mxu0 %v8400_v15  ;;  %v8457_v15 = vld [vmem:[#allocation5 + $0x1ec] ss:$16 sps:$4 sm:$0xff]  }
 0x64c   :  { %5713 = vmatpush1.bf16.msra.mxu0 %v8398_v16  ;;  %v8455_v16 = vld [vmem:[#allocation5 + $0x1e8] ss:$16 sps:$4 sm:$0xff]  }
 0x64d   :  { %5714 = vmatprep.subr.bf16.mxu0 %v8406_v17  ;;  %v8460_v17 = vld [vmem:[#allocation5 + $0x1cc] ss:$16 sps:$4 sm:$0xff]  }
 0x650   :  { %5715 = vmatpush1.bf16.msra.mxu0 %v8404_v18  ;;  %v8458_v18 = vld [vmem:[#allocation5 + $0x1c8] ss:$16 sps:$4 sm:$0xff]  }
 0x651   :  { %5716 = vmatprep.subr.bf16.mxu0 %v8412_v22  ;;  %v8463_v22 = vld [vmem:[#allocation5 + $0x1ac] ss:$16 sps:$4 sm:$0xff]  }
 0x654   :  { %5717 = vmatpush1.bf16.msra.mxu0 %v8410_v23  ;;  %v8461_v23 = vld [vmem:[#allocation5 + $0x1a8] ss:$16 sps:$4 sm:$0xff]  }
 0x655   :  { %5718 = vmatprep.subr.bf16.mxu0 %v8418_v24  ;;  %v8466_v24 = vld [vmem:[#allocation5 + $0x18c] ss:$16 sps:$4 sm:$0xff]  }
 0x657   :  { %v4882_v29 = vpop.f32.mrf.mxu1 }
 0x658   :  { %v4883_v30 = vadd.f32 %v4882_v29, %v4254_v25  ;;  %5719 = vmatpush1.bf16.msra.mxu0 %v8416_v26  ;;  %v8464_v25 = vld [vmem:[#allocation5 + $0x188] ss:$16 sps:$4 sm:$0xff]   ;;  %v8469_v26 = vld [vmem:[#allocation5 + $0x16c] ss:$16 sps:$4 sm:$0xff]  }
 0x659   :  { %v4884_v32 = vpop.f32.mrf.mxu1  ;;  %5720 = vmatprep.subr.bf16.mxu0 %v8424_v27  ;;  %v8467_v27 = vld [vmem:[#allocation5 + $0x168] ss:$16 sps:$4 sm:$0xff]  }
 0x65a   :  { %v4924_v9 = vadd.f32 %v4923_v49, %v4883_v30  ;;  %v4885_v34 = vadd.f32 %v4884_v32, %v4258_v28  ;;  %v8439_v49 = vld [vmem:[#allocation5 + $0xac] ss:$16 sps:$4 sm:$0xff]   ;;  %v8470_v29 = vld [vmem:[#allocation5 + $0x148] ss:$16 sps:$4 sm:$0xff]  }
 0x65b   :  { %v4886_v20 = vpop.f32.mrf.mxu1  ;;  %v8472_v28 = vld [vmem:[#allocation5 + $0x14c] ss:$16 sps:$4 sm:$0xff]  }
 0x65c   :  { %v7212_v21 = vmul.f32 -1.442695, %v4924_v9  ;;  %v4926_v35 = vadd.f32 %v4925_v54, %v4885_v34  ;;  %5721 = vmatpush1.bf16.msra.mxu0 %v8422_v31  ;;  %v8484_v54 = vld [vmem:[#allocation7 + $0xc4] ss:$16 sps:$4 sm:$0xff]   ;;  %v8475_v30 = vld [vmem:[#allocation5 + $0x12c] ss:$16 sps:$4 sm:$0xff]  }
 0x65d   :  { %v4887_v61 = vpop.f32.mrf.mxu1  ;;  %5736 = vmatprep.subr.bf16.mxu0 %v8430_v33  ;;  %v8473_v31 = vld [vmem:[#allocation5 + $0x128] ss:$16 sps:$4 sm:$0xff]   ;;  %v8478_v32 = vld [vmem:[#allocation5 + $0x10c] ss:$16 sps:$4 sm:$0xff]   ;;  %v8499_v9 = vld [vmem:[#allocation7 + $0x24] ss:$16 sps:$4 sm:$0xff]  }
 0x65e   :  { %8701 = vpow2.f32 %v7212_v21  ;;  %v7213_v37 = vmul.f32 -1.442695, %v4926_v35  ;;  %v8476_v33 = vld [vmem:[#allocation5 + $0x108] ss:$16 sps:$4 sm:$0xff]   ;;  %v8497_v34 = vld [vmem:[#allocation7 + $0x20] ss:$16 sps:$4 sm:$0xff]  }
 0x65f   :  { %v8502_v20 = vld [vmem:[#allocation7 + $0x4] ss:$16 sps:$4 sm:$0xff]   ;;  %v8500_v21 = vld [vmem:[#allocation7] ss:$16 sps:$4 sm:$0xff]  }
 0x660   :  { %8703 = vpow2.f32 %v7213_v37  ;;  %5737 = vmatpush2.bf16.msra.mxu0 %v8428_v36  ;;  %v8505_v35 = vld [vmem:[#allocation7 + $0x1e4] ss:$16 sps:$4 sm:$0xff]   ;;  %v8503_v36 = vld [vmem:[#allocation7 + $0x1e0] ss:$16 sps:$4 sm:$0xff]  }
 0x661   :  { %6400 = vmatprep.subr.bf16.mxu0 %v8481_v51  ;;  %v8508_v61 = vld [vmem:[#allocation7 + $0x1c4] ss:$16 sps:$4 sm:$0xff]   ;;  %v8506_v37 = vld [vmem:[#allocation7 + $0x1c0] ss:$16 sps:$4 sm:$0xff]  }
 0x66b   :  { %v8702_v8 = vpop.eup %8701 }
 0x66c   :  { %v4944_v38 = vadd.f32 1.0, %v8702_v8  ;;  %v8511_v8 = vld [vmem:[#allocation7 + $0x1a4] ss:$16 sps:$4 sm:$0xff]  }
 0x66d   :  { %v8704_v7 = vpop.eup %8703 }
 0x66e   :  { %v4945_v41 = vadd.f32 1.0, %v8704_v7  ;;  %8705 = vrcp.f32 %v4944_v38  ;;  %v8509_v38 = vld [vmem:[#allocation7 + $0x1a0] ss:$16 sps:$4 sm:$0xff]  }
 0x66f   :  { %v8512_v7 = vld [vmem:[#allocation7 + $0x180] ss:$16 sps:$4 sm:$0xff]  }
 0x670   :  { %8707 = vrcp.f32 %v4945_v41  ;;  %v8515_v41 = vld [vmem:[#allocation7 + $0x160] ss:$16 sps:$4 sm:$0xff]  }
 0x67b   :  { %v8706_v42 = vpop.eup %8705 }
 0x67c   :  { %v4956_v46 = vpack.c.bf16 %v8706_v42, %v8706_v42  ;;  %v8517_v42 = vld [vmem:[#allocation7 + $0x164] ss:$16 sps:$4 sm:$0xff]  }
 0x67d   :  { %v8708_v43 = vpop.eup %8707 }
 0x67e   :  { %v4957_v44 = vpack.c.bf16 %v8708_v43, %v8708_v43  ;;  %v8520_v43 = vld [vmem:[#allocation7 + $0x144] ss:$16 sps:$4 sm:$0xff]  }
 0x680   :  { %7314 = vmatprep.mubr.msk.bf16.mxu1 %vm2311_vm1, %v4957_v44  ;;  %7315 = vmatprep.mubr.msk.bf16.mxu0 %vm2311_vm1, %v4957_v44  ;;  %v8518_v44 = vld [vmem:[#allocation7 + $0x140] ss:$16 sps:$4 sm:$0xff]  }
 0x681   :  { %5657 = vmatmul.mubr.bf16.vlgmr.msra.gmra.mxu1 %v4956_v46  ;;  %5739 = vmatmul.mubr.bf16.vlgmr.msra.gmra.mxu0 %v4956_v46  ;;  %v8521_v46 = vld [vmem:[#allocation7 + $0x120] ss:$16 sps:$4 sm:$0xff]  }
 0x682   :  { %5666 = vmatpush1.bf16.msra.mxu1 %v8431_v45  ;;  %5697 = vmatprep.mubr.bf16.mxu1 %v10572_v4  ;;  %v8491_v4 = vld [vmem:[#allocation7 + $0x60] ss:$16 sps:$4 sm:$0xff]   ;;  %v8523_v45 = vld [vmem:[#allocation7 + $0x124] ss:$16 sps:$4 sm:$0xff]  }
 0x683   :  { %5667 = vmatprep.subr.bf16.mxu1 %v8436_v47  ;;  %6401 = vmatpush1.bf16.msra.mxu0 %v8479_v50  ;;  %v8526_v47 = vld [vmem:[#allocation7 + $0x104] ss:$16 sps:$4 sm:$0xff]  }
 0x684   :  { %6402 = vmatprep.subr.bf16.mxu0 %v8484_v54 }
 0x686   :  { %5668 = vmatpush1.bf16.msra.mxu1 %v8434_v48  ;;  %v8524_v48 = vld [vmem:[#allocation7 + $0x100] ss:$16 sps:$4 sm:$0xff]  }
 0x687   :  { %5669 = vmatprep.subr.bf16.mxu1 %v8439_v49  ;;  %6403 = vmatpush1.bf16.msra.mxu0 %v8482_v56  ;;  %v8532_v56 = vld [vmem:[#allocation7 + $0x2ec] ss:$16 sps:$4 sm:$0xff]  }
 0x688   :  { %6404 = vmatprep.subr.bf16.mxu0 %v8487_v57  ;;  %v8535_v57 = vld [vmem:[#allocation7 + $0x2c4] ss:$16 sps:$4 sm:$0xff]  }
 0x68a   :  { %5670 = vmatpush1.bf16.msra.mxu1 %v8437_v53  ;;  %v8529_v53 = vld [vmem:[#allocation7 + $0x2e4] ss:$16 sps:$4 sm:$0xff]  }
 0x68b   :  { %5671 = vmatprep.subr.bf16.mxu1 %v8442_v55  ;;  %6405 = vmatpush1.bf16.msra.mxu0 %v8485_v60  ;;  %v8527_v55 = vld [vmem:[#allocation7 + $0x2e0] ss:$16 sps:$4 sm:$0xff]  }
 0x68c   :  { %6406 = vmatprep.subr.bf16.mxu0 %v8490_v62  ;;  %v8539_v60 = vld [vmem:[#allocation7 + $0x2a0] ss:$16 sps:$4 sm:$0xff]   ;;  %v8547_v62 = vld [vmem:[#allocation7 + $0x284] ss:$16 sps:$4 sm:$0xff]  }
 0x68e   :  { %5672 = vmatpush1.bf16.msra.mxu1 %v8440_v58  ;;  %v8533_v58 = vld [vmem:[#allocation7 + $0x2c0] ss:$16 sps:$4 sm:$0xff]  }
 0x68f   :  { %5673 = vmatprep.subr.bf16.mxu1 %v8445_v59  ;;  %6407 = vmatpush1.bf16.msra.mxu0 %v8488_v1  ;;  %v8541_v59 = vld [vmem:[#allocation7 + $0x2a4] ss:$16 sps:$4 sm:$0xff]   ;;  %v8551_v1 = vld [vmem:[#allocation7 + $0x260] ss:$16 sps:$4 sm:$0xff]  }
 0x690   :  { %6408 = vmatprep.subr.bf16.mxu0 %v8493_v2  ;;  %v8559_v2 = vld [vmem:[#allocation7 + $0x244] ss:$16 sps:$4 sm:$0xff]  }
 0x692   :  { %5674 = vmatpush1.bf16.msra.mxu1 %v8443_v63  ;;  %v8545_v63 = vld [vmem:[#allocation7 + $0x280] ss:$16 sps:$4 sm:$0xff]  }
 0x693   :  { %5675 = vmatprep.subr.bf16.mxu1 %v8448_v0  ;;  %6409 = vmatpush1.bf16.msra.mxu0 %v8491_v4  ;;  %v8553_v0 = vld [vmem:[#allocation7 + $0x264] ss:$16 sps:$4 sm:$0xff]   ;;  %v8563_v4 = vld [vmem:[#allocation7 + $0x220] ss:$16 sps:$4 sm:$0xff]  }
 0x694   :  { %6410 = vmatprep.subr.bf16.mxu0 %v8496_v5  ;;  %v8571_v5 = vld [vmem:[#allocation7 + $0x204] ss:$16 sps:$4 sm:$0xff]  }
 0x696   :  { %5676 = vmatpush1.bf16.msra.mxu1 %v8446_v40  ;;  %v8557_v40 = vld [vmem:[#allocation7 + $0x240] ss:$16 sps:$4 sm:$0xff]  }
 0x697   :  { %5677 = vmatprep.subr.bf16.mxu1 %v8451_v3  ;;  %6411 = vmatpush1.bf16.msra.mxu0 %v8494_v13  ;;  %v8565_v3 = vld [vmem:[#allocation7 + $0x224] ss:$16 sps:$4 sm:$0xff]   ;;  %v8575_v13 = vld [vmem:[#allocation7 + $0x300] ss:$16 sps:$4 sm:$0xff]  }
 0x698   :  { %6412 = vmatprep.subr.bf16.mxu0 %v8499_v9 }
 0x69a   :  { %5678 = vmatpush1.bf16.msra.mxu1 %v8449_v39  ;;  %v8569_v39 = vld [vmem:[#allocation7 + $0x200] ss:$16 sps:$4 sm:$0xff]  }
 0x69b   :  { %5679 = vmatprep.subr.bf16.mxu1 %v8454_v12  ;;  %6413 = vmatpush1.bf16.msra.mxu0 %v8497_v34  ;;  %v8577_v12 = vld [vmem:[#allocation7 + $0x304] ss:$16 sps:$4 sm:$0xff]  }
 0x69c   :  { %6414 = vmatprep.subr.bf16.mxu0 %v8502_v20 }
 0x69e   :  { %5680 = vmatpush1.bf16.msra.mxu1 %v8452_v14  ;;  %v8583_v14 = vld [vmem:[#allocation7 + $0xec] ss:$16 sps:$4 sm:$0xff]  }
 0x69f   :  { %5681 = vmatprep.subr.bf16.mxu1 %v8457_v15  ;;  %6415 = vmatpush1.bf16.msra.mxu0 %v8500_v21  ;;  %v10589_v15 = vld [vmem:[%s10632_s12] sm:$0xf] }
 0x6a0   :  { %6416 = vmatprep.subr.bf16.mxu0 %v8505_v35 }
 0x6a2   :  { %5682 = vmatpush2.bf16.msra.mxu1 %v8455_v16  ;;  %v5063_v16 = vrot.slane %v10589_v15, %v9723_v19 }
 0x6a3   :  { %5683 = vmatprep.subr.bf16.mxu1 %v8460_v17  ;;  %6417 = vmatpush2.bf16.msra.mxu0 %v8503_v36  ;;  %v5067_v17 = vrot.slane %v10589_v15, %v9725_v52 }
 0x6a4   :  { %6418 = vmatprep.subr.bf16.mxu0 %v8508_v61 }
 0x6a6   :  { %5684 = vmatpush2.bf16.msra.mxu1 %v8458_v18 }
 0x6a7   :  { %5685 = vmatprep.subr.bf16.mxu1 %v8463_v22  ;;  %6419 = vmatpush2.bf16.msra.mxu0 %v8506_v37 }
 0x6a8   :  { %6420 = vmatprep.subr.bf16.mxu0 %v8511_v8  ;;  %v8530_v8 = vld [vmem:[#allocation7 + $0x2e8] ss:$16 sps:$4 sm:$0xff]  }
 0x6aa   :  { %5686 = vmatpush2.bf16.msra.mxu1 %v8461_v23 }
 0x6ab   :  { %5687 = vmatprep.subr.bf16.mxu1 %v8466_v24  ;;  %6421 = vmatpush2.bf16.msra.mxu0 %v8509_v38 }
 0x6ae   :  { %5688 = vmatpush2.bf16.msra.mxu1 %v8464_v25 }
 0x6af   :  { %5689 = vmatprep.subr.bf16.mxu1 %v8469_v26 }
 0x6b2   :  { %5690 = vmatpush2.bf16.msra.mxu1 %v8467_v27 }
 0x6b3   :  { %5691 = vmatprep.subr.bf16.mxu1 %v8472_v28 }
 0x6b6   :  { %5692 = vmatpush2.bf16.msra.mxu1 %v8470_v29 }
 0x6b7   :  { %5693 = vmatprep.subr.bf16.mxu1 %v8475_v30 }
 0x6ba   :  { %5694 = vmatpush2.bf16.msra.mxu1 %v8473_v31 }
 0x6bb   :  { %5695 = vmatprep.subr.bf16.mxu1 %v8478_v32 }
 0x6be   :  { %5696 = vmatpush2.bf16.msra.mxu1 %v8476_v33 }
 0x6bf   :  { %6441 = vmatprep.subr.bf16.mxu1 %v8529_v53  ;;  %v8574_v53 = vld [vmem:[#allocation7 + $0x20c] ss:$16 sps:$4 sm:$0xff]  }
 0x6c1   :  { %5698 = vmatmul.mubr.bf16.vlgmr.msra.gmra.mxu1 %v10574_v6  ;;  %v8514_v6 = vld [vmem:[#allocation7 + $0x184] ss:$16 sps:$4 sm:$0xff]  }
 0x6c2   :  { %6422 = vmatprep.subr.bf16.mxu0 %v8514_v6  ;;  %6442 = vmatpush1.bf16.msra.mxu1 %v8527_v55  ;;  %v8538_v6 = vld [vmem:[#allocation7 + $0x2cc] ss:$16 sps:$4 sm:$0xff]  }
 0x6c3   :  { %6423 = vmatpush2.bf16.msra.mxu0 %v8512_v7  ;;  %6443 = vmatprep.subr.bf16.mxu1 %v8535_v57  ;;  %v8536_v7 = vld [vmem:[#allocation7 + $0x2c8] ss:$16 sps:$4 sm:$0xff]  }
 0x6c4   :  { %6424 = vmatprep.subr.bf16.mxu0 %v8517_v42  ;;  %v8542_v42 = vld [vmem:[#allocation7 + $0x2a8] ss:$16 sps:$4 sm:$0xff]  }
 0x6c5   :  { %v8572_v57 = vld [vmem:[#allocation7 + $0x208] ss:$16 sps:$4 sm:$0xff]  }
 0x6c6   :  { %6444 = vmatpush1.bf16.msra.mxu1 %v8533_v58 }
 0x6c7   :  { %6425 = vmatpush2.bf16.msra.mxu0 %v8515_v41  ;;  %6445 = vmatprep.subr.bf16.mxu1 %v8541_v59  ;;  %v8544_v41 = vld [vmem:[#allocation7 + $0x2ac] ss:$16 sps:$4 sm:$0xff]  }
 0x6c8   :  { %6426 = vmatprep.subr.bf16.mxu0 %v8520_v43  ;;  %v8550_v43 = vld [vmem:[#allocation7 + $0x28c] ss:$16 sps:$4 sm:$0xff]  }
 0x6c9   :  { %v8580_v59 = vld [vmem:[#allocation7 + $0x30c] ss:$16 sps:$4 sm:$0xff]  }
 0x6ca   :  { %6446 = vmatpush1.bf16.msra.mxu1 %v8539_v60 }
 0x6cb   :  { %6427 = vmatpush2.bf16.msra.mxu0 %v8518_v44  ;;  %6447 = vmatprep.subr.bf16.mxu1 %v8547_v62  ;;  %v8548_v44 = vld [vmem:[#allocation7 + $0x288] ss:$16 sps:$4 sm:$0xff]  }
 0x6cc   :  { %6428 = vmatprep.subr.bf16.mxu0 %v8523_v45  ;;  %v8556_v45 = vld [vmem:[#allocation7 + $0x26c] ss:$16 sps:$4 sm:$0xff]  }
 0x6ce   :  { %6448 = vmatpush1.bf16.msra.mxu1 %v8545_v63 }
 0x6cf   :  { %6429 = vmatpush2.bf16.msra.mxu0 %v8521_v46  ;;  %6449 = vmatprep.subr.bf16.mxu1 %v8553_v0  ;;  %v8554_v46 = vld [vmem:[#allocation7 + $0x268] ss:$16 sps:$4 sm:$0xff]  }
 0x6d0   :  { %6430 = vmatprep.subr.bf16.mxu0 %v8526_v47  ;;  %v8562_v47 = vld [vmem:[#allocation7 + $0x24c] ss:$16 sps:$4 sm:$0xff]  }
 0x6d2   :  { %6450 = vmatpush1.bf16.msra.mxu1 %v8551_v1 }
 0x6d3   :  { %6431 = vmatpush2.bf16.msra.mxu0 %v8524_v48  ;;  %6451 = vmatprep.subr.bf16.mxu1 %v8559_v2  ;;  %v8560_v48 = vld [vmem:[#allocation7 + $0x248] ss:$16 sps:$4 sm:$0xff]  }
 0x6d4   :  { %6523 = vmatprep.subr.bf16.mxu0 %v8532_v56  ;;  %v8578_v2 = vld [vmem:[#allocation7 + $0x308] ss:$16 sps:$4 sm:$0xff]  }
 0x6d6   :  { %6452 = vmatpush1.bf16.msra.mxu1 %v8557_v40 }
 0x6d7   :  { %6453 = vmatprep.subr.bf16.mxu1 %v8565_v3 }
 0x6da   :  { %6454 = vmatpush1.bf16.msra.mxu1 %v8563_v4 }
 0x6db   :  { %6455 = vmatprep.subr.bf16.mxu1 %v8571_v5 }
 0x6de   :  { %6456 = vmatpush1.bf16.msra.mxu1 %v8569_v39 }
 0x6df   :  { %6471 = vmatprep.subr.bf16.mxu1 %v8577_v12 }
 0x6e2   :  { %6472 = vmatpush2.bf16.msra.mxu1 %v8575_v13 }
 0x6e3   :  { %6482 = vmatprep.subr.bf16.mxu1 %v8583_v14 }
 0x6ff   :  { %v5617_v49 = vpop.f32.mrf.mxu0 }
 0x700   :  { %v5618_v18 = vadd.f32 %v5617_v49, %v5063_v16  ;;  %v8568_v49 = vld [vmem:[#allocation7 + $0x22c] ss:$16 sps:$4 sm:$0xff]   ;;  %v8581_v16 = vld [vmem:[#allocation7 + $0xe8] ss:$16 sps:$4 sm:$0xff]  }
 0x701   :  { %v5619_v50 = vpop.f32.mrf.mxu0 }
 0x702   :  { %v5620_v24 = vadd.f32 %v5619_v50, %v5067_v17  ;;  %v5071_v50 = vrot.slane %v10589_v15, %v9774_v10 }
 0x703   :  { %v5621_v51 = vpop.f32.mrf.mxu0 }
 0x704   :  { %v8566_v51 = vld [vmem:[#allocation7 + $0x228] ss:$16 sps:$4 sm:$0xff]  }
 0x705   :  { %v5622_v54 = vpop.f32.mrf.mxu0 }
 0x706   :  { %v5075_v54 = vrot.slane %v10589_v15, %v9776_v11 }
 0x741   :  { %v5658_v22 = vpop.f32.mrf.mxu1  ;;  %v5740_v23 = vpop.f32.mrf.mxu0 }
 0x742   :  { %v5659_v25 = vadd.f32 %v5658_v22, %v5618_v18  ;;  %v8586_v18 = vld [vmem:[#allocation7 + $0xcc] ss:$16 sps:$4 sm:$0xff]   ;;  %v8584_v22 = vld [vmem:[#allocation7 + $0xc8] ss:$16 sps:$4 sm:$0xff]  }
 0x743   :  { %v5660_v26 = vpop.f32.mrf.mxu1  ;;  %v5742_v27 = vpop.f32.mrf.mxu0 }
 0x744   :  { %v7316_v28 = vmul.f32 -1.442695, %v5659_v25  ;;  %v5661_v29 = vadd.f32 %v5660_v26, %v5620_v24  ;;  %v8587_v24 = vld [vmem:[#allocation7 + $0xa8] ss:$16 sps:$4 sm:$0xff]   ;;  %v8592_v25 = vld [vmem:[#allocation7 + $0x8c] ss:$16 sps:$4 sm:$0xff]  }
 0x745   :  { %v5662_v30 = vpop.f32.mrf.mxu1  ;;  %v5744_v31 = vpop.f32.mrf.mxu0  ;;  %v8590_v26 = vld [vmem:[#allocation7 + $0x88] ss:$16 sps:$4 sm:$0xff]  }
 0x746   :  { %8709 = vpow2.f32 %v7316_v28  ;;  %v7317_v32 = vmul.f32 -1.442695, %v5661_v29  ;;  %v8593_v28 = vld [vmem:[#allocation7 + $0x68] ss:$16 sps:$4 sm:$0xff]   ;;  %v8598_v29 = vld [vmem:[#allocation7 + $0x4c] ss:$16 sps:$4 sm:$0xff]  }
 0x747   :  { %v5663_v33 = vpop.f32.mrf.mxu1  ;;  %v5745_v9 = vpop.f32.mrf.mxu0  ;;  %v8596_v30 = vld [vmem:[#allocation7 + $0x48] ss:$16 sps:$4 sm:$0xff]   ;;  %v8601_v31 = vld [vmem:[#allocation7 + $0x2c] ss:$16 sps:$4 sm:$0xff]  }
 0x748   :  { %8711 = vpow2.f32 %v7317_v32  ;;  %v8599_v32 = vld [vmem:[#allocation7 + $0x28] ss:$16 sps:$4 sm:$0xff]   ;;  %v8604_v33 = vld [vmem:[#allocation7 + $0xc] ss:$16 sps:$4 sm:$0xff]  }
 0x749   :  { %v8602_v9 = vld [vmem:[#allocation7 + $0x8] ss:$16 sps:$4 sm:$0xff]  }
 0x753   :  { %v8710_v34 = vpop.eup %8709 }
 0x754   :  { %v5759_v20 = vadd.f32 1.0, %v8710_v34  ;;  %v8607_v34 = vld [vmem:[#allocation7 + $0x1ec] ss:$16 sps:$4 sm:$0xff]  }
 0x755   :  { %v8712_v21 = vpop.eup %8711 }
 0x756   :  { %v5760_v35 = vadd.f32 1.0, %v8712_v21  ;;  %8713 = vrcp.f32 %v5759_v20  ;;  %v8605_v20 = vld [vmem:[#allocation7 + $0x1e8] ss:$16 sps:$4 sm:$0xff]   ;;  %v8610_v21 = vld [vmem:[#allocation7 + $0x1cc] ss:$16 sps:$4 sm:$0xff]  }
 0x758   :  { %8715 = vrcp.f32 %v5760_v35  ;;  %v8608_v35 = vld [vmem:[#allocation7 + $0x1c8] ss:$16 sps:$4 sm:$0xff]  }
 0x763   :  { %v8714_v36 = vpop.eup %8713 }
 0x764   :  { %v10597_v38 = vpack.c.bf16 %v8714_v36, %v8714_v36  ;;  %v8613_v36 = vld [vmem:[#allocation7 + $0x1ac] ss:$16 sps:$4 sm:$0xff]  }
 0x765   :  { %v8716_v61 = vpop.eup %8715 }
 0x766   :  { %v10595_v37 = vpack.c.bf16 %v8716_v61, %v8716_v61  ;;  %v8611_v61 = vld [vmem:[#allocation7 + $0x1a8] ss:$16 sps:$4 sm:$0xff]  }
 0x768   :  { %6432 = vmatprep.mubr.bf16.mxu0 %v10595_v37 }
 0x769   :  { %6433 = vmatmul.mubr.bf16.vlgmr.msra.gmra.mxu0 %v10597_v38 }
 0x76a   :  { %6524 = vmatpush1.bf16.msra.mxu0 %v8530_v8  ;;  %v8614_v8 = vld [vmem:[#allocation7 + $0x188] ss:$16 sps:$4 sm:$0xff]  }
 0x76b   :  { %6525 = vmatprep.subr.bf16.mxu0 %v8538_v6  ;;  %v8619_v6 = vld [vmem:[#allocation7 + $0x16c] ss:$16 sps:$4 sm:$0xff]  }
 0x76e   :  { %6526 = vmatpush1.bf16.msra.mxu0 %v8536_v7  ;;  %v8617_v7 = vld [vmem:[#allocation7 + $0x168] ss:$16 sps:$4 sm:$0xff]  }
 0x76f   :  { %6527 = vmatprep.subr.bf16.mxu0 %v8544_v41  ;;  %v8622_v41 = vld [vmem:[#allocation7 + $0x14c] ss:$16 sps:$4 sm:$0xff]  }
 0x772   :  { %6528 = vmatpush1.bf16.msra.mxu0 %v8542_v42  ;;  %v8620_v42 = vld [vmem:[#allocation7 + $0x148] ss:$16 sps:$4 sm:$0xff]  }
 0x773   :  { %6529 = vmatprep.subr.bf16.mxu0 %v8550_v43  ;;  %v8625_v43 = vld [vmem:[#allocation7 + $0x12c] ss:$16 sps:$4 sm:$0xff]  }
 0x776   :  { %6530 = vmatpush1.bf16.msra.mxu0 %v8548_v44  ;;  %v8623_v44 = vld [vmem:[#allocation7 + $0x128] ss:$16 sps:$4 sm:$0xff]  }
 0x777   :  { %6531 = vmatprep.subr.bf16.mxu0 %v8556_v45  ;;  %v8628_v45 = vld [vmem:[#allocation7 + $0x10c] ss:$16 sps:$4 sm:$0xff]  }
 0x77a   :  { %6532 = vmatpush1.bf16.msra.mxu0 %v8554_v46  ;;  %v8626_v46 = vld [vmem:[#allocation7 + $0x108] ss:$16 sps:$4 sm:$0xff]  }
 0x77b   :  { %6533 = vmatprep.subr.bf16.mxu0 %v8562_v47 }
 0x77e   :  { %6534 = vmatpush1.bf16.msra.mxu0 %v8560_v48 }
 0x77f   :  { %6535 = vmatprep.subr.bf16.mxu0 %v8568_v49 }
 0x781   :  { %v5699_v55 = vpop.f32.mrf.mxu1 }
 0x782   :  { %v5700_v56 = vadd.f32 %v5699_v55, %v5071_v50  ;;  %6536 = vmatpush1.bf16.msra.mxu0 %v8566_v51  ;;  %v5875_v51 = vld [vmem:[%s10634_s14] sm:$0xf]  ;;  %s8817_s14 = smov [#allocation8]  }
 0x783   :  { %v5701_v58 = vpop.f32.mrf.mxu1  ;;  %6537 = vmatprep.subr.bf16.mxu0 %v8574_v53  ;;  %v5880_v53 = vrot.slane %v5875_v51, %v9723_v19  ;;  %v5892_v19 = vrot.slane %v5875_v51, %v9776_v11  ;;  %s6574_s6 = sshll.u32 %s8817_s14, 4  ;;  %s6575_s6 = int_to_ptr.vmem [resolvable:$true] %s6574_s6 }
 0x784   :  { %v5741_v60 = vadd.f32 %v5740_v23, %v5700_v56  ;;  %v5702_v62 = vadd.f32 %v5701_v58, %v5075_v54  ;;  %v8589_v23 = vld [vmem:[#allocation7 + $0xac] ss:$16 sps:$4 sm:$0xff]   ;;  %v5884_v54 = vrot.slane %v5875_v51, %v9725_v52  ;;  %s8785_s3 = scalar_lea.vmem %s6575_s6, 512  ;;  %p8790_p2 = scmp.lt.s32.totalorder %s6575_s6, %s6575_s6 }
 0x785   :  { %v5703_v63 = vpop.f32.mrf.mxu1  ;;  %p8786_p1 = scmp.ne.s32.totalorder %s6575_s6, %s8785_s3  ;;  %p8791_p3 = scmp.lt.s32.totalorder %s8785_s3, %s8785_s3 }
 0x786   :  { %v7318_v0 = vmul.f32 -1.442695, %v5741_v60  ;;  %v5743_v1 = vadd.f32 %v5742_v27, %v5702_v62  ;;  %6538 = vmatpush1.bf16.msra.mxu0 %v8572_v57  ;;  %v8595_v27 = vld [vmem:[#allocation7 + $0x6c] ss:$16 sps:$4 sm:$0xff]  }
 0x787   :  { %v5704_v40 = vpop.f32.mrf.mxu1  ;;  %6553 = vmatprep.subr.bf16.mxu0 %v8580_v59  ;;  %p8792_p4 = por %p8791_p3, %p8790_p2 }
 0x788   :  { %8717 = vpow2.f32 %v7318_v0  ;;  %v7319_v3 = vmul.f32 -1.442695, %v5743_v1  ;;  %v5888_v40 = vrot.slane %v5875_v51, %v9774_v10 }
 0x789   :  { %p8793_p5 = pnand %p8792_p4, %p8786_p1 }
 0x78a   :  { %8719 = vpow2.f32 %v7319_v3  ;;  %6554 = vmatpush2.bf16.msra.mxu0 %v8578_v2 }
 0x795   :  { %v8718_v4 = vpop.eup %8717 }
 0x796   :  { %v5761_v5 = vadd.f32 1.0, %v8718_v4 }
 0x797   :  { %v8720_v39 = vpop.eup %8719 }
 0x798   :  { %v5762_v12 = vadd.f32 1.0, %v8720_v39  ;;  %8721 = vrcp.f32 %v5761_v5 }
 0x79a   :  { %8723 = vrcp.f32 %v5762_v12 }
 0x7a5   :  { %v8722_v13 = vpop.eup %8721 }
 0x7a6   :  { %v5773_v17 = vpack.c.bf16 %v8722_v13, %v8722_v13 }
 0x7a7   :  { %v8724_v14 = vpop.eup %8723 }
 0x7a8   :  { %v5774_v15 = vpack.c.bf16 %v8724_v14, %v8724_v14 }
 0x7aa   :  { %7420 = vmatprep.mubr.msk.bf16.mxu1 %vm2311_vm1, %v5774_v15  ;;  %7421 = vmatprep.mubr.msk.bf16.mxu0 %vm2311_vm1, %v5774_v15 }
 0x7ab   :  { %6474 = vmatmul.mubr.bf16.vlgmr.msra.gmra.mxu1 %v5773_v17  ;;  %6556 = vmatmul.mubr.bf16.vlgmr.msra.gmra.mxu0 %v5773_v17 }
 0x7ac   :  { %6483 = vmatpush1.bf16.msra.mxu1 %v8581_v16  ;;  %6514 = vmatprep.mubr.bf16.mxu1 %v10595_v37  ;;  %v8616_v37 = vld [vmem:[#allocation7 + $0x18c] ss:$16 sps:$4 sm:$0xff]  }
 0x7ad   :  { %6484 = vmatprep.subr.bf16.mxu1 %v8586_v18 }
 0x7b0   :  { %6485 = vmatpush1.bf16.msra.mxu1 %v8584_v22 }
 0x7b1   :  { %6486 = vmatprep.subr.bf16.mxu1 %v8589_v23 }
 0x7b4   :  { %6487 = vmatpush1.bf16.msra.mxu1 %v8587_v24 }
 0x7b5   :  { %6488 = vmatprep.subr.bf16.mxu1 %v8592_v25 }
 0x7b8   :  { %6489 = vmatpush1.bf16.msra.mxu1 %v8590_v26 }
 0x7b9   :  { %6490 = vmatprep.subr.bf16.mxu1 %v8595_v27 }
 0x7bc   :  { %6491 = vmatpush1.bf16.msra.mxu1 %v8593_v28 }
 0x7bd   :  { %6492 = vmatprep.subr.bf16.mxu1 %v8598_v29 }
 0x7c0   :  { %6493 = vmatpush1.bf16.msra.mxu1 %v8596_v30 }
 0x7c1   :  { %6494 = vmatprep.subr.bf16.mxu1 %v8601_v31 }
 0x7c4   :  { %6495 = vmatpush1.bf16.msra.mxu1 %v8599_v32 }
 0x7c5   :  { %6496 = vmatprep.subr.bf16.mxu1 %v8604_v33 }
 0x7c8   :  { %6497 = vmatpush1.bf16.msra.mxu1 %v8602_v9 }
 0x7c9   :  { %6498 = vmatprep.subr.bf16.mxu1 %v8607_v34 }
 0x7cc   :  { %6499 = vmatpush2.bf16.msra.mxu1 %v8605_v20 }
 0x7cd   :  { %6500 = vmatprep.subr.bf16.mxu1 %v8610_v21 }
 0x7d0   :  { %6501 = vmatpush2.bf16.msra.mxu1 %v8608_v35 }
 0x7d1   :  { %6502 = vmatprep.subr.bf16.mxu1 %v8613_v36 }
 0x7d4   :  { %6503 = vmatpush2.bf16.msra.mxu1 %v8611_v61 }
 0x7d5   :  { %6504 = vmatprep.subr.bf16.mxu1 %v8616_v37 }
 0x7d8   :  { %6505 = vmatpush2.bf16.msra.mxu1 %v8614_v8 }
 0x7d9   :  { %6506 = vmatprep.subr.bf16.mxu1 %v8619_v6 }
 0x7dc   :  { %6507 = vmatpush2.bf16.msra.mxu1 %v8617_v7 }
 0x7dd   :  { %6508 = vmatprep.subr.bf16.mxu1 %v8622_v41 }
 0x7e0   :  { %6509 = vmatpush2.bf16.msra.mxu1 %v8620_v42 }
 0x7e1   :  { %6510 = vmatprep.subr.bf16.mxu1 %v8625_v43 }
 0x7e4   :  { %6511 = vmatpush2.bf16.msra.mxu1 %v8623_v44 }
 0x7e5   :  { %6512 = vmatprep.subr.bf16.mxu1 %v8628_v45 }
 0x7e8   :  { %6513 = vmatpush2.bf16.msra.mxu1 %v8626_v46 }
 0x7eb   :  { %6515 = vmatmul.mubr.bf16.vlgmr.msra.gmra.mxu1 %v10597_v38 }
 0x829   :  { %v6434_v47 = vpop.f32.mrf.mxu0 }
 0x82a   :  { %v6435_v55 = vadd.f32 %v6434_v47, %v5880_v53 }
 0x82b   :  { %v6436_v48 = vpop.f32.mrf.mxu0 }
 0x82c   :  { %v6437_v58 = vadd.f32 %v6436_v48, %v5884_v54 }
 0x82d   :  { %v6438_v49 = vpop.f32.mrf.mxu0 }
 0x82f   :  { %v6439_v50 = vpop.f32.mrf.mxu0 }
 0x86b   :  { %v6475_v56 = vpop.f32.mrf.mxu1  ;;  %v6557_v57 = vpop.f32.mrf.mxu0 }
 0x86c   :  { %v6476_v59 = vadd.f32 %v6475_v56, %v6435_v55 }
 0x86d   :  { %v6477_v60 = vpop.f32.mrf.mxu1  ;;  %v6559_v62 = vpop.f32.mrf.mxu0 }
 0x86e   :  { %6564 = vst [vmem:[#allocation8] sm:$0xff] %v6476_v59  ;;  %v6478_v38 = vadd.f32 %v6477_v60, %v6437_v58 }
 0x86f   :  { %v6479_v63 = vpop.f32.mrf.mxu1  ;;  %v6561_v0 = vpop.f32.mrf.mxu0 }
 0x870   :  { %6565 = vst [vmem:[#allocation8 + $0x8] sm:$0xff] %v6478_v38 }
 0x871   :  { %v6480_v1 = vpop.f32.mrf.mxu1  ;;  %v6562_v2 = vpop.f32.mrf.mxu0 }
 0x8ab   :  { %v6516_v3 = vpop.f32.mrf.mxu1 }
 0x8ac   :  { %v6517_v52 = vadd.f32 %v6516_v3, %v5888_v40 }
 0x8ad   :  { %v6518_v4 = vpop.f32.mrf.mxu1 }
 0x8ae   :  { %v6558_v5 = vadd.f32 %v6557_v57, %v6517_v52  ;;  %v6519_v39 = vadd.f32 %v6518_v4, %v5892_v19 }
 0x8af   :  { %v6520_v12 = vpop.f32.mrf.mxu1 }
 0x8b0   :  { %6566 = vst [vmem:[#allocation8 + $0x10] sm:$0xff] %v6558_v5  ;;  %v6560_v13 = vadd.f32 %v6559_v62, %v6519_v39 }
 0x8b1   :  { %v6521_v14 = vpop.f32.mrf.mxu1 }
 0x8b2   :  { %6567 = vst.msk [vmem:[#allocation8 + $0x18] sm:$0xff] %vm2311_vm1, %v6560_v13 }
 0x8b3   :  { %8796 = shalt.err (!%p8793_p5)
}
 0x8b4   :  { %6577 = dma.vmem_to_hbm [thread:$0]  %s6575_s6, 512, %s10635_s15, [#allocation4]  }
 0x8b5   :  { %8809 = dma.done.wait [#allocation4], 512  }
 0x8b6   :  { %8810 = vsyncadd [#allocation4], 4294966784 }
 0x8b7   :  { %6581 = vsyncpa [#allocation3], 1 }
 0x8b8   :  { %6582 = vsyncpa [#allocation6], 1 }
 0x8b9   :  { %6583 = vsyncpa [#allocation4], 1 }

</bundles_post_ra>
